<compile_context>
chip_gen: v6e
topology: v6e:2x2x1
jax: 0.10.0
libtpu: 0.0.40
codegen_flags: <defaults>
</compile_context>

<pallas_src>
import functools

import jax
import jax.numpy as jnp
from jax import lax
from jax.experimental import pallas as pl
from jax.experimental.pallas import tpu as pltpu


# -----------------------------------------------------------------------------
# Pallas kernels
# -----------------------------------------------------------------------------
def _convT_kernel(colT_ref, w_ref, b_ref, o_ref, *, act, n_first):
    """One network's conv-as-matmul tile in transposed orientation.

    colT_ref : (K, TM)  bf16  im2col^T columns for TM output pixels
    w_ref    : (N, K)   bf16  packed conv weights (Cout rows, sublane-padded)
    b_ref    : (N, 1)   f32   bias
    o_ref    : (N, TM)  f32   act(w @ colT + b)  -- lane dim TM >= 128 (dense)
    """
    acc = jnp.dot(w_ref[...], colT_ref[...], preferred_element_type=jnp.float32)
    acc = acc + b_ref[...]
    if act == "relu":
        acc = jnp.maximum(acc, 0.0)
    elif act == "tanh_sigmoid":
        # first `n_first` output channels -> tanh (image decoder),
        # remaining channels -> sigmoid (residual mask decoder).
        row = lax.broadcasted_iota(jnp.int32, acc.shape, 0)
        acc = jnp.where(row < n_first, jnp.tanh(acc), jax.nn.sigmoid(acc))
    # act == "none": linear (discriminators)
    o_ref[...] = acc.astype(o_ref.dtype)


def conv_group(colT_list, w_list, b_list, act, n_first=0):
    """Run G structurally identical 3x3 convs as ONE pallas_call.

    colT_list[g] : (K, M) f32  transposed im2col of network g's input
    w_list[g]    : (N, K) f32  packed weights (Cout rows); same N, K for all g
    b_list[g]    : (N,)   f32  bias
    returns      : (G, N, M) f32
    """
    G = len(colT_list)
    K, M = colT_list[0].shape
    N = w_list[0].shape[0]
    N8 = ((N + 7) // 8) * 8                       # sublane-pad Cout
    Mp = pl.cdiv(M, 128) * 128                    # lane-pad pixel axis

    colT = jnp.stack(colT_list).astype(jnp.bfloat16)             # (G, K, M)
    if Mp != M:
        colT = jnp.pad(colT, ((0, 0), (0, 0), (0, Mp - M)))
    w = jnp.stack([jnp.pad(wt, ((0, N8 - N), (0, 0))) for wt in w_list]
                  ).astype(jnp.bfloat16)                          # (G, N8, K)
    b = jnp.stack([jnp.pad(bb.reshape(-1, 1).astype(jnp.float32),
                           ((0, N8 - N), (0, 0)))
                   for bb in b_list])                             # (G, N8, 1)

    # 256-wide pixel tiles -> 2 blocks along M when M == 512 (one per v7x TC);
    # every output block is lane-dense (multiple of 128) -> unmasked vst.
    TM = 256 if Mp % 256 == 0 else 128
    TM = min(TM, Mp)

    out = pl.pallas_call(
        functools.partial(_convT_kernel, act=act, n_first=n_first),
        out_shape=jax.ShapeDtypeStruct((G, N8, Mp), jnp.float32),
        grid=(G, Mp // TM),
        in_specs=[
            pl.BlockSpec((None, K, TM), lambda g, m: (g, 0, m)),
            pl.BlockSpec((None, N8, K), lambda g, m: (g, 0, 0)),
            pl.BlockSpec((None, N8, 1), lambda g, m: (g, 0, 0)),
        ],
        out_specs=pl.BlockSpec((None, N8, TM), lambda g, m: (g, 0, m)),
        compiler_params=pltpu.CompilerParams(
            dimension_semantics=("parallel", "parallel")),
    )(colT, w, b)
    return out[:, :N, :M]


def _mae_kernel(a_ref, b_ref, o_ref):
    o_ref[...] = jnp.mean(jnp.abs(a_ref[...] - b_ref[...]), axis=1, keepdims=True)


def _hinge_d_kernel(real_ref, fake_ref, o_ref):
    l_real = jnp.mean(jnp.maximum(1.0 - real_ref[...], 0.0), axis=1, keepdims=True)
    l_fake = jnp.mean(jnp.maximum(1.0 + fake_ref[...], 0.0), axis=1, keepdims=True)
    o_ref[...] = l_real + l_fake


def _hinge_g_kernel(fake_ref, o_ref):
    o_ref[...] = -jnp.mean(fake_ref[...], axis=1, keepdims=True)


def _per_sample_call(kernel, *arrays):
    """Per-row (per-sample) reduction over flattened features, one pallas_call.

    TODO(synk): at realistic image sizes, tile the feature axis with an f32
    accumulator (pl.when init/finalize) so the working set is bounded on v7x.
    """
    R = arrays[0].shape[0]
    flats = [a.reshape(R, -1).astype(jnp.float32) for a in arrays]
    out = pl.pallas_call(
        kernel,
        out_shape=jax.ShapeDtypeStruct((R, 1), jnp.float32),
    )(*flats)
    return out[:, 0]


# -----------------------------------------------------------------------------
# im2col (transposed orientation) — XLA glue feeding the Pallas matmuls
# -----------------------------------------------------------------------------
def im2colT(x_cf):
    """x_cf: (C, B, H, W) -> (9*C, B*H*W) for a 3x3 SAME, stride-1 conv.

    Row order is (dh, dw, c), matching w.reshape(9*C, Cout).
    """
    C, B, H, W = x_cf.shape
    xp = jnp.pad(x_cf, ((0, 0), (0, 0), (1, 1), (1, 1)))
    rows = []
    for dh in range(3):
        for dw in range(3):
            rows.append(xp[:, :, dh:dh + H, dw:dw + W].reshape(C, B * H * W))
    return jnp.concatenate(rows, axis=0)


def pack_wT(w):
    """(3, 3, Cin, Cout) -> (Cout, 9*Cin), row order matching im2colT."""
    return jnp.reshape(w, (-1, w.shape[-1])).T


# -----------------------------------------------------------------------------
# segmentation_model forward (inference path: optimizer=None, mask_S=None)
# -----------------------------------------------------------------------------
LAMBDA_SEG = 1.0
LAMBDA_MOD_CYC = 1.0
LAMBDA_MOD_DISC = 1.0


def segmentation_model_forward(params, x_SA, x_TA):
    B, C, H, W = x_SA.shape
    c_img = C

    cf = lambda x: jnp.transpose(x, (1, 0, 2, 3))     # NCHW -> (C,B,H,W)
    nchw = lambda x: jnp.transpose(x, (1, 0, 2, 3))   # (C,B,H,W) -> NCHW

    x_SA_cf = cf(x_SA)
    x_TA_cf = cf(x_TA)
    p_es, p_et = params["enc_src"], params["enc_tgt"]

    # ---------------- cycle 1 encoders: enc_src(x_SA) | enc_tgt(x_TA) -------
    colT_SA = im2colT(x_SA_cf)
    colT_TA = im2colT(x_TA_cf)
    h1 = conv_group([colT_SA, colT_TA],
                    [pack_wT(p_es["w1"]), pack_wT(p_et["w1"])],
                    [p_es["b1"], p_et["b1"]], act="relu")
    skip_SA_cf = h1[0].reshape(-1, B, H, W)
    skip_TA_cf = h1[1].reshape(-1, B, H, W)

    h2 = conv_group([im2colT(skip_SA_cf), im2colT(skip_TA_cf)],
                    [pack_wT(p_es["w2"]), pack_wT(p_et["w2"])],
                    [p_es["b2"], p_et["b2"]], act="relu")
    s_SA_cf = h2[0].reshape(-1, B, H, W)
    s_TA_cf = h2[1].reshape(-1, B, H, W)

    # ---------------- cycle 1 decoders (decoder + residual fused) -----------
    # net A: dec_tgt + dec_res_src on (s_SA, skip_SA) -> x_SAT, x_SAM
    # net B: dec_src + dec_res_tgt on (s_TA, skip_TA) -> x_TAS, x_TAM
    dA_w = jnp.concatenate([pack_wT(params["dec_tgt"]["w"]),
                            pack_wT(params["dec_res_src"]["w"])], axis=0)
    dA_b = jnp.concatenate([params["dec_tgt"]["b"], params["dec_res_src"]["b"]])
    dB_w = jnp.concatenate([pack_wT(params["dec_src"]["w"]),
                            pack_wT(params["dec_res_tgt"]["w"])], axis=0)
    dB_b = jnp.concatenate([params["dec_src"]["b"], params["dec_res_tgt"]["b"]])
    dec1 = conv_group(
        [im2colT(jnp.concatenate([s_SA_cf, skip_SA_cf], axis=0)),
         im2colT(jnp.concatenate([s_TA_cf, skip_TA_cf], axis=0))],
        [dA_w, dB_w], [dA_b, dB_b], act="tanh_sigmoid", n_first=c_img)
    x_SAT_cf = dec1[0, :c_img].reshape(c_img, B, H, W)
    x_SAM_cf = dec1[0, c_img:c_img + 1].reshape(1, B, H, W)
    x_TAS_cf = dec1[1, :c_img].reshape(c_img, B, H, W)
    x_TAM_cf = dec1[1, c_img:c_img + 1].reshape(1, B, H, W)

    # ---------------- cycle 2 encoders: enc_tgt(x_SAT) | enc_src(x_TAS) -----
    colT_SAT = im2colT(x_SAT_cf)
    colT_TAS = im2colT(x_TAS_cf)
    g1 = conv_group([colT_SAT, colT_TAS],
                    [pack_wT(p_et["w1"]), pack_wT(p_es["w1"])],
                    [p_et["b1"], p_es["b1"]], act="relu")
    skip_SAT_cf = g1[0].reshape(-1, B, H, W)
    skip_TAS_cf = g1[1].reshape(-1, B, H, W)

    g2 = conv_group([im2colT(skip_SAT_cf), im2colT(skip_TAS_cf)],
                    [pack_wT(p_et["w2"]), pack_wT(p_es["w2"])],
                    [p_et["b2"], p_es["b2"]], act="relu")
    s_SAT_cf = g2[0].reshape(-1, B, H, W)
    s_TAS_cf = g2[1].reshape(-1, B, H, W)

    # ---------------- cycle 2 decoders ---------------------------------------
    # net A: dec_src + dec_res_tgt on (s_SAT, skip_SAT) -> x_SATS, x_SATM
    # net B: dec_tgt on (s_TAS, skip_TAS)               -> x_TAST (+dummy row)
    eA_w = jnp.concatenate([pack_wT(params["dec_src"]["w"]),
                            pack_wT(params["dec_res_tgt"]["w"])], axis=0)
    eA_b = jnp.concatenate([params["dec_src"]["b"], params["dec_res_tgt"]["b"]])
    Kdec = eA_w.shape[1]
    eB_w = jnp.concatenate([pack_wT(params["dec_tgt"]["w"]),
                            jnp.zeros((1, Kdec), jnp.float32)], axis=0)
    eB_b = jnp.concatenate([params["dec_tgt"]["b"], jnp.zeros((1,), jnp.float32)])
    dec2 = conv_group(
        [im2colT(jnp.concatenate([s_SAT_cf, skip_SAT_cf], axis=0)),
         im2colT(jnp.concatenate([s_TAS_cf, skip_TAS_cf], axis=0))],
        [eA_w, eB_w], [eA_b, eB_b], act="tanh_sigmoid", n_first=c_img)
    x_SATS_cf = dec2[0, :c_img].reshape(c_img, B, H, W)
    x_SATM_cf = dec2[0, c_img:c_img + 1].reshape(1, B, H, W)
    x_TAST_cf = dec2[1, :c_img].reshape(c_img, B, H, W)

    # ---------------- discriminators (deduplicated: each forward once) -------
    # `.detach()` on the fake inputs of loss_D is a value-identity in this
    # forward pass, so the same D(fake) is reused for loss_D and loss_G.
    pdS, pdT = params["disc_S"], params["disc_T"]
    disc = conv_group(
        [colT_SA, colT_TAS, colT_TA, colT_SAT],
        [pack_wT(pdS["w"]), pack_wT(pdS["w"]), pack_wT(pdT["w"]), pack_wT(pdT["w"])],
        [pdS["b"], pdS["b"], pdT["b"], pdT["b"]],
        act="none")
    d_real_S = disc[0, 0].reshape(B, H * W)   # disc_S(x_SA)
    d_fake_S = disc[1, 0].reshape(B, H * W)   # disc_S(x_TAS)
    d_real_T = disc[2, 0].reshape(B, H * W)   # disc_T(x_TA)
    d_fake_T = disc[3, 0].reshape(B, H * W)   # disc_T(x_SAT)

    # ---------------- hinge losses (per-sample, batched over S/T) ------------
    hd = _per_sample_call(_hinge_d_kernel,
                          jnp.concatenate([d_real_S, d_real_T], axis=0),
                          jnp.concatenate([d_fake_S, d_fake_T], axis=0))
    loss_disc_S = LAMBDA_MOD_DISC * hd[:B]
    loss_disc_T = LAMBDA_MOD_DISC * hd[B:]
    loss_D = loss_disc_S + loss_disc_T

    hg = _per_sample_call(_hinge_g_kernel,
                          jnp.concatenate([d_fake_S, d_fake_T], axis=0))
    loss_gen_S = LAMBDA_MOD_DISC * hg[:B]
    loss_gen_T = LAMBDA_MOD_DISC * hg[B:]

    # ---------------- visible outputs (NCHW) ---------------------------------
    x_SAT = nchw(x_SAT_cf)
    x_SATS = nchw(x_SATS_cf)
    x_TAS = nchw(x_TAS_cf)
    x_TAST = nchw(x_TAST_cf)
    x_SAM = nchw(x_SAM_cf)
    x_SATM = nchw(x_SATM_cf)
    x_TAM = nchw(x_TAM_cf)

    # ---------------- MAE cycle losses (per-sample, batched) -----------------
    mae = _per_sample_call(
        _mae_kernel,
        jnp.concatenate([x_SA.reshape(B, -1), x_TA.reshape(B, -1)], axis=0),
        jnp.concatenate([x_SATS.reshape(B, -1), x_TAST.reshape(B, -1)], axis=0))
    loss_rec_SATS = LAMBDA_MOD_CYC * mae[:B]
    loss_rec_TAST = LAMBDA_MOD_CYC * mae[B:]

    loss_G = loss_gen_S + loss_gen_T + loss_rec_SATS + loss_rec_TAST

    visible = {
        "x_SA": x_SA, "x_SAM": x_SAM, "x_SAT": x_SAT, "x_SATM": x_SATM,
        "x_SATS": x_SATS, "x_TA": x_TA, "x_TAM": x_TAM, "x_TAS": x_TAS,
        "x_TAST": x_TAST,
    }
    losses_G = {
        "l_G": loss_G,
        "l_gen_S": loss_gen_S,
        "l_gen_T": loss_gen_T,
        "l_rec_img": loss_rec_SATS + loss_rec_TAST,
    }
    # TODO(synk): mask_S is None in this configuration, so the dice seg-loss
    # branch (which would also crash in the PyTorch reference) is skipped.
    losses_G["l_seg"] = jnp.zeros_like(loss_G)
    losses_G["l_G"] = losses_G["l_G"] + losses_G["l_seg"]

    x_SATM_packed = (x_SATM > 0.5).astype(jnp.int32)
    x_SAM_packed = (x_SAM > 0.5).astype(jnp.int32)
    x_TAM_packed = (x_TAM > 0.5).astype(jnp.int32)

    outputs = dict(visible)
    outputs["x_SATM"] = x_SATM_packed
    outputs["x_SAM"] = x_SAM_packed
    outputs["x_TAM"] = x_TAM_packed
    outputs.update(losses_G)
    outputs["l_DS"] = loss_disc_S
    outputs["l_DT"] = loss_disc_T
    outputs["l_D"] = loss_D
    return outputs


# -----------------------------------------------------------------------------
# Deterministic parameter initialization (synthetic injected sub-networks)
# -----------------------------------------------------------------------------
def init_params(key, c_img=4, f=8, latent=16):
    keys = iter(jax.random.split(key, 32))

    def conv_p(cin, cout):
        return {
            "w": 0.1 * jax.random.normal(next(keys), (3, 3, cin, cout), jnp.float32),
            "b": jnp.zeros((cout,), jnp.float32),
        }

    def enc_p():
        c1 = conv_p(c_img, f)
        c2 = conv_p(f, latent)
        return {"w1": c1["w"], "b1": c1["b"], "w2": c2["w"], "b2": c2["b"]}

    dec_in = latent + f
    return {
        "enc_src": enc_p(),
        "enc_tgt": enc_p(),
        "dec_src": conv_p(dec_in, c_img),
        "dec_tgt": conv_p(dec_in, c_img),
        "dec_res_src": conv_p(dec_in, 1),
        "dec_res_tgt": conv_p(dec_in, 1),
        "disc_S": conv_p(c_img, 1),
        "disc_T": conv_p(c_img, 1),
    }


# -----------------------------------------------------------------------------
if __name__ == "__main__":
    B, C, H, W = 2, 4, 16, 16   # NCHW, matching the PyTorch reference layout
    key = jax.random.PRNGKey(0)
    k_p, k_sa, k_ta = jax.random.split(key, 3)

    params = init_params(k_p, c_img=C, f=8, latent=16)
    x_SA = jax.random.normal(k_sa, (B, C, H, W), jnp.float32)
    x_TA = jax.random.normal(k_ta, (B, C, H, W), jnp.float32)

    fwd = jax.jit(segmentation_model_forward)
    outputs = fwd(params, x_SA, x_TA)
    jax.block_until_ready(outputs["l_G"])
    jax.block_until_ready(outputs["x_SAT"])

    assert outputs["x_SAT"].shape == (B, C, H, W)
    assert outputs["x_SATS"].shape == (B, C, H, W)
    assert outputs["x_SAM"].shape == (B, 1, H, W)
    assert outputs["l_G"].shape == (B,)
    assert outputs["l_D"].shape == (B,)
    print("KERNEL_OK")
</pallas_src>

<mosaic_0001>
module attributes {stable_mosaic.version = 11 : i64} {
  func.func @_convT_kernel(%arg0: i32, %arg1: i32, %arg2: memref<1x36x256xbf16, #tpu.memory_space<vmem>>, %arg3: memref<1x8x36xbf16, #tpu.memory_space<vmem>>, %arg4: memref<1x8x1xf32, #tpu.memory_space<vmem>>, %arg5: memref<1x8x256xf32, #tpu.memory_space<vmem>>) attributes {dimension_semantics = [#tpu.dimension_semantics<parallel>, #tpu.dimension_semantics<parallel>], iteration_bounds = array<i64: 2, 2>, scalar_prefetch = 0 : i64, scratch_operands = 0 : i64, tpu.core_type = #tpu.core_type<tc>, window_params = [{transform_indices = @transform_0, window_bounds = array<i64: 1, 36, 256>}, {transform_indices = @transform_1, window_bounds = array<i64: 1, 8, 36>}, {transform_indices = @transform_2, window_bounds = array<i64: 1, 8, 1>}, {transform_indices = @transform_3, window_bounds = array<i64: 1, 8, 256>}]} {
    %c0 = arith.constant 0 : index
    %c0_0 = arith.constant 0 : index
    %c0_1 = arith.constant 0 : index
    %0 = vector.load %arg3[%c0, %c0_0, %c0_1] : memref<1x8x36xbf16, #tpu.memory_space<vmem>>, vector<1x8x36xbf16>
    %1 = vector.shape_cast %0 : vector<1x8x36xbf16> to vector<8x36xbf16>
    %c0_2 = arith.constant 0 : index
    %c0_3 = arith.constant 0 : index
    %c0_4 = arith.constant 0 : index
    %2 = vector.load %arg2[%c0_2, %c0_3, %c0_4] : memref<1x36x256xbf16, #tpu.memory_space<vmem>>, vector<1x36x256xbf16>
    %3 = vector.shape_cast %2 : vector<1x36x256xbf16> to vector<36x256xbf16>
    %cst = arith.constant dense<0.000000e+00> : vector<8x256xf32>
    %4 = tpu.matmul %1, %3, %cst {dimension_numbers = #tpu.dot_dimension_numbers<[1], [0], [0], [1], [0, 0, 1, 1], [], []>} : vector<8x36xbf16>, vector<36x256xbf16>, vector<8x256xf32> -> vector<8x256xf32>
    %c0_5 = arith.constant 0 : index
    %c0_6 = arith.constant 0 : index
    %c0_7 = arith.constant 0 : index
    %5 = vector.load %arg4[%c0_5, %c0_6, %c0_7] : memref<1x8x1xf32, #tpu.memory_space<vmem>>, vector<1x8x1xf32>
    %6 = vector.shape_cast %5 : vector<1x8x1xf32> to vector<8x1xf32>
    %7 = vector.broadcast %6 : vector<8x1xf32> to vector<8x256xf32>
    %8 = arith.addf %4, %7 : vector<8x256xf32>
    %cst_8 = arith.constant 0.000000e+00 : f32
    %9 = vector.broadcast %cst_8 : f32 to vector<8x256xf32>
    %10 = arith.maximumf %8, %9 : vector<8x256xf32>
    %c0_9 = arith.constant 0 : index
    %c0_10 = arith.constant 0 : index
    %c0_11 = arith.constant 0 : index
    %11 = vector.load %arg5[%c0_9, %c0_10, %c0_11] : memref<1x8x256xf32, #tpu.memory_space<vmem>>, vector<1x8x256xf32>
    %12 = vector.shape_cast %11 : vector<1x8x256xf32> to vector<8x256xf32>
    %13 = vector.shape_cast %10 : vector<8x256xf32> to vector<1x8x256xf32>
    tpu.vector_store %arg5[%c0_9, %c0_10, %c0_11], %13 {strides = array<i32>} : memref<1x8x256xf32, #tpu.memory_space<vmem>>, vector<1x8x256xf32>,
    return
  }
  func.func @transform_0(%arg0: i32, %arg1: i32) -> (i32, i32, i32) {
    %c0_i32 = arith.constant 0 : i32
    %c0_i32_0 = arith.constant 0 : i32
    return %arg0, %c0_i32, %arg1 : i32, i32, i32
  }
  func.func @transform_1(%arg0: i32, %arg1: i32) -> (i32, i32, i32) {
    %c0_i32 = arith.constant 0 : i32
    %c0_i32_0 = arith.constant 0 : i32
    %c0_i32_1 = arith.constant 0 : i32
    return %arg0, %c0_i32, %c0_i32_0 : i32, i32, i32
  }
  func.func @transform_2(%arg0: i32, %arg1: i32) -> (i32, i32, i32) {
    %c0_i32 = arith.constant 0 : i32
    %c0_i32_0 = arith.constant 0 : i32
    %c0_i32_1 = arith.constant 0 : i32
    return %arg0, %c0_i32, %c0_i32_0 : i32, i32, i32
  }
  func.func @transform_3(%arg0: i32, %arg1: i32) -> (i32, i32, i32) {
    %c0_i32 = arith.constant 0 : i32
    %c0_i32_0 = arith.constant 0 : i32
    return %arg0, %c0_i32, %arg1 : i32, i32, i32
  }
}

module attributes {stable_mosaic.version = 11 : i64} {
  func.func @_convT_kernel(%arg0: i32, %arg1: i32, %arg2: memref<1x72x256xbf16, #tpu.memory_space<vmem>>, %arg3: memref<1x16x72xbf16, #tpu.memory_space<vmem>>, %arg4: memref<1x16x1xf32, #tpu.memory_space<vmem>>, %arg5: memref<1x16x256xf32, #tpu.memory_space<vmem>>) attributes {dimension_semantics = [#tpu.dimension_semantics<parallel>, #tpu.dimension_semantics<parallel>], iteration_bounds = array<i64: 2, 2>, scalar_prefetch = 0 : i64, scratch_operands = 0 : i64, tpu.core_type = #tpu.core_type<tc>, window_params = [{transform_indices = @transform_0, window_bounds = array<i64: 1, 72, 256>}, {transform_indices = @transform_1, window_bounds = array<i64: 1, 16, 72>}, {transform_indices = @transform_2, window_bounds = array<i64: 1, 16, 1>}, {transform_indices = @transform_3, window_bounds = array<i64: 1, 16, 256>}]} {
    %c0 = arith.constant 0 : index
    %c0_0 = arith.constant 0 : index
    %c0_1 = arith.constant 0 : index
    %0 = vector.load %arg3[%c0, %c0_0, %c0_1] : memref<1x16x72xbf16, #tpu.memory_space<vmem>>, vector<1x16x72xbf16>
    %1 = vector.shape_cast %0 : vector<1x16x72xbf16> to vector<16x72xbf16>
    %c0_2 = arith.constant 0 : index
    %c0_3 = arith.constant 0 : index
    %c0_4 = arith.constant 0 : index
    %2 = vector.load %arg2[%c0_2, %c0_3, %c0_4] : memref<1x72x256xbf16, #tpu.memory_space<vmem>>, vector<1x72x256xbf16>
    %3 = vector.shape_cast %2 : vector<1x72x256xbf16> to vector<72x256xbf16>
    %cst = arith.constant dense<0.000000e+00> : vector<16x256xf32>
    %4 = tpu.matmul %1, %3, %cst {dimension_numbers = #tpu.dot_dimension_numbers<[1], [0], [0], [1], [0, 0, 1, 1], [], []>} : vector<16x72xbf16>, vector<72x256xbf16>, vector<16x256xf32> -> vector<16x256xf32>
    %c0_5 = arith.constant 0 : index
    %c0_6 = arith.constant 0 : index
    %c0_7 = arith.constant 0 : index
    %5 = vector.load %arg4[%c0_5, %c0_6, %c0_7] : memref<1x16x1xf32, #tpu.memory_space<vmem>>, vector<1x16x1xf32>
    %6 = vector.shape_cast %5 : vector<1x16x1xf32> to vector<16x1xf32>
    %7 = vector.broadcast %6 : vector<16x1xf32> to vector<16x256xf32>
    %8 = arith.addf %4, %7 : vector<16x256xf32>
    %cst_8 = arith.constant 0.000000e+00 : f32
    %9 = vector.broadcast %cst_8 : f32 to vector<16x256xf32>
    %10 = arith.maximumf %8, %9 : vector<16x256xf32>
    %c0_9 = arith.constant 0 : index
    %c0_10 = arith.constant 0 : index
    %c0_11 = arith.constant 0 : index
    %11 = vector.load %arg5[%c0_9, %c0_10, %c0_11] : memref<1x16x256xf32, #tpu.memory_space<vmem>>, vector<1x16x256xf32>
    %12 = vector.shape_cast %11 : vector<1x16x256xf32> to vector<16x256xf32>
    %13 = vector.shape_cast %10 : vector<16x256xf32> to vector<1x16x256xf32>
    tpu.vector_store %arg5[%c0_9, %c0_10, %c0_11], %13 {strides = array<i32>} : memref<1x16x256xf32, #tpu.memory_space<vmem>>, vector<1x16x256xf32>,
    return
  }
  func.func @transform_0(%arg0: i32, %arg1: i32) -> (i32, i32, i32) {
    %c0_i32 = arith.constant 0 : i32
    %c0_i32_0 = arith.constant 0 : i32
    return %arg0, %c0_i32, %arg1 : i32, i32, i32
  }
  func.func @transform_1(%arg0: i32, %arg1: i32) -> (i32, i32, i32) {
    %c0_i32 = arith.constant 0 : i32
    %c0_i32_0 = arith.constant 0 : i32
    %c0_i32_1 = arith.constant 0 : i32
    return %arg0, %c0_i32, %c0_i32_0 : i32, i32, i32
  }
  func.func @transform_2(%arg0: i32, %arg1: i32) -> (i32, i32, i32) {
    %c0_i32 = arith.constant 0 : i32
    %c0_i32_0 = arith.constant 0 : i32
    %c0_i32_1 = arith.constant 0 : i32
    return %arg0, %c0_i32, %c0_i32_0 : i32, i32, i32
  }
  func.func @transform_3(%arg0: i32, %arg1: i32) -> (i32, i32, i32) {
    %c0_i32 = arith.constant 0 : i32
    %c0_i32_0 = arith.constant 0 : i32
    return %arg0, %c0_i32, %arg1 : i32, i32, i32
  }
}

module attributes {stable_mosaic.version = 11 : i64} {
  func.func @_convT_kernel(%arg0: i32, %arg1: i32, %arg2: memref<1x216x256xbf16, #tpu.memory_space<vmem>>, %arg3: memref<1x8x216xbf16, #tpu.memory_space<vmem>>, %arg4: memref<1x8x1xf32, #tpu.memory_space<vmem>>, %arg5: memref<1x8x256xf32, #tpu.memory_space<vmem>>) attributes {dimension_semantics = [#tpu.dimension_semantics<parallel>, #tpu.dimension_semantics<parallel>], iteration_bounds = array<i64: 2, 2>, scalar_prefetch = 0 : i64, scratch_operands = 0 : i64, tpu.core_type = #tpu.core_type<tc>, window_params = [{transform_indices = @transform_0, window_bounds = array<i64: 1, 216, 256>}, {transform_indices = @transform_1, window_bounds = array<i64: 1, 8, 216>}, {transform_indices = @transform_2, window_bounds = array<i64: 1, 8, 1>}, {transform_indices = @transform_3, window_bounds = array<i64: 1, 8, 256>}]} {
    %c0 = arith.constant 0 : index
    %c0_0 = arith.constant 0 : index
    %c0_1 = arith.constant 0 : index
    %0 = vector.load %arg3[%c0, %c0_0, %c0_1] : memref<1x8x216xbf16, #tpu.memory_space<vmem>>, vector<1x8x216xbf16>
    %1 = vector.shape_cast %0 : vector<1x8x216xbf16> to vector<8x216xbf16>
    %c0_2 = arith.constant 0 : index
    %c0_3 = arith.constant 0 : index
    %c0_4 = arith.constant 0 : index
    %2 = vector.load %arg2[%c0_2, %c0_3, %c0_4] : memref<1x216x256xbf16, #tpu.memory_space<vmem>>, vector<1x216x256xbf16>
    %3 = vector.shape_cast %2 : vector<1x216x256xbf16> to vector<216x256xbf16>
    %cst = arith.constant dense<0.000000e+00> : vector<8x256xf32>
    %4 = tpu.matmul %1, %3, %cst {dimension_numbers = #tpu.dot_dimension_numbers<[1], [0], [0], [1], [0, 0, 1, 1], [], []>} : vector<8x216xbf16>, vector<216x256xbf16>, vector<8x256xf32> -> vector<8x256xf32>
    %c0_5 = arith.constant 0 : index
    %c0_6 = arith.constant 0 : index
    %c0_7 = arith.constant 0 : index
    %5 = vector.load %arg4[%c0_5, %c0_6, %c0_7] : memref<1x8x1xf32, #tpu.memory_space<vmem>>, vector<1x8x1xf32>
    %6 = vector.shape_cast %5 : vector<1x8x1xf32> to vector<8x1xf32>
    %7 = vector.broadcast %6 : vector<8x1xf32> to vector<8x256xf32>
    %8 = arith.addf %4, %7 : vector<8x256xf32>
    %9 = tpu.iota {dimensions = array<i32: 0>} : vector<8x256xi32>
    %c4_i32 = arith.constant 4 : i32
    %10 = vector.broadcast %c4_i32 : i32 to vector<8x256xi32>
    %11 = arith.cmpi slt, %9, %10 : vector<8x256xi32>
    %12 = math.tanh %8 : vector<8x256xf32>
    %13 = arith.negf %8 : vector<8x256xf32>
    %14 = math.exp %13 : vector<8x256xf32>
    %cst_8 = arith.constant 1.000000e+00 : f32
    %15 = vector.broadcast %cst_8 : f32 to vector<8x256xf32>
    %16 = arith.addf %15, %14 : vector<8x256xf32>
    %17 = arith.divf %15, %16 : vector<8x256xf32>
    %18 = arith.select %11, %12, %17 : vector<8x256xi1>, vector<8x256xf32>
    %c0_9 = arith.constant 0 : index
    %c0_10 = arith.constant 0 : index
    %c0_11 = arith.constant 0 : index
    %19 = vector.load %arg5[%c0_9, %c0_10, %c0_11] : memref<1x8x256xf32, #tpu.memory_space<vmem>>, vector<1x8x256xf32>
    %20 = vector.shape_cast %19 : vector<1x8x256xf32> to vector<8x256xf32>
    %21 = vector.shape_cast %18 : vector<8x256xf32> to vector<1x8x256xf32>
    tpu.vector_store %arg5[%c0_9, %c0_10, %c0_11], %21 {strides = array<i32>} : memref<1x8x256xf32, #tpu.memory_space<vmem>>, vector<1x8x256xf32>,
    return
  }
  func.func @transform_0(%arg0: i32, %arg1: i32) -> (i32, i32, i32) {
    %c0_i32 = arith.constant 0 : i32
    %c0_i32_0 = arith.constant 0 : i32
    return %arg0, %c0_i32, %arg1 : i32, i32, i32
  }
  func.func @transform_1(%arg0: i32, %arg1: i32) -> (i32, i32, i32) {
    %c0_i32 = arith.constant 0 : i32
    %c0_i32_0 = arith.constant 0 : i32
    %c0_i32_1 = arith.constant 0 : i32
    return %arg0, %c0_i32, %c0_i32_0 : i32, i32, i32
  }
  func.func @transform_2(%arg0: i32, %arg1: i32) -> (i32, i32, i32) {
    %c0_i32 = arith.constant 0 : i32
    %c0_i32_0 = arith.constant 0 : i32
    %c0_i32_1 = arith.constant 0 : i32
    return %arg0, %c0_i32, %c0_i32_0 : i32, i32, i32
  }
  func.func @transform_3(%arg0: i32, %arg1: i32) -> (i32, i32, i32) {
    %c0_i32 = arith.constant 0 : i32
    %c0_i32_0 = arith.constant 0 : i32
    return %arg0, %c0_i32, %arg1 : i32, i32, i32
  }
}

module attributes {stable_mosaic.version = 11 : i64} {
  func.func @_convT_kernel(%arg0: i32, %arg1: i32, %arg2: memref<1x36x256xbf16, #tpu.memory_space<vmem>>, %arg3: memref<1x8x36xbf16, #tpu.memory_space<vmem>>, %arg4: memref<1x8x1xf32, #tpu.memory_space<vmem>>, %arg5: memref<1x8x256xf32, #tpu.memory_space<vmem>>) attributes {dimension_semantics = [#tpu.dimension_semantics<parallel>, #tpu.dimension_semantics<parallel>], iteration_bounds = array<i64: 4, 2>, scalar_prefetch = 0 : i64, scratch_operands = 0 : i64, tpu.core_type = #tpu.core_type<tc>, window_params = [{transform_indices = @transform_0, window_bounds = array<i64: 1, 36, 256>}, {transform_indices = @transform_1, window_bounds = array<i64: 1, 8, 36>}, {transform_indices = @transform_2, window_bounds = array<i64: 1, 8, 1>}, {transform_indices = @transform_3, window_bounds = array<i64: 1, 8, 256>}]} {
    %c0 = arith.constant 0 : index
    %c0_0 = arith.constant 0 : index
    %c0_1 = arith.constant 0 : index
    %0 = vector.load %arg3[%c0, %c0_0, %c0_1] : memref<1x8x36xbf16, #tpu.memory_space<vmem>>, vector<1x8x36xbf16>
    %1 = vector.shape_cast %0 : vector<1x8x36xbf16> to vector<8x36xbf16>
    %c0_2 = arith.constant 0 : index
    %c0_3 = arith.constant 0 : index
    %c0_4 = arith.constant 0 : index
    %2 = vector.load %arg2[%c0_2, %c0_3, %c0_4] : memref<1x36x256xbf16, #tpu.memory_space<vmem>>, vector<1x36x256xbf16>
    %3 = vector.shape_cast %2 : vector<1x36x256xbf16> to vector<36x256xbf16>
    %cst = arith.constant dense<0.000000e+00> : vector<8x256xf32>
    %4 = tpu.matmul %1, %3, %cst {dimension_numbers = #tpu.dot_dimension_numbers<[1], [0], [0], [1], [0, 0, 1, 1], [], []>} : vector<8x36xbf16>, vector<36x256xbf16>, vector<8x256xf32> -> vector<8x256xf32>
    %c0_5 = arith.constant 0 : index
    %c0_6 = arith.constant 0 : index
    %c0_7 = arith.constant 0 : index
    %5 = vector.load %arg4[%c0_5, %c0_6, %c0_7] : memref<1x8x1xf32, #tpu.memory_space<vmem>>, vector<1x8x1xf32>
    %6 = vector.shape_cast %5 : vector<1x8x1xf32> to vector<8x1xf32>
    %7 = vector.broadcast %6 : vector<8x1xf32> to vector<8x256xf32>
    %8 = arith.addf %4, %7 : vector<8x256xf32>
    %c0_8 = arith.constant 0 : index
    %c0_9 = arith.constant 0 : index
    %c0_10 = arith.constant 0 : index
    %9 = vector.load %arg5[%c0_8, %c0_9, %c0_10] : memref<1x8x256xf32, #tpu.memory_space<vmem>>, vector<1x8x256xf32>
    %10 = vector.shape_cast %9 : vector<1x8x256xf32> to vector<8x256xf32>
    %11 = vector.shape_cast %8 : vector<8x256xf32> to vector<1x8x256xf32>
    tpu.vector_store %arg5[%c0_8, %c0_9, %c0_10], %11 {strides = array<i32>} : memref<1x8x256xf32, #tpu.memory_space<vmem>>, vector<1x8x256xf32>,
    return
  }
  func.func @transform_0(%arg0: i32, %arg1: i32) -> (i32, i32, i32) {
    %c0_i32 = arith.constant 0 : i32
    %c0_i32_0 = arith.constant 0 : i32
    return %arg0, %c0_i32, %arg1 : i32, i32, i32
  }
  func.func @transform_1(%arg0: i32, %arg1: i32) -> (i32, i32, i32) {
    %c0_i32 = arith.constant 0 : i32
    %c0_i32_0 = arith.constant 0 : i32
    %c0_i32_1 = arith.constant 0 : i32
    return %arg0, %c0_i32, %c0_i32_0 : i32, i32, i32
  }
  func.func @transform_2(%arg0: i32, %arg1: i32) -> (i32, i32, i32) {
    %c0_i32 = arith.constant 0 : i32
    %c0_i32_0 = arith.constant 0 : i32
    %c0_i32_1 = arith.constant 0 : i32
    return %arg0, %c0_i32, %c0_i32_0 : i32, i32, i32
  }
  func.func @transform_3(%arg0: i32, %arg1: i32) -> (i32, i32, i32) {
    %c0_i32 = arith.constant 0 : i32
    %c0_i32_0 = arith.constant 0 : i32
    return %arg0, %c0_i32, %arg1 : i32, i32, i32
  }
}

module attributes {stable_mosaic.version = 11 : i64} {
  func.func @_hinge_d_kernel(%arg0: memref<4x256xf32, #tpu.memory_space<vmem>>, %arg1: memref<4x256xf32, #tpu.memory_space<vmem>>, %arg2: memref<4x1xf32, #tpu.memory_space<vmem>>) attributes {dimension_semantics = [], scalar_prefetch = 0 : i64, scratch_operands = 0 : i64, tpu.core_type = #tpu.core_type<tc>} {
    %c0 = arith.constant 0 : index
    %c0_0 = arith.constant 0 : index
    %0 = vector.load %arg0[%c0, %c0_0] : memref<4x256xf32, #tpu.memory_space<vmem>>, vector<4x256xf32>
    %cst = arith.constant 1.000000e+00 : f32
    %1 = vector.broadcast %cst : f32 to vector<4x256xf32>
    %2 = arith.subf %1, %0 : vector<4x256xf32>
    %cst_1 = arith.constant 0.000000e+00 : f32
    %3 = vector.broadcast %cst_1 : f32 to vector<4x256xf32>
    %4 = arith.maximumf %2, %3 : vector<4x256xf32>
    %cst_2 = arith.constant dense<0.000000e+00> : vector<4xf32>
    %5 = vector.multi_reduction <add>, %4, %cst_2 [1] : vector<4x256xf32> to vector<4xf32>
    %6 = vector.shape_cast %5 : vector<4xf32> to vector<4x1xf32>
    %cst_3 = arith.constant 2.560000e+02 : f32
    %7 = vector.broadcast %cst_3 : f32 to vector<4x1xf32>
    %8 = arith.divf %6, %7 : vector<4x1xf32>
    %c0_4 = arith.constant 0 : index
    %c0_5 = arith.constant 0 : index
    %9 = vector.load %arg1[%c0_4, %c0_5] : memref<4x256xf32, #tpu.memory_space<vmem>>, vector<4x256xf32>
    %cst_6 = arith.constant 1.000000e+00 : f32
    %10 = vector.broadcast %cst_6 : f32 to vector<4x256xf32>
    %11 = arith.addf %10, %9 : vector<4x256xf32>
    %cst_7 = arith.constant 0.000000e+00 : f32
    %12 = vector.broadcast %cst_7 : f32 to vector<4x256xf32>
    %13 = arith.maximumf %11, %12 : vector<4x256xf32>
    %cst_8 = arith.constant dense<0.000000e+00> : vector<4xf32>
    %14 = vector.multi_reduction <add>, %13, %cst_8 [1] : vector<4x256xf32> to vector<4xf32>
    %15 = vector.shape_cast %14 : vector<4xf32> to vector<4x1xf32>
    %cst_9 = arith.constant 2.560000e+02 : f32
    %16 = vector.broadcast %cst_9 : f32 to vector<4x1xf32>
    %17 = arith.divf %15, %16 : vector<4x1xf32>
    %18 = arith.addf %8, %17 : vector<4x1xf32>
    %c0_10 = arith.constant 0 : index
    %c0_11 = arith.constant 0 : index
    %19 = vector.load %arg2[%c0_10, %c0_11] : memref<4x1xf32, #tpu.memory_space<vmem>>, vector<4x1xf32>
    tpu.vector_store %arg2[%c0_10, %c0_11], %18 {strides = array<i32>} : memref<4x1xf32, #tpu.memory_space<vmem>>, vector<4x1xf32>,
    return
  }
}

module attributes {stable_mosaic.version = 11 : i64} {
  func.func @_hinge_g_kernel(%arg0: memref<4x256xf32, #tpu.memory_space<vmem>>, %arg1: memref<4x1xf32, #tpu.memory_space<vmem>>) attributes {dimension_semantics = [], scalar_prefetch = 0 : i64, scratch_operands = 0 : i64, tpu.core_type = #tpu.core_type<tc>} {
    %c0 = arith.constant 0 : index
    %c0_0 = arith.constant 0 : index
    %0 = vector.load %arg0[%c0, %c0_0] : memref<4x256xf32, #tpu.memory_space<vmem>>, vector<4x256xf32>
    %cst = arith.constant dense<0.000000e+00> : vector<4xf32>
    %1 = vector.multi_reduction <add>, %0, %cst [1] : vector<4x256xf32> to vector<4xf32>
    %2 = vector.shape_cast %1 : vector<4xf32> to vector<4x1xf32>
    %cst_1 = arith.constant 2.560000e+02 : f32
    %3 = vector.broadcast %cst_1 : f32 to vector<4x1xf32>
    %4 = arith.divf %2, %3 : vector<4x1xf32>
    %cst_2 = arith.constant 0.000000e+00 : f32
    %5 = vector.broadcast %cst_2 : f32 to vector<4x1xf32>
    %6 = arith.subf %5, %4 : vector<4x1xf32>
    %c0_3 = arith.constant 0 : index
    %c0_4 = arith.constant 0 : index
    %7 = vector.load %arg1[%c0_3, %c0_4] : memref<4x1xf32, #tpu.memory_space<vmem>>, vector<4x1xf32>
    tpu.vector_store %arg1[%c0_3, %c0_4], %6 {strides = array<i32>} : memref<4x1xf32, #tpu.memory_space<vmem>>, vector<4x1xf32>,
    return
  }
}

module attributes {stable_mosaic.version = 11 : i64} {
  func.func @_mae_kernel(%arg0: memref<4x1024xf32, #tpu.memory_space<vmem>>, %arg1: memref<4x1024xf32, #tpu.memory_space<vmem>>, %arg2: memref<4x1xf32, #tpu.memory_space<vmem>>) attributes {dimension_semantics = [], scalar_prefetch = 0 : i64, scratch_operands = 0 : i64, tpu.core_type = #tpu.core_type<tc>} {
    %c0 = arith.constant 0 : index
    %c0_0 = arith.constant 0 : index
    %0 = vector.load %arg0[%c0, %c0_0] : memref<4x1024xf32, #tpu.memory_space<vmem>>, vector<4x1024xf32>
    %c0_1 = arith.constant 0 : index
    %c0_2 = arith.constant 0 : index
    %1 = vector.load %arg1[%c0_1, %c0_2] : memref<4x1024xf32, #tpu.memory_space<vmem>>, vector<4x1024xf32>
    %2 = arith.subf %0, %1 : vector<4x1024xf32>
    %3 = math.absf %2 : vector<4x1024xf32>
    %cst = arith.constant dense<0.000000e+00> : vector<4xf32>
    %4 = vector.multi_reduction <add>, %3, %cst [1] : vector<4x1024xf32> to vector<4xf32>
    %5 = vector.shape_cast %4 : vector<4xf32> to vector<4x1xf32>
    %cst_3 = arith.constant 1.024000e+03 : f32
    %6 = vector.broadcast %cst_3 : f32 to vector<4x1xf32>
    %7 = arith.divf %5, %6 : vector<4x1xf32>
    %c0_4 = arith.constant 0 : index
    %c0_5 = arith.constant 0 : index
    %8 = vector.load %arg2[%c0_4, %c0_5] : memref<4x1xf32, #tpu.memory_space<vmem>>, vector<4x1xf32>
    tpu.vector_store %arg2[%c0_4, %c0_5], %7 {strides = array<i32>} : memref<4x1xf32, #tpu.memory_space<vmem>>, vector<4x1xf32>,
    return
  }
}

</mosaic_0001>

<bundles_post_ra>
// kernel: squeeze.22
= control target key start
LH: loop header
LB: loop body
LE: loop exit
PB: predicated region body
PF: predicated region fallthrough
CT: control target
= control target key end

     0   :  { %vm67_vm0 = vcmask 130048   ;;  %vm143_vm1 = vcmask 1047556   ;;  %s1002_s10 = smov 112   ;;  %s1003_s11 = smov 80   ;;  %s1188_s0 = inlined_call_operand.vmem [shape: bf16[1,8,512], index: 0, kind: input, shape index: {}]   ;;  %s1189_s1 = inlined_call_operand.vmem [shape: bf16[8,2,16,16], index: 1, kind: output, shape index: {}]  }
   0x1   :  { %v908_v0 = vld [vmem:[%s1188_s0 + $0x8] sm:$0xff]   ;;  %v825_v1 = vld [vmem:[%s1188_s0] sm:$0xff]   ;;  %s1001_s0 = smov 96   ;;  %s1004_s12 = smov 64  }
   0x2   :  { %v822_v2 = vunpack.c.l.bf16 %v908_v0  ;;  %v823_v3 = vunpack.c.h.bf16 %v908_v0  ;;  %v826_v4 = vunpack.c.l.bf16 %v825_v1  ;;  %v827_v5 = vunpack.c.h.bf16 %v825_v1  ;;  %s1005_s13 = smov 48   ;;  %s1006_s14 = smov 32  }
   0x3   :  { %s1007_s15 = smov 16  }
   0x4   :  { %21 = vst [vmem:[#allocation1 + $0x18] sm:$0xff] %v823_v3  ;;  %37 = vst [vmem:[#allocation1 + $0x10] sm:$0xff] %v822_v2 }
   0x5   :  { %52 = vst [vmem:[#allocation1 + $0x8] sm:$0xff] %v827_v5  ;;  %65 = vst [vmem:[#allocation1] sm:$0xff] %v826_v4 }
   0x6   :  { %76 = vst.msk [vmem:[#allocation0 + $0x7c] sm:$0x10] %vm67_vm0, %v826_v4   ;;  %78 = vst.msk [vmem:[#allocation0 + $0x9b] sm:$0x20] %vm67_vm0, %v826_v4  }
   0x7   :  { %80 = vst.msk [vmem:[#allocation0 + $0xba] sm:$0x40] %vm67_vm0, %v826_v4   ;;  %82 = vst.msk [vmem:[#allocation0 + $0xd9] sm:$0x80] %vm67_vm0, %v826_v4  }
   0x8   :  { %95 = vst.msk [vmem:[#allocation0 + $0x84] sm:$0x10] %vm67_vm0, %v827_v5   ;;  %97 = vst.msk [vmem:[#allocation0 + $0xa3] sm:$0x20] %vm67_vm0, %v827_v5  }
   0x9   :  { %99 = vst.msk [vmem:[#allocation0 + $0xc2] sm:$0x40] %vm67_vm0, %v827_v5   ;;  %101 = vst.msk [vmem:[#allocation0 + $0xe1] sm:$0x80] %vm67_vm0, %v827_v5  }
   0xa   :  { %133 = vst.msk [vmem:[#allocation0 + $0x94] sm:$0x10] %vm67_vm0, %v823_v3   ;;  %135 = vst.msk [vmem:[#allocation0 + $0xb3] sm:$0x20] %vm67_vm0, %v823_v3  }
   0xb   :  { %137 = vst.msk [vmem:[#allocation0 + $0xd2] sm:$0x40] %vm67_vm0, %v823_v3   ;;  %139 = vst.msk [vmem:[#allocation0 + $0xf1] sm:$0x80] %vm67_vm0, %v823_v3  }
   0xc   :  { %114 = vst.msk [vmem:[#allocation0 + $0x8c] sm:$0x10] %vm67_vm0, %v822_v2   ;;  %116 = vst.msk [vmem:[#allocation0 + $0xab] sm:$0x20] %vm67_vm0, %v822_v2  }
   0xd   :  { %118 = vst.msk [vmem:[#allocation0 + $0xca] sm:$0x40] %vm67_vm0, %v822_v2   ;;  %120 = vst.msk [vmem:[#allocation0 + $0xe9] sm:$0x80] %vm67_vm0, %v822_v2  }
   0xe   :  { %68 = vst.msk [vmem:[#allocation0] sm:$0x1] %vm67_vm0, %v826_v4   ;;  %70 = vst.msk [vmem:[#allocation0 + $0x1f] sm:$0x2] %vm67_vm0, %v826_v4  }
   0xf   :  { %72 = vst.msk [vmem:[#allocation0 + $0x3e] sm:$0x4] %vm67_vm0, %v826_v4   ;;  %74 = vst.msk [vmem:[#allocation0 + $0x5d] sm:$0x8] %vm67_vm0, %v826_v4  }
  0x10   :  { %87 = vst.msk [vmem:[#allocation0 + $0x8] sm:$0x1] %vm67_vm0, %v827_v5   ;;  %89 = vst.msk [vmem:[#allocation0 + $0x27] sm:$0x2] %vm67_vm0, %v827_v5  }
  0x11   :  { %91 = vst.msk [vmem:[#allocation0 + $0x46] sm:$0x4] %vm67_vm0, %v827_v5   ;;  %93 = vst.msk [vmem:[#allocation0 + $0x65] sm:$0x8] %vm67_vm0, %v827_v5  }
  0x12   :  { %106 = vst.msk [vmem:[#allocation0 + $0x10] sm:$0x1] %vm67_vm0, %v822_v2   ;;  %108 = vst.msk [vmem:[#allocation0 + $0x2f] sm:$0x2] %vm67_vm0, %v822_v2  }
  0x13   :  { %110 = vst.msk [vmem:[#allocation0 + $0x4e] sm:$0x4] %vm67_vm0, %v822_v2   ;;  %112 = vst.msk [vmem:[#allocation0 + $0x6d] sm:$0x8] %vm67_vm0, %v822_v2  }
  0x14   :  { %125 = vst.msk [vmem:[#allocation0 + $0x18] sm:$0x1] %vm67_vm0, %v823_v3   ;;  %127 = vst.msk [vmem:[#allocation0 + $0x37] sm:$0x2] %vm67_vm0, %v823_v3  }
  0x15   :  { %129 = vst.msk [vmem:[#allocation0 + $0x56] sm:$0x4] %vm67_vm0, %v823_v3   ;;  %131 = vst.msk [vmem:[#allocation0 + $0x75] sm:$0x8] %vm67_vm0, %v823_v3  }
  0x16   :  { %v191_v6 = vld [vmem:[#allocation1] ss:$8 sm:$0xf]   ;;  %v193_v7 = vld [vmem:[#allocation1 - $0x1f] ss:$8 sm:$0xf0]  }
  0x17   :  { %v195_v8 = vsel %vm143_vm1, %v193_v7, %v191_v6  ;;  %v204_v9 = vld [vmem:[#allocation1 + $0x2] ss:$8 sm:$0xf]   ;;  %v206_v10 = vld [vmem:[#allocation1 - $0x1d] ss:$8 sm:$0xf0]  }
  0x18   :  { %v208_v11 = vsel %vm143_vm1, %v206_v10, %v204_v9  ;;  %v140_v12 = vld [vmem:[#allocation1] ss:$8 sm:$0xf]   ;;  %v142_v13 = vld [vmem:[#allocation1 - $0x1f] ss:$8 sm:$0xf0]  }
  0x19   :  { %v941_v14 = vpack.i.bf16 %v208_v11, %v195_v8  ;;  %v144_v15 = vsel %vm143_vm1, %v142_v13, %v140_v12  ;;  %v153_v16 = vld [vmem:[#allocation1 + $0x2] ss:$8 sm:$0xf]   ;;  %v155_v17 = vld [vmem:[#allocation1 - $0x1d] ss:$8 sm:$0xf0]  }
  0x1a   :  { %v157_v18 = vsel %vm143_vm1, %v155_v17, %v153_v16  ;;  %v217_v19 = vld [vmem:[#allocation1 + $0x4] ss:$8 sm:$0xf]   ;;  %v219_v20 = vld [vmem:[#allocation1 - $0x1b] ss:$8 sm:$0xf0]  }
  0x1b   :  { %942 = vrot.lane.b32.xlu1 %v941_v14, %s1001_s0  ;;  %v931_v21 = vpack.i.bf16 %v157_v18, %v144_v15  ;;  %v221_v22 = vsel %vm143_vm1, %v219_v20, %v217_v19  ;;  %v230_v23 = vld [vmem:[#allocation1 + $0x6] ss:$8 sm:$0xf]   ;;  %v232_v24 = vld [vmem:[#allocation1 - $0x19] ss:$8 sm:$0xf0]  }
  0x1c   :  { %v234_v25 = vsel %vm143_vm1, %v232_v24, %v230_v23  ;;  %v166_v26 = vld [vmem:[#allocation1 + $0x4] ss:$8 sm:$0xf]   ;;  %v168_v27 = vld [vmem:[#allocation1 - $0x1b] ss:$8 sm:$0xf0]  }
  0x1d   :  { %932 = vrot.lane.b32.xlu0 %v931_v21, %s1002_s10  ;;  %v946_v28 = vpack.i.bf16 %v234_v25, %v221_v22  ;;  %v170_v29 = vsel %vm143_vm1, %v168_v27, %v166_v26  ;;  %v179_v30 = vld [vmem:[#allocation1 + $0x6] ss:$8 sm:$0xf]   ;;  %v181_v31 = vld [vmem:[#allocation1 - $0x19] ss:$8 sm:$0xf0]  }
  0x1e   :  { %v183_v32 = vsel %vm143_vm1, %v181_v31, %v179_v30  ;;  %v268_v33 = vld [vmem:[#allocation1 + $0x4] ss:$8 sm:$0xf]   ;;  %v270_v34 = vld [vmem:[#allocation1 - $0x1b] ss:$8 sm:$0xf0]  }
  0x1f   :  { %947 = vrot.lane.b32.xlu1 %v946_v28, %s1001_s0  ;;  %v936_v35 = vpack.i.bf16 %v183_v32, %v170_v29  ;;  %v272_v36 = vsel %vm143_vm1, %v270_v34, %v268_v33  ;;  %v281_v37 = vld [vmem:[#allocation1 + $0x6] ss:$8 sm:$0xf]   ;;  %v283_v38 = vld [vmem:[#allocation1 - $0x19] ss:$8 sm:$0xf0]  }
  0x20   :  { %v285_v39 = vsel %vm143_vm1, %v283_v38, %v281_v37  ;;  %v242_v40 = vld [vmem:[#allocation1] ss:$8 sm:$0xf]   ;;  %v244_v41 = vld [vmem:[#allocation1 - $0x1f] ss:$8 sm:$0xf0]  }
  0x21   :  { %937 = vrot.lane.b32.xlu0 %v936_v35, %s1002_s10  ;;  %v956_v42 = vpack.i.bf16 %v285_v39, %v272_v36  ;;  %v246_v43 = vsel %vm143_vm1, %v244_v41, %v242_v40  ;;  %v255_v44 = vld [vmem:[#allocation1 + $0x2] ss:$8 sm:$0xf]   ;;  %v257_v45 = vld [vmem:[#allocation1 - $0x1d] ss:$8 sm:$0xf0]  }
  0x22   :  { %v259_v46 = vsel %vm143_vm1, %v257_v45, %v255_v44  ;;  %v319_v47 = vld [vmem:[#allocation1 + $0x4] ss:$8 sm:$0xf]   ;;  %v321_v48 = vld [vmem:[#allocation1 - $0x1b] ss:$8 sm:$0xf0]  }
  0x23   :  { %957 = vrot.lane.b32.xlu1 %v956_v42, %s1003_s11  ;;  %v951_v49 = vpack.i.bf16 %v259_v46, %v246_v43  ;;  %v323_v50 = vsel %vm143_vm1, %v321_v48, %v319_v47  ;;  %v332_v51 = vld [vmem:[#allocation1 + $0x6] ss:$8 sm:$0xf]   ;;  %v334_v52 = vld [vmem:[#allocation1 - $0x19] ss:$8 sm:$0xf0]  }
  0x24   :  { %v336_v53 = vsel %vm143_vm1, %v334_v52, %v332_v51  ;;  %v293_v54 = vld [vmem:[#allocation1] ss:$8 sm:$0xf]   ;;  %v295_v55 = vld [vmem:[#allocation1 - $0x1f] ss:$8 sm:$0xf0]  }
  0x25   :  { %952 = vrot.lane.b32.xlu0 %v951_v49, %s1003_s11  ;;  %v966_v56 = vpack.i.bf16 %v336_v53, %v323_v50  ;;  %v297_v57 = vsel %vm143_vm1, %v295_v55, %v293_v54  ;;  %v306_v58 = vld [vmem:[#allocation1 + $0x2] ss:$8 sm:$0xf]   ;;  %v308_v59 = vld [vmem:[#allocation1 - $0x1d] ss:$8 sm:$0xf0]  }
  0x26   :  { %v310_v60 = vsel %vm143_vm1, %v308_v59, %v306_v58  ;;  %v370_v61 = vld [vmem:[#allocation1 + $0x4] ss:$8 sm:$0xf]   ;;  %v372_v62 = vld [vmem:[#allocation1 - $0x1b] ss:$8 sm:$0xf0]  }
  0x27   :  { %967 = vrot.lane.b32.xlu1 %v966_v56, %s1004_s12  ;;  %v961_v63 = vpack.i.bf16 %v310_v60, %v297_v57  ;;  %v374_v0 = vsel %vm143_vm1, %v372_v62, %v370_v61  ;;  %v383_v1 = vld [vmem:[#allocation1 + $0x6] ss:$8 sm:$0xf]   ;;  %v385_v2 = vld [vmem:[#allocation1 - $0x19] ss:$8 sm:$0xf0]  }
  0x28   :  { %v387_v3 = vsel %vm143_vm1, %v385_v2, %v383_v1  ;;  %v344_v4 = vld [vmem:[#allocation1] ss:$8 sm:$0xf]   ;;  %v346_v5 = vld [vmem:[#allocation1 - $0x1f] ss:$8 sm:$0xf0]  }
  0x29   :  { %962 = vrot.lane.b32.xlu0 %v961_v63, %s1004_s12  ;;  %v976_v6 = vpack.i.bf16 %v387_v3, %v374_v0  ;;  %v348_v7 = vsel %vm143_vm1, %v346_v5, %v344_v4  ;;  %v357_v8 = vld [vmem:[#allocation1 + $0x2] ss:$8 sm:$0xf]   ;;  %v359_v9 = vld [vmem:[#allocation1 - $0x1d] ss:$8 sm:$0xf0]  }
  0x2a   :  { %v361_v10 = vsel %vm143_vm1, %v359_v9, %v357_v8  ;;  %v421_v11 = vld [vmem:[#allocation1 + $0x4] ss:$8 sm:$0xf]   ;;  %v423_v12 = vld [vmem:[#allocation1 - $0x1b] ss:$8 sm:$0xf0]  }
  0x2b   :  { %977 = vrot.lane.b32.xlu1 %v976_v6, %s1005_s13  ;;  %v971_v13 = vpack.i.bf16 %v361_v10, %v348_v7  ;;  %v425_v14 = vsel %vm143_vm1, %v423_v12, %v421_v11  ;;  %v434_v15 = vld [vmem:[#allocation1 + $0x6] ss:$8 sm:$0xf]   ;;  %v436_v16 = vld [vmem:[#allocation1 - $0x19] ss:$8 sm:$0xf0]  }
  0x2c   :  { %v438_v17 = vsel %vm143_vm1, %v436_v16, %v434_v15  ;;  %v395_v18 = vld [vmem:[#allocation1] ss:$8 sm:$0xf]   ;;  %v397_v19 = vld [vmem:[#allocation1 - $0x1f] ss:$8 sm:$0xf0]  }
  0x2d   :  { %972 = vrot.lane.b32.xlu0 %v971_v13, %s1005_s13  ;;  %v986_v20 = vpack.i.bf16 %v438_v17, %v425_v14  ;;  %v399_v21 = vsel %vm143_vm1, %v397_v19, %v395_v18  ;;  %v408_v22 = vld [vmem:[#allocation1 + $0x2] ss:$8 sm:$0xf]   ;;  %v410_v23 = vld [vmem:[#allocation1 - $0x1d] ss:$8 sm:$0xf0]  }
  0x2e   :  { %v412_v24 = vsel %vm143_vm1, %v410_v23, %v408_v22  ;;  %v472_v25 = vld [vmem:[#allocation1 + $0x4] ss:$8 sm:$0xf]   ;;  %v474_v26 = vld [vmem:[#allocation1 - $0x1b] ss:$8 sm:$0xf0]  }
  0x2f   :  { %987 = vrot.lane.b32.xlu1 %v986_v20, %s1006_s14  ;;  %v981_v27 = vpack.i.bf16 %v412_v24, %v399_v21  ;;  %v476_v28 = vsel %vm143_vm1, %v474_v26, %v472_v25  ;;  %v485_v29 = vld [vmem:[#allocation1 + $0x6] ss:$8 sm:$0xf]   ;;  %v487_v30 = vld [vmem:[#allocation1 - $0x19] ss:$8 sm:$0xf0]  }
  0x30   :  { %v489_v31 = vsel %vm143_vm1, %v487_v30, %v485_v29  ;;  %v446_v32 = vld [vmem:[#allocation1] ss:$8 sm:$0xf]   ;;  %v448_v33 = vld [vmem:[#allocation1 - $0x1f] ss:$8 sm:$0xf0]  }
  0x31   :  { %982 = vrot.lane.b32.xlu0 %v981_v27, %s1006_s14  ;;  %v996_v34 = vpack.i.bf16 %v489_v31, %v476_v28  ;;  %v450_v35 = vsel %vm143_vm1, %v448_v33, %v446_v32  ;;  %v459_v36 = vld [vmem:[#allocation1 + $0x2] ss:$8 sm:$0xf]   ;;  %v461_v37 = vld [vmem:[#allocation1 - $0x1d] ss:$8 sm:$0xf0]  }
  0x32   :  { %v463_v38 = vsel %vm143_vm1, %v461_v37, %v459_v36 }
  0x33   :  { %997 = vrot.lane.b32.xlu1 %v996_v34, %s1007_s15  ;;  %v991_v39 = vpack.i.bf16 %v463_v38, %v450_v35 }
  0x35   :  { %992 = vrot.lane.b32.xlu0 %v991_v39, %s1007_s15 }
  0x8d   :  { %v943_v40 = vpop.permute.xlu1 %942 }
  0x8e   :  { %v945_v41 = vunpack.i.h.bf16 %v943_v40  ;;  %v944_v42 = vunpack.i.l.bf16 %v943_v40 }
  0x8f   :  { %v933_v43 = vpop.permute.xlu0 %932 }
  0x90   :  { %213 = vst.msk [vmem:[#allocation0 + $0x42] ss:$8 sm:$0xf] %vm67_vm0, %v945_v41   ;;  %215 = vst.msk [vmem:[#allocation0 + $0x42] ss:$8 sm:$0xf0] %vm67_vm0, %v945_v41   ;;  %v935_v44 = vunpack.i.h.bf16 %v933_v43  ;;  %v934_v45 = vunpack.i.l.bf16 %v933_v43 }
  0x91   :  { %200 = vst.msk [vmem:[#allocation0 + $0x2] ss:$8 sm:$0xf] %vm67_vm0, %v944_v42   ;;  %202 = vst.msk [vmem:[#allocation0 + $0x2] ss:$8 sm:$0xf0] %vm67_vm0, %v944_v42   ;;  %v948_v46 = vpop.permute.xlu1 %947 }
  0x92   :  { %162 = vst.msk [vmem:[#allocation0 + $0x41] ss:$8 sm:$0xf] %vm67_vm0, %v935_v44   ;;  %164 = vst.msk [vmem:[#allocation0 + $0x41] ss:$8 sm:$0xf0] %vm67_vm0, %v935_v44   ;;  %v950_v47 = vunpack.i.h.bf16 %v948_v46  ;;  %v949_v48 = vunpack.i.l.bf16 %v948_v46 }
  0x93   :  { %149 = vst.msk [vmem:[#allocation0 + $0x1] ss:$8 sm:$0xf] %vm67_vm0, %v934_v45   ;;  %151 = vst.msk [vmem:[#allocation0 + $0x1] ss:$8 sm:$0xf0] %vm67_vm0, %v934_v45   ;;  %v938_v49 = vpop.permute.xlu0 %937 }
  0x94   :  { %239 = vst.msk [vmem:[#allocation0 + $0xc2] ss:$8 sm:$0xf] %vm67_vm0, %v950_v47   ;;  %241 = vst.msk [vmem:[#allocation0 + $0xc2] ss:$8 sm:$0xf0] %vm67_vm0, %v950_v47   ;;  %v940_v50 = vunpack.i.h.bf16 %v938_v49  ;;  %v939_v51 = vunpack.i.l.bf16 %v938_v49 }
  0x95   :  { %226 = vst.msk [vmem:[#allocation0 + $0x82] ss:$8 sm:$0xf] %vm67_vm0, %v949_v48   ;;  %228 = vst.msk [vmem:[#allocation0 + $0x82] ss:$8 sm:$0xf0] %vm67_vm0, %v949_v48   ;;  %v958_v52 = vpop.permute.xlu1 %957 }
  0x96   :  { %188 = vst.msk [vmem:[#allocation0 + $0xc1] ss:$8 sm:$0xf] %vm67_vm0, %v940_v50   ;;  %190 = vst.msk [vmem:[#allocation0 + $0xc1] ss:$8 sm:$0xf0] %vm67_vm0, %v940_v50   ;;  %v960_v53 = vunpack.i.h.bf16 %v958_v52  ;;  %v959_v54 = vunpack.i.l.bf16 %v958_v52 }
  0x97   :  { %175 = vst.msk [vmem:[#allocation0 + $0x81] ss:$8 sm:$0xf] %vm67_vm0, %v939_v51   ;;  %177 = vst.msk [vmem:[#allocation0 + $0x81] ss:$8 sm:$0xf0] %vm67_vm0, %v939_v51   ;;  %v953_v55 = vpop.permute.xlu0 %952 }
  0x98   :  { %290 = vst.msk [vmem:[#allocation0 + $0xc3] ss:$8 sm:$0xf] %vm67_vm0, %v960_v53   ;;  %292 = vst.msk [vmem:[#allocation0 + $0xc3] ss:$8 sm:$0xf0] %vm67_vm0, %v960_v53   ;;  %v955_v56 = vunpack.i.h.bf16 %v953_v55  ;;  %v954_v57 = vunpack.i.l.bf16 %v953_v55 }
  0x99   :  { %277 = vst.msk [vmem:[#allocation0 + $0x83] ss:$8 sm:$0xf] %vm67_vm0, %v959_v54   ;;  %279 = vst.msk [vmem:[#allocation0 + $0x83] ss:$8 sm:$0xf0] %vm67_vm0, %v959_v54   ;;  %v968_v58 = vpop.permute.xlu1 %967 }
  0x9a   :  { %264 = vst.msk [vmem:[#allocation0 + $0x43] ss:$8 sm:$0xf] %vm67_vm0, %v955_v56   ;;  %266 = vst.msk [vmem:[#allocation0 + $0x43] ss:$8 sm:$0xf0] %vm67_vm0, %v955_v56   ;;  %v970_v59 = vunpack.i.h.bf16 %v968_v58  ;;  %v969_v60 = vunpack.i.l.bf16 %v968_v58 }
  0x9b   :  { %251 = vst.msk [vmem:[#allocation0 + $0x3] ss:$8 sm:$0xf] %vm67_vm0, %v954_v57   ;;  %253 = vst.msk [vmem:[#allocation0 + $0x3] ss:$8 sm:$0xf0] %vm67_vm0, %v954_v57   ;;  %v963_v61 = vpop.permute.xlu0 %962 }
  0x9c   :  { %341 = vst.msk [vmem:[#allocation0 + $0xc4] ss:$8 sm:$0xf] %vm67_vm0, %v970_v59   ;;  %343 = vst.msk [vmem:[#allocation0 + $0xc4] ss:$8 sm:$0xf0] %vm67_vm0, %v970_v59   ;;  %v965_v62 = vunpack.i.h.bf16 %v963_v61  ;;  %v964_v63 = vunpack.i.l.bf16 %v963_v61 }
  0x9d   :  { %328 = vst.msk [vmem:[#allocation0 + $0x84] ss:$8 sm:$0xf] %vm67_vm0, %v969_v60   ;;  %330 = vst.msk [vmem:[#allocation0 + $0x84] ss:$8 sm:$0xf0] %vm67_vm0, %v969_v60   ;;  %v978_v0 = vpop.permute.xlu1 %977 }
  0x9e   :  { %315 = vst.msk [vmem:[#allocation0 + $0x44] ss:$8 sm:$0xf] %vm67_vm0, %v965_v62   ;;  %317 = vst.msk [vmem:[#allocation0 + $0x44] ss:$8 sm:$0xf0] %vm67_vm0, %v965_v62   ;;  %v980_v1 = vunpack.i.h.bf16 %v978_v0  ;;  %v979_v2 = vunpack.i.l.bf16 %v978_v0 }
  0x9f   :  { %302 = vst.msk [vmem:[#allocation0 + $0x4] ss:$8 sm:$0xf] %vm67_vm0, %v964_v63   ;;  %304 = vst.msk [vmem:[#allocation0 + $0x4] ss:$8 sm:$0xf0] %vm67_vm0, %v964_v63   ;;  %v973_v3 = vpop.permute.xlu0 %972 }
  0xa0   :  { %392 = vst.msk [vmem:[#allocation0 + $0xc5] ss:$8 sm:$0xf] %vm67_vm0, %v980_v1   ;;  %394 = vst.msk [vmem:[#allocation0 + $0xc5] ss:$8 sm:$0xf0] %vm67_vm0, %v980_v1   ;;  %v975_v4 = vunpack.i.h.bf16 %v973_v3  ;;  %v974_v5 = vunpack.i.l.bf16 %v973_v3 }
  0xa1   :  { %379 = vst.msk [vmem:[#allocation0 + $0x85] ss:$8 sm:$0xf] %vm67_vm0, %v979_v2   ;;  %381 = vst.msk [vmem:[#allocation0 + $0x85] ss:$8 sm:$0xf0] %vm67_vm0, %v979_v2   ;;  %v988_v6 = vpop.permute.xlu1 %987 }
  0xa2   :  { %366 = vst.msk [vmem:[#allocation0 + $0x45] ss:$8 sm:$0xf] %vm67_vm0, %v975_v4   ;;  %368 = vst.msk [vmem:[#allocation0 + $0x45] ss:$8 sm:$0xf0] %vm67_vm0, %v975_v4   ;;  %v990_v7 = vunpack.i.h.bf16 %v988_v6  ;;  %v989_v8 = vunpack.i.l.bf16 %v988_v6 }
  0xa3   :  { %353 = vst.msk [vmem:[#allocation0 + $0x5] ss:$8 sm:$0xf] %vm67_vm0, %v974_v5   ;;  %355 = vst.msk [vmem:[#allocation0 + $0x5] ss:$8 sm:$0xf0] %vm67_vm0, %v974_v5   ;;  %v983_v9 = vpop.permute.xlu0 %982 }
  0xa4   :  { %443 = vst.msk [vmem:[#allocation0 + $0xc6] ss:$8 sm:$0xf] %vm67_vm0, %v990_v7   ;;  %445 = vst.msk [vmem:[#allocation0 + $0xc6] ss:$8 sm:$0xf0] %vm67_vm0, %v990_v7   ;;  %v985_v10 = vunpack.i.h.bf16 %v983_v9  ;;  %v984_v11 = vunpack.i.l.bf16 %v983_v9 }
  0xa5   :  { %430 = vst.msk [vmem:[#allocation0 + $0x86] ss:$8 sm:$0xf] %vm67_vm0, %v989_v8   ;;  %432 = vst.msk [vmem:[#allocation0 + $0x86] ss:$8 sm:$0xf0] %vm67_vm0, %v989_v8   ;;  %v998_v12 = vpop.permute.xlu1 %997 }
  0xa6   :  { %417 = vst.msk [vmem:[#allocation0 + $0x46] ss:$8 sm:$0xf] %vm67_vm0, %v985_v10   ;;  %419 = vst.msk [vmem:[#allocation0 + $0x46] ss:$8 sm:$0xf0] %vm67_vm0, %v985_v10   ;;  %v1000_v13 = vunpack.i.h.bf16 %v998_v12  ;;  %v999_v14 = vunpack.i.l.bf16 %v998_v12 }
  0xa7   :  { %404 = vst.msk [vmem:[#allocation0 + $0x6] ss:$8 sm:$0xf] %vm67_vm0, %v984_v11   ;;  %406 = vst.msk [vmem:[#allocation0 + $0x6] ss:$8 sm:$0xf0] %vm67_vm0, %v984_v11   ;;  %v993_v15 = vpop.permute.xlu0 %992 }
  0xa8   :  { %494 = vst.msk [vmem:[#allocation0 + $0xc7] ss:$8 sm:$0xf] %vm67_vm0, %v1000_v13   ;;  %496 = vst.msk [vmem:[#allocation0 + $0xc7] ss:$8 sm:$0xf0] %vm67_vm0, %v1000_v13   ;;  %v995_v16 = vunpack.i.h.bf16 %v993_v15  ;;  %v994_v17 = vunpack.i.l.bf16 %v993_v15 }
  0xa9   :  { %481 = vst.msk [vmem:[#allocation0 + $0x87] ss:$8 sm:$0xf] %vm67_vm0, %v999_v14   ;;  %483 = vst.msk [vmem:[#allocation0 + $0x87] ss:$8 sm:$0xf0] %vm67_vm0, %v999_v14  }
  0xaa   :  { %468 = vst.msk [vmem:[#allocation0 + $0x47] ss:$8 sm:$0xf] %vm67_vm0, %v995_v16   ;;  %470 = vst.msk [vmem:[#allocation0 + $0x47] ss:$8 sm:$0xf0] %vm67_vm0, %v995_v16  }
  0xab   :  { %455 = vst.msk [vmem:[#allocation0 + $0x7] ss:$8 sm:$0xf] %vm67_vm0, %v994_v17   ;;  %457 = vst.msk [vmem:[#allocation0 + $0x7] ss:$8 sm:$0xf0] %vm67_vm0, %v994_v17  }
  0xaf   :  { %v691_v29 = vld [vmem:[#allocation0 + $0xc0] sm:$0xff]  ;;  %v699_v31 = vld [vmem:[#allocation0 + $0xc8] sm:$0xff]  ;;  %v707_v32 = vld [vmem:[#allocation0 + $0xd0] sm:$0xff] }
  0xb0   :  { %v627_v18 = vld [vmem:[#allocation0 + $0x80] sm:$0xff]  ;;  %v635_v19 = vld [vmem:[#allocation0 + $0x88] sm:$0xff]  ;;  %v643_v20 = vld [vmem:[#allocation0 + $0x90] sm:$0xff]  ;;  %v891_v34 = vpack.c.bf16 %v699_v31, %v691_v29 }
  0xb1   :  { %v871_v21 = vpack.c.bf16 %v635_v19, %v627_v18  ;;  %v651_v22 = vld [vmem:[#allocation0 + $0x98] sm:$0xff]  ;;  %v659_v23 = vld [vmem:[#allocation0 + $0xa0] sm:$0xff]  ;;  %v667_v24 = vld [vmem:[#allocation0 + $0xa8] sm:$0xff] }
  0xb2   :  { %v876_v25 = vpack.c.bf16 %v651_v22, %v643_v20  ;;  %v881_v26 = vpack.c.bf16 %v667_v24, %v659_v23  ;;  %v675_v27 = vld [vmem:[#allocation0 + $0xb0] sm:$0xff]  ;;  %v683_v28 = vld [vmem:[#allocation0 + $0xb8] sm:$0xff]  ;;  %v723_v36 = vld [vmem:[#allocation0 + $0xe0] sm:$0xff]  ;;  %920 = vst [vmem:[%s1189_s1 + $0x60] sm:$0xff] %v891_v34  }
  0xb3   :  { %916 = vst [vmem:[%s1189_s1 + $0x40] sm:$0xff] %v871_v21   ;;  %v886_v30 = vpack.c.bf16 %v683_v28, %v675_v27  ;;  %v715_v33 = vld [vmem:[#allocation0 + $0xd8] sm:$0xff]  ;;  %v731_v37 = vld [vmem:[#allocation0 + $0xe8] sm:$0xff]  ;;  %v739_v38 = vld [vmem:[#allocation0 + $0xf0] sm:$0xff] }
  0xb4   :  { %917 = vst [vmem:[%s1189_s1 + $0x48] sm:$0xff] %v876_v25   ;;  %918 = vst [vmem:[%s1189_s1 + $0x50] sm:$0xff] %v881_v26   ;;  %v896_v35 = vpack.c.bf16 %v715_v33, %v707_v32  ;;  %v901_v39 = vpack.c.bf16 %v731_v37, %v723_v36  ;;  %v747_v40 = vld [vmem:[#allocation0 + $0xf8] sm:$0xff]  ;;  %v502_v41 = vld [vmem:[#allocation0] sm:$0xff] }
  0xb5   :  { %919 = vst [vmem:[%s1189_s1 + $0x58] sm:$0xff] %v886_v30   ;;  %v508_v42 = vld [vmem:[#allocation0 + $0x8] sm:$0xff]  ;;  %v906_v43 = vpack.c.bf16 %v747_v40, %v739_v38  ;;  %v515_v45 = vld [vmem:[#allocation0 + $0x10] sm:$0xff]  ;;  %v523_v46 = vld [vmem:[#allocation0 + $0x18] sm:$0xff] }
  0xb6   :  { %921 = vst [vmem:[%s1189_s1 + $0x68] sm:$0xff] %v896_v35   ;;  %v831_v44 = vpack.c.bf16 %v508_v42, %v502_v41  ;;  %v531_v47 = vld [vmem:[#allocation0 + $0x20] sm:$0xff]  ;;  %922 = vst [vmem:[%s1189_s1 + $0x70] sm:$0xff] %v901_v39   ;;  %v836_v48 = vpack.c.bf16 %v523_v46, %v515_v45  ;;  %v539_v49 = vld [vmem:[#allocation0 + $0x28] sm:$0xff] }
  0xb7   :  { %v547_v50 = vld [vmem:[#allocation0 + $0x30] sm:$0xff]  ;;  %v555_v51 = vld [vmem:[#allocation0 + $0x38] sm:$0xff]  ;;  %923 = vst [vmem:[%s1189_s1 + $0x78] sm:$0xff] %v906_v43   ;;  %v841_v52 = vpack.c.bf16 %v539_v49, %v531_v47  ;;  %v563_v54 = vld [vmem:[#allocation0 + $0x40] sm:$0xff] }
  0xb8   :  { %832 = vst [vmem:[%s1189_s1] sm:$0xff] %v831_v44   ;;  %v846_v53 = vpack.c.bf16 %v555_v51, %v547_v50  ;;  %v571_v55 = vld [vmem:[#allocation0 + $0x48] sm:$0xff]  ;;  %v579_v56 = vld [vmem:[#allocation0 + $0x50] sm:$0xff]  ;;  %909 = vst [vmem:[%s1189_s1 + $0x8] sm:$0xff] %v836_v48  }
  0xb9   :  { %v851_v57 = vpack.c.bf16 %v571_v55, %v563_v54  ;;  %v587_v58 = vld [vmem:[#allocation0 + $0x58] sm:$0xff]  ;;  %v595_v59 = vld [vmem:[#allocation0 + $0x60] sm:$0xff]  ;;  %v603_v60 = vld [vmem:[#allocation0 + $0x68] sm:$0xff]  ;;  %910 = vst [vmem:[%s1189_s1 + $0x10] sm:$0xff] %v841_v52  }
  0xba   :  { %911 = vst [vmem:[%s1189_s1 + $0x18] sm:$0xff] %v846_v53   ;;  %v856_v61 = vpack.c.bf16 %v587_v58, %v579_v56  ;;  %v861_v62 = vpack.c.bf16 %v603_v60, %v595_v59  ;;  %v611_v63 = vld [vmem:[#allocation0 + $0x70] sm:$0xff]  ;;  %v619_v0 = vld [vmem:[#allocation0 + $0x78] sm:$0xff] }
  0xbb   :  { %912 = vst [vmem:[%s1189_s1 + $0x20] sm:$0xff] %v851_v57   ;;  %v866_v1 = vpack.c.bf16 %v619_v0, %v611_v63 }
  0xbc   :  { %913 = vst [vmem:[%s1189_s1 + $0x28] sm:$0xff] %v856_v61   ;;  %914 = vst [vmem:[%s1189_s1 + $0x30] sm:$0xff] %v861_v62  }
  0xbd   :  { %915 = vst [vmem:[%s1189_s1 + $0x38] sm:$0xff] %v866_v1  }

// kernel: squeeze.24
= control target key start
LH: loop header
LB: loop body
LE: loop exit
PB: predicated region body
PF: predicated region fallthrough
CT: control target
= control target key end

     0   :  { %vm131_vm0 = vcmask 130048   ;;  %vm283_vm1 = vcmask 1047556   ;;  %s2010_s14 = smov 96   ;;  %s2011_s15 = smov 80   ;;  %s2377_s0 = inlined_call_operand.vmem [shape: bf16[1,16,512], index: 0, kind: input, shape index: {}]   ;;  %s2378_s1 = inlined_call_operand.vmem [shape: bf16[16,2,16,16], index: 1, kind: output, shape index: {}]  }
   0x1   :  { %v1830_v0 = vld [vmem:[%s2377_s0 + $0x8] sm:$0xff]   ;;  %v1665_v1 = vld [vmem:[%s2377_s0] sm:$0xff]   ;;  %v1828_v2 = vld [vmem:[%s2377_s0 + $0x18] sm:$0xff]   ;;  %s2012_s16 = smov 64   ;;  %s2013_s17 = smov 48  }
   0x2   :  { %v1662_v3 = vunpack.c.l.bf16 %v1830_v0  ;;  %v1663_v4 = vunpack.c.h.bf16 %v1830_v0  ;;  %v1666_v5 = vunpack.c.l.bf16 %v1665_v1  ;;  %v1667_v6 = vunpack.c.h.bf16 %v1665_v1  ;;  %v1829_v7 = vld [vmem:[%s2377_s0 + $0x10] sm:$0xff]   ;;  %s2009_s0 = smov 112   ;;  %s2014_s18 = smov 32  }
   0x3   :  { %v1654_v8 = vunpack.c.l.bf16 %v1828_v2  ;;  %v2038_v9 = vunpack.c.h.bf16 %v1828_v2  ;;  %v1658_v10 = vunpack.c.l.bf16 %v1829_v7  ;;  %v1659_v11 = vunpack.c.h.bf16 %v1829_v7  ;;  %s2015_s19 = smov 16  }
   0x4   :  { %85 = vst [vmem:[#allocation1 + $0x18] sm:$0xff] %v1663_v4  ;;  %101 = vst [vmem:[#allocation1 + $0x10] sm:$0xff] %v1662_v3 }
   0x5   :  { %116 = vst [vmem:[#allocation1 + $0x8] sm:$0xff] %v1667_v6  ;;  %129 = vst [vmem:[#allocation1] sm:$0xff] %v1666_v5 }
   0x6   :  { %21 = vst [vmem:[#allocation1 + $0x38] sm:$0xff] %v2038_v9  ;;  %37 = vst [vmem:[#allocation1 + $0x30] sm:$0xff] %v1654_v8 }
   0x7   :  { %53 = vst [vmem:[#allocation1 + $0x28] sm:$0xff] %v1659_v11  ;;  %69 = vst [vmem:[#allocation1 + $0x20] sm:$0xff] %v1658_v10 }
   0x8   :  { %134 = vst.msk [vmem:[#allocation0 + $0x1f] sm:$0x2] %vm131_vm0, %v1666_v5   ;;  %138 = vst.msk [vmem:[#allocation0 + $0x5d] sm:$0x8] %vm131_vm0, %v1666_v5  }
   0x9   :  { %153 = vst.msk [vmem:[#allocation0 + $0x27] sm:$0x2] %vm131_vm0, %v1667_v6   ;;  %157 = vst.msk [vmem:[#allocation0 + $0x65] sm:$0x8] %vm131_vm0, %v1667_v6  }
   0xa   :  { %172 = vst.msk [vmem:[#allocation0 + $0x2f] sm:$0x2] %vm131_vm0, %v1662_v3   ;;  %176 = vst.msk [vmem:[#allocation0 + $0x6d] sm:$0x8] %vm131_vm0, %v1662_v3  }
   0xb   :  { %191 = vst.msk [vmem:[#allocation0 + $0x37] sm:$0x2] %vm131_vm0, %v1663_v4   ;;  %195 = vst.msk [vmem:[#allocation0 + $0x75] sm:$0x8] %vm131_vm0, %v1663_v4  }
   0xc   :  { %132 = vst.msk [vmem:[#allocation0] sm:$0x1] %vm131_vm0, %v1666_v5   ;;  %136 = vst.msk [vmem:[#allocation0 + $0x3e] sm:$0x4] %vm131_vm0, %v1666_v5  }
   0xd   :  { %140 = vst.msk [vmem:[#allocation0 + $0x7c] sm:$0x10] %vm131_vm0, %v1666_v5   ;;  %142 = vst.msk [vmem:[#allocation0 + $0x9b] sm:$0x20] %vm131_vm0, %v1666_v5  }
   0xe   :  { %144 = vst.msk [vmem:[#allocation0 + $0xba] sm:$0x40] %vm131_vm0, %v1666_v5   ;;  %146 = vst.msk [vmem:[#allocation0 + $0xd9] sm:$0x80] %vm131_vm0, %v1666_v5  }
   0xf   :  { %151 = vst.msk [vmem:[#allocation0 + $0x8] sm:$0x1] %vm131_vm0, %v1667_v6   ;;  %155 = vst.msk [vmem:[#allocation0 + $0x46] sm:$0x4] %vm131_vm0, %v1667_v6  }
  0x10   :  { %159 = vst.msk [vmem:[#allocation0 + $0x84] sm:$0x10] %vm131_vm0, %v1667_v6   ;;  %161 = vst.msk [vmem:[#allocation0 + $0xa3] sm:$0x20] %vm131_vm0, %v1667_v6  }
  0x11   :  { %163 = vst.msk [vmem:[#allocation0 + $0xc2] sm:$0x40] %vm131_vm0, %v1667_v6   ;;  %165 = vst.msk [vmem:[#allocation0 + $0xe1] sm:$0x80] %vm131_vm0, %v1667_v6  }
  0x12   :  { %170 = vst.msk [vmem:[#allocation0 + $0x10] sm:$0x1] %vm131_vm0, %v1662_v3   ;;  %174 = vst.msk [vmem:[#allocation0 + $0x4e] sm:$0x4] %vm131_vm0, %v1662_v3  }
  0x13   :  { %178 = vst.msk [vmem:[#allocation0 + $0x8c] sm:$0x10] %vm131_vm0, %v1662_v3   ;;  %180 = vst.msk [vmem:[#allocation0 + $0xab] sm:$0x20] %vm131_vm0, %v1662_v3  }
  0x14   :  { %182 = vst.msk [vmem:[#allocation0 + $0xca] sm:$0x40] %vm131_vm0, %v1662_v3   ;;  %184 = vst.msk [vmem:[#allocation0 + $0xe9] sm:$0x80] %vm131_vm0, %v1662_v3  }
  0x15   :  { %189 = vst.msk [vmem:[#allocation0 + $0x18] sm:$0x1] %vm131_vm0, %v1663_v4   ;;  %193 = vst.msk [vmem:[#allocation0 + $0x56] sm:$0x4] %vm131_vm0, %v1663_v4  }
  0x16   :  { %197 = vst.msk [vmem:[#allocation0 + $0x94] sm:$0x10] %vm131_vm0, %v1663_v4   ;;  %199 = vst.msk [vmem:[#allocation0 + $0xb3] sm:$0x20] %vm131_vm0, %v1663_v4  }
  0x17   :  { %201 = vst.msk [vmem:[#allocation0 + $0xd2] sm:$0x40] %vm131_vm0, %v1663_v4   ;;  %203 = vst.msk [vmem:[#allocation0 + $0xf1] sm:$0x80] %vm131_vm0, %v1663_v4  }
  0x18   :  { %208 = vst.msk [vmem:[#allocation0 + $0x100] sm:$0x1] %vm131_vm0, %v1658_v10   ;;  %210 = vst.msk [vmem:[#allocation0 + $0x11f] sm:$0x2] %vm131_vm0, %v1658_v10  }
  0x19   :  { %212 = vst.msk [vmem:[#allocation0 + $0x13e] sm:$0x4] %vm131_vm0, %v1658_v10   ;;  %214 = vst.msk [vmem:[#allocation0 + $0x15d] sm:$0x8] %vm131_vm0, %v1658_v10  }
  0x1a   :  { %227 = vst.msk [vmem:[#allocation0 + $0x108] sm:$0x1] %vm131_vm0, %v1659_v11   ;;  %229 = vst.msk [vmem:[#allocation0 + $0x127] sm:$0x2] %vm131_vm0, %v1659_v11  }
  0x1b   :  { %231 = vst.msk [vmem:[#allocation0 + $0x146] sm:$0x4] %vm131_vm0, %v1659_v11   ;;  %233 = vst.msk [vmem:[#allocation0 + $0x165] sm:$0x8] %vm131_vm0, %v1659_v11  }
  0x1c   :  { %265 = vst.msk [vmem:[#allocation0 + $0x118] sm:$0x1] %vm131_vm0, %v2038_v9   ;;  %267 = vst.msk [vmem:[#allocation0 + $0x137] sm:$0x2] %vm131_vm0, %v2038_v9  }
  0x1d   :  { %269 = vst.msk [vmem:[#allocation0 + $0x156] sm:$0x4] %vm131_vm0, %v2038_v9   ;;  %271 = vst.msk [vmem:[#allocation0 + $0x175] sm:$0x8] %vm131_vm0, %v2038_v9  }
  0x1e   :  { %216 = vst.msk [vmem:[#allocation0 + $0x17c] sm:$0x10] %vm131_vm0, %v1658_v10   ;;  %218 = vst.msk [vmem:[#allocation0 + $0x19b] sm:$0x20] %vm131_vm0, %v1658_v10  }
  0x1f   :  { %220 = vst.msk [vmem:[#allocation0 + $0x1ba] sm:$0x40] %vm131_vm0, %v1658_v10   ;;  %222 = vst.msk [vmem:[#allocation0 + $0x1d9] sm:$0x80] %vm131_vm0, %v1658_v10  }
  0x20   :  { %235 = vst.msk [vmem:[#allocation0 + $0x184] sm:$0x10] %vm131_vm0, %v1659_v11   ;;  %237 = vst.msk [vmem:[#allocation0 + $0x1a3] sm:$0x20] %vm131_vm0, %v1659_v11  }
  0x21   :  { %239 = vst.msk [vmem:[#allocation0 + $0x1c2] sm:$0x40] %vm131_vm0, %v1659_v11   ;;  %241 = vst.msk [vmem:[#allocation0 + $0x1e1] sm:$0x80] %vm131_vm0, %v1659_v11  }
  0x22   :  { %273 = vst.msk [vmem:[#allocation0 + $0x194] sm:$0x10] %vm131_vm0, %v2038_v9   ;;  %275 = vst.msk [vmem:[#allocation0 + $0x1b3] sm:$0x20] %vm131_vm0, %v2038_v9  }
  0x23   :  { %277 = vst.msk [vmem:[#allocation0 + $0x1d2] sm:$0x40] %vm131_vm0, %v2038_v9   ;;  %279 = vst.msk [vmem:[#allocation0 + $0x1f1] sm:$0x80] %vm131_vm0, %v2038_v9  }
  0x24   :  { %v280_v12 = vld [vmem:[#allocation1] ss:$8 sm:$0xf]   ;;  %v282_v13 = vld [vmem:[#allocation1 - $0x1f] ss:$8 sm:$0xf0]  }
  0x25   :  { %v284_v14 = vsel %vm283_vm1, %v282_v13, %v280_v12  ;;  %v293_v15 = vld [vmem:[#allocation1 + $0x2] ss:$8 sm:$0xf]   ;;  %v295_v16 = vld [vmem:[#allocation1 - $0x1d] ss:$8 sm:$0xf0]  }
  0x26   :  { %v297_v17 = vsel %vm283_vm1, %v295_v16, %v293_v15  ;;  %v332_v18 = vld [vmem:[#allocation1 + $0x20] ss:$8 sm:$0xf]   ;;  %v334_v19 = vld [vmem:[#allocation1 + $0x1] ss:$8 sm:$0xf0]  }
  0x27   :  { %v1869_v20 = vpack.i.bf16 %v297_v17, %v284_v14  ;;  %v336_v21 = vsel %vm283_vm1, %v334_v19, %v332_v18  ;;  %v345_v22 = vld [vmem:[#allocation1 + $0x22] ss:$8 sm:$0xf]   ;;  %v347_v23 = vld [vmem:[#allocation1 + $0x3] ss:$8 sm:$0xf0]  }
  0x28   :  { %v349_v24 = vsel %vm283_vm1, %v347_v23, %v345_v22  ;;  %v306_v25 = vld [vmem:[#allocation1 + $0x4] ss:$8 sm:$0xf]   ;;  %v308_v26 = vld [vmem:[#allocation1 - $0x1b] ss:$8 sm:$0xf0]  }
  0x29   :  { %1870 = vrot.lane.b32.xlu0 %v1869_v20, %s2009_s0  ;;  %v1879_v27 = vpack.i.bf16 %v349_v24, %v336_v21  ;;  %v310_v28 = vsel %vm283_vm1, %v308_v26, %v306_v25  ;;  %v319_v29 = vld [vmem:[#allocation1 + $0x6] ss:$8 sm:$0xf]   ;;  %v321_v30 = vld [vmem:[#allocation1 - $0x19] ss:$8 sm:$0xf0]  }
  0x2a   :  { %v323_v31 = vsel %vm283_vm1, %v321_v30, %v319_v29  ;;  %v358_v32 = vld [vmem:[#allocation1 + $0x24] ss:$8 sm:$0xf]   ;;  %v360_v33 = vld [vmem:[#allocation1 + $0x5] ss:$8 sm:$0xf0]  }
  0x2b   :  { %1880 = vrot.lane.b32.xlu1 %v1879_v27, %s2009_s0  ;;  %v1874_v34 = vpack.i.bf16 %v323_v31, %v310_v28  ;;  %v362_v35 = vsel %vm283_vm1, %v360_v33, %v358_v32  ;;  %v371_v36 = vld [vmem:[#allocation1 + $0x26] ss:$8 sm:$0xf]   ;;  %v373_v37 = vld [vmem:[#allocation1 + $0x7] ss:$8 sm:$0xf0]  }
  0x2c   :  { %v375_v38 = vsel %vm283_vm1, %v373_v37, %v371_v36  ;;  %v383_v39 = vld [vmem:[#allocation1] ss:$8 sm:$0xf]   ;;  %v385_v40 = vld [vmem:[#allocation1 - $0x1f] ss:$8 sm:$0xf0]  }
  0x2d   :  { %1875 = vrot.lane.b32.xlu0 %v1874_v34, %s2009_s0  ;;  %v1884_v41 = vpack.i.bf16 %v375_v38, %v362_v35  ;;  %v387_v42 = vsel %vm283_vm1, %v385_v40, %v383_v39  ;;  %v396_v43 = vld [vmem:[#allocation1 + $0x2] ss:$8 sm:$0xf]   ;;  %v398_v44 = vld [vmem:[#allocation1 - $0x1d] ss:$8 sm:$0xf0]  }
  0x2e   :  { %v400_v45 = vsel %vm283_vm1, %v398_v44, %v396_v43  ;;  %v409_v46 = vld [vmem:[#allocation1 + $0x4] ss:$8 sm:$0xf]   ;;  %v411_v47 = vld [vmem:[#allocation1 - $0x1b] ss:$8 sm:$0xf0]  }
  0x2f   :  { %1885 = vrot.lane.b32.xlu1 %v1884_v41, %s2009_s0  ;;  %v1889_v48 = vpack.i.bf16 %v400_v45, %v387_v42  ;;  %v413_v49 = vsel %vm283_vm1, %v411_v47, %v409_v46  ;;  %v422_v50 = vld [vmem:[#allocation1 + $0x6] ss:$8 sm:$0xf]   ;;  %v424_v51 = vld [vmem:[#allocation1 - $0x19] ss:$8 sm:$0xf0]  }
  0x30   :  { %v426_v52 = vsel %vm283_vm1, %v424_v51, %v422_v50  ;;  %v435_v53 = vld [vmem:[#allocation1 + $0x20] ss:$8 sm:$0xf]   ;;  %v437_v54 = vld [vmem:[#allocation1 + $0x1] ss:$8 sm:$0xf0]  }
  0x31   :  { %1890 = vrot.lane.b32.xlu0 %v1889_v48, %s2010_s14  ;;  %v1894_v55 = vpack.i.bf16 %v426_v52, %v413_v49  ;;  %v439_v56 = vsel %vm283_vm1, %v437_v54, %v435_v53  ;;  %v448_v57 = vld [vmem:[#allocation1 + $0x22] ss:$8 sm:$0xf]   ;;  %v450_v58 = vld [vmem:[#allocation1 + $0x3] ss:$8 sm:$0xf0]  }
  0x32   :  { %v452_v59 = vsel %vm283_vm1, %v450_v58, %v448_v57  ;;  %v461_v60 = vld [vmem:[#allocation1 + $0x24] ss:$8 sm:$0xf]   ;;  %v463_v61 = vld [vmem:[#allocation1 + $0x5] ss:$8 sm:$0xf0]  }
  0x33   :  { %1895 = vrot.lane.b32.xlu1 %v1894_v55, %s2010_s14  ;;  %v1899_v62 = vpack.i.bf16 %v452_v59, %v439_v56  ;;  %v465_v63 = vsel %vm283_vm1, %v463_v61, %v461_v60  ;;  %v474_v0 = vld [vmem:[#allocation1 + $0x26] ss:$8 sm:$0xf]   ;;  %v476_v1 = vld [vmem:[#allocation1 + $0x7] ss:$8 sm:$0xf0]  }
  0x34   :  { %v478_v2 = vsel %vm283_vm1, %v476_v1, %v474_v0  ;;  %v486_v3 = vld [vmem:[#allocation1] ss:$8 sm:$0xf]   ;;  %v488_v4 = vld [vmem:[#allocation1 - $0x1f] ss:$8 sm:$0xf0]  }
  0x35   :  { %1900 = vrot.lane.b32.xlu0 %v1899_v62, %s2010_s14  ;;  %v1904_v5 = vpack.i.bf16 %v478_v2, %v465_v63  ;;  %v490_v6 = vsel %vm283_vm1, %v488_v4, %v486_v3  ;;  %v499_v7 = vld [vmem:[#allocation1 + $0x2] ss:$8 sm:$0xf]   ;;  %v501_v8 = vld [vmem:[#allocation1 - $0x1d] ss:$8 sm:$0xf0]  }
  0x36   :  { %v503_v9 = vsel %vm283_vm1, %v501_v8, %v499_v7  ;;  %v512_v10 = vld [vmem:[#allocation1 + $0x4] ss:$8 sm:$0xf]   ;;  %v514_v11 = vld [vmem:[#allocation1 - $0x1b] ss:$8 sm:$0xf0]  }
  0x37   :  { %1905 = vrot.lane.b32.xlu1 %v1904_v5, %s2010_s14  ;;  %v1909_v12 = vpack.i.bf16 %v503_v9, %v490_v6  ;;  %v516_v13 = vsel %vm283_vm1, %v514_v11, %v512_v10  ;;  %v525_v14 = vld [vmem:[#allocation1 + $0x6] ss:$8 sm:$0xf]   ;;  %v527_v15 = vld [vmem:[#allocation1 - $0x19] ss:$8 sm:$0xf0]  }
  0x38   :  { %v529_v16 = vsel %vm283_vm1, %v527_v15, %v525_v14  ;;  %v538_v17 = vld [vmem:[#allocation1 + $0x20] ss:$8 sm:$0xf]   ;;  %v540_v18 = vld [vmem:[#allocation1 + $0x1] ss:$8 sm:$0xf0]  }
  0x39   :  { %1910 = vrot.lane.b32.xlu0 %v1909_v12, %s2011_s15  ;;  %v1914_v19 = vpack.i.bf16 %v529_v16, %v516_v13  ;;  %v542_v20 = vsel %vm283_vm1, %v540_v18, %v538_v17  ;;  %v551_v21 = vld [vmem:[#allocation1 + $0x22] ss:$8 sm:$0xf]   ;;  %v553_v22 = vld [vmem:[#allocation1 + $0x3] ss:$8 sm:$0xf0]  }
  0x3a   :  { %v555_v23 = vsel %vm283_vm1, %v553_v22, %v551_v21  ;;  %v564_v24 = vld [vmem:[#allocation1 + $0x24] ss:$8 sm:$0xf]   ;;  %v566_v25 = vld [vmem:[#allocation1 + $0x5] ss:$8 sm:$0xf0]  }
  0x3b   :  { %1915 = vrot.lane.b32.xlu1 %v1914_v19, %s2011_s15  ;;  %v1919_v26 = vpack.i.bf16 %v555_v23, %v542_v20  ;;  %v568_v27 = vsel %vm283_vm1, %v566_v25, %v564_v24  ;;  %v577_v28 = vld [vmem:[#allocation1 + $0x26] ss:$8 sm:$0xf]   ;;  %v579_v29 = vld [vmem:[#allocation1 + $0x7] ss:$8 sm:$0xf0]  }
  0x3c   :  { %v581_v30 = vsel %vm283_vm1, %v579_v29, %v577_v28  ;;  %v589_v31 = vld [vmem:[#allocation1] ss:$8 sm:$0xf]   ;;  %v591_v32 = vld [vmem:[#allocation1 - $0x1f] ss:$8 sm:$0xf0]  }
  0x3d   :  { %1920 = vrot.lane.b32.xlu0 %v1919_v26, %s2011_s15  ;;  %v1924_v33 = vpack.i.bf16 %v581_v30, %v568_v27  ;;  %v593_v34 = vsel %vm283_vm1, %v591_v32, %v589_v31  ;;  %v602_v35 = vld [vmem:[#allocation1 + $0x2] ss:$8 sm:$0xf]   ;;  %v604_v36 = vld [vmem:[#allocation1 - $0x1d] ss:$8 sm:$0xf0]  }
  0x3e   :  { %v606_v37 = vsel %vm283_vm1, %v604_v36, %v602_v35  ;;  %v615_v38 = vld [vmem:[#allocation1 + $0x4] ss:$8 sm:$0xf]   ;;  %v617_v39 = vld [vmem:[#allocation1 - $0x1b] ss:$8 sm:$0xf0]  }
  0x3f   :  { %1925 = vrot.lane.b32.xlu1 %v1924_v33, %s2011_s15  ;;  %v1929_v40 = vpack.i.bf16 %v606_v37, %v593_v34  ;;  %v619_v41 = vsel %vm283_vm1, %v617_v39, %v615_v38  ;;  %v628_v42 = vld [vmem:[#allocation1 + $0x6] ss:$8 sm:$0xf]   ;;  %v630_v43 = vld [vmem:[#allocation1 - $0x19] ss:$8 sm:$0xf0]  }
  0x40   :  { %v632_v44 = vsel %vm283_vm1, %v630_v43, %v628_v42  ;;  %v641_v45 = vld [vmem:[#allocation1 + $0x20] ss:$8 sm:$0xf]   ;;  %v643_v46 = vld [vmem:[#allocation1 + $0x1] ss:$8 sm:$0xf0]  }
  0x41   :  { %1930 = vrot.lane.b32.xlu0 %v1929_v40, %s2012_s16  ;;  %v1934_v47 = vpack.i.bf16 %v632_v44, %v619_v41  ;;  %v645_v48 = vsel %vm283_vm1, %v643_v46, %v641_v45  ;;  %v654_v49 = vld [vmem:[#allocation1 + $0x22] ss:$8 sm:$0xf]   ;;  %v656_v50 = vld [vmem:[#allocation1 + $0x3] ss:$8 sm:$0xf0]  }
  0x42   :  { %v658_v51 = vsel %vm283_vm1, %v656_v50, %v654_v49  ;;  %v667_v52 = vld [vmem:[#allocation1 + $0x24] ss:$8 sm:$0xf]   ;;  %v669_v53 = vld [vmem:[#allocation1 + $0x5] ss:$8 sm:$0xf0]  }
  0x43   :  { %1935 = vrot.lane.b32.xlu1 %v1934_v47, %s2012_s16  ;;  %v1939_v54 = vpack.i.bf16 %v658_v51, %v645_v48  ;;  %v671_v55 = vsel %vm283_vm1, %v669_v53, %v667_v52  ;;  %v680_v56 = vld [vmem:[#allocation1 + $0x26] ss:$8 sm:$0xf]   ;;  %v682_v57 = vld [vmem:[#allocation1 + $0x7] ss:$8 sm:$0xf0]  }
  0x44   :  { %v684_v58 = vsel %vm283_vm1, %v682_v57, %v680_v56  ;;  %v692_v59 = vld [vmem:[#allocation1] ss:$8 sm:$0xf]   ;;  %v694_v60 = vld [vmem:[#allocation1 - $0x1f] ss:$8 sm:$0xf0]  }
  0x45   :  { %1940 = vrot.lane.b32.xlu0 %v1939_v54, %s2012_s16  ;;  %v1944_v61 = vpack.i.bf16 %v684_v58, %v671_v55  ;;  %v696_v62 = vsel %vm283_vm1, %v694_v60, %v692_v59  ;;  %v705_v63 = vld [vmem:[#allocation1 + $0x2] ss:$8 sm:$0xf]   ;;  %v707_v0 = vld [vmem:[#allocation1 - $0x1d] ss:$8 sm:$0xf0]  }
  0x46   :  { %v709_v1 = vsel %vm283_vm1, %v707_v0, %v705_v63  ;;  %v718_v2 = vld [vmem:[#allocation1 + $0x4] ss:$8 sm:$0xf]   ;;  %v720_v3 = vld [vmem:[#allocation1 - $0x1b] ss:$8 sm:$0xf0]  }
  0x47   :  { %1945 = vrot.lane.b32.xlu1 %v1944_v61, %s2012_s16  ;;  %v1949_v4 = vpack.i.bf16 %v709_v1, %v696_v62  ;;  %v722_v5 = vsel %vm283_vm1, %v720_v3, %v718_v2  ;;  %v731_v6 = vld [vmem:[#allocation1 + $0x6] ss:$8 sm:$0xf]   ;;  %v733_v7 = vld [vmem:[#allocation1 - $0x19] ss:$8 sm:$0xf0]  }
  0x48   :  { %v735_v8 = vsel %vm283_vm1, %v733_v7, %v731_v6  ;;  %v744_v9 = vld [vmem:[#allocation1 + $0x20] ss:$8 sm:$0xf]   ;;  %v746_v10 = vld [vmem:[#allocation1 + $0x1] ss:$8 sm:$0xf0]  }
  0x49   :  { %1950 = vrot.lane.b32.xlu0 %v1949_v4, %s2013_s17  ;;  %v1954_v11 = vpack.i.bf16 %v735_v8, %v722_v5  ;;  %v748_v12 = vsel %vm283_vm1, %v746_v10, %v744_v9  ;;  %v757_v13 = vld [vmem:[#allocation1 + $0x22] ss:$8 sm:$0xf]   ;;  %v759_v14 = vld [vmem:[#allocation1 + $0x3] ss:$8 sm:$0xf0]  }
  0x4a   :  { %v761_v15 = vsel %vm283_vm1, %v759_v14, %v757_v13  ;;  %v770_v16 = vld [vmem:[#allocation1 + $0x24] ss:$8 sm:$0xf]   ;;  %v772_v17 = vld [vmem:[#allocation1 + $0x5] ss:$8 sm:$0xf0]  }
  0x4b   :  { %1955 = vrot.lane.b32.xlu1 %v1954_v11, %s2013_s17  ;;  %v1959_v18 = vpack.i.bf16 %v761_v15, %v748_v12  ;;  %v774_v19 = vsel %vm283_vm1, %v772_v17, %v770_v16  ;;  %v783_v20 = vld [vmem:[#allocation1 + $0x26] ss:$8 sm:$0xf]   ;;  %v785_v21 = vld [vmem:[#allocation1 + $0x7] ss:$8 sm:$0xf0]  }
  0x4c   :  { %v787_v22 = vsel %vm283_vm1, %v785_v21, %v783_v20  ;;  %v795_v23 = vld [vmem:[#allocation1] ss:$8 sm:$0xf]   ;;  %v797_v24 = vld [vmem:[#allocation1 - $0x1f] ss:$8 sm:$0xf0]  }
  0x4d   :  { %1960 = vrot.lane.b32.xlu0 %v1959_v18, %s2013_s17  ;;  %v1964_v25 = vpack.i.bf16 %v787_v22, %v774_v19  ;;  %v799_v26 = vsel %vm283_vm1, %v797_v24, %v795_v23  ;;  %v808_v27 = vld [vmem:[#allocation1 + $0x2] ss:$8 sm:$0xf]   ;;  %v810_v28 = vld [vmem:[#allocation1 - $0x1d] ss:$8 sm:$0xf0]  }
  0x4e   :  { %v812_v29 = vsel %vm283_vm1, %v810_v28, %v808_v27  ;;  %v821_v30 = vld [vmem:[#allocation1 + $0x4] ss:$8 sm:$0xf]   ;;  %v823_v31 = vld [vmem:[#allocation1 - $0x1b] ss:$8 sm:$0xf0]  }
  0x4f   :  { %1965 = vrot.lane.b32.xlu1 %v1964_v25, %s2013_s17  ;;  %v1969_v32 = vpack.i.bf16 %v812_v29, %v799_v26  ;;  %v825_v33 = vsel %vm283_vm1, %v823_v31, %v821_v30  ;;  %v834_v34 = vld [vmem:[#allocation1 + $0x6] ss:$8 sm:$0xf]   ;;  %v836_v35 = vld [vmem:[#allocation1 - $0x19] ss:$8 sm:$0xf0]  }
  0x50   :  { %v838_v36 = vsel %vm283_vm1, %v836_v35, %v834_v34  ;;  %v847_v37 = vld [vmem:[#allocation1 + $0x20] ss:$8 sm:$0xf]   ;;  %v849_v38 = vld [vmem:[#allocation1 + $0x1] ss:$8 sm:$0xf0]  }
  0x51   :  { %1970 = vrot.lane.b32.xlu0 %v1969_v32, %s2014_s18  ;;  %v1974_v39 = vpack.i.bf16 %v838_v36, %v825_v33  ;;  %v851_v40 = vsel %vm283_vm1, %v849_v38, %v847_v37  ;;  %v860_v41 = vld [vmem:[#allocation1 + $0x22] ss:$8 sm:$0xf]   ;;  %v862_v42 = vld [vmem:[#allocation1 + $0x3] ss:$8 sm:$0xf0]  }
  0x52   :  { %v864_v43 = vsel %vm283_vm1, %v862_v42, %v860_v41  ;;  %v873_v44 = vld [vmem:[#allocation1 + $0x24] ss:$8 sm:$0xf]   ;;  %v875_v45 = vld [vmem:[#allocation1 + $0x5] ss:$8 sm:$0xf0]  }
  0x53   :  { %1975 = vrot.lane.b32.xlu1 %v1974_v39, %s2014_s18  ;;  %v1979_v46 = vpack.i.bf16 %v864_v43, %v851_v40  ;;  %v877_v47 = vsel %vm283_vm1, %v875_v45, %v873_v44  ;;  %v886_v48 = vld [vmem:[#allocation1 + $0x26] ss:$8 sm:$0xf]   ;;  %v888_v49 = vld [vmem:[#allocation1 + $0x7] ss:$8 sm:$0xf0]  }
  0x54   :  { %v890_v50 = vsel %vm283_vm1, %v888_v49, %v886_v48  ;;  %v898_v51 = vld [vmem:[#allocation1] ss:$8 sm:$0xf]   ;;  %v900_v52 = vld [vmem:[#allocation1 - $0x1f] ss:$8 sm:$0xf0]  }
  0x55   :  { %1980 = vrot.lane.b32.xlu0 %v1979_v46, %s2014_s18  ;;  %v1984_v53 = vpack.i.bf16 %v890_v50, %v877_v47  ;;  %v902_v54 = vsel %vm283_vm1, %v900_v52, %v898_v51  ;;  %v911_v55 = vld [vmem:[#allocation1 + $0x2] ss:$8 sm:$0xf]   ;;  %v913_v56 = vld [vmem:[#allocation1 - $0x1d] ss:$8 sm:$0xf0]  }
  0x56   :  { %v915_v57 = vsel %vm283_vm1, %v913_v56, %v911_v55  ;;  %v924_v58 = vld [vmem:[#allocation1 + $0x4] ss:$8 sm:$0xf]   ;;  %v926_v59 = vld [vmem:[#allocation1 - $0x1b] ss:$8 sm:$0xf0]  }
  0x57   :  { %1985 = vrot.lane.b32.xlu1 %v1984_v53, %s2014_s18  ;;  %v1989_v60 = vpack.i.bf16 %v915_v57, %v902_v54  ;;  %v928_v61 = vsel %vm283_vm1, %v926_v59, %v924_v58  ;;  %v937_v62 = vld [vmem:[#allocation1 + $0x6] ss:$8 sm:$0xf]   ;;  %v939_v63 = vld [vmem:[#allocation1 - $0x19] ss:$8 sm:$0xf0]  }
  0x58   :  { %v941_v0 = vsel %vm283_vm1, %v939_v63, %v937_v62  ;;  %v950_v1 = vld [vmem:[#allocation1 + $0x20] ss:$8 sm:$0xf]   ;;  %v952_v2 = vld [vmem:[#allocation1 + $0x1] ss:$8 sm:$0xf0]  }
  0x59   :  { %1990 = vrot.lane.b32.xlu0 %v1989_v60, %s2015_s19  ;;  %v1994_v3 = vpack.i.bf16 %v941_v0, %v928_v61  ;;  %v954_v4 = vsel %vm283_vm1, %v952_v2, %v950_v1  ;;  %v963_v5 = vld [vmem:[#allocation1 + $0x22] ss:$8 sm:$0xf]   ;;  %v965_v6 = vld [vmem:[#allocation1 + $0x3] ss:$8 sm:$0xf0]  }
  0x5a   :  { %v967_v7 = vsel %vm283_vm1, %v965_v6, %v963_v5  ;;  %v976_v8 = vld [vmem:[#allocation1 + $0x24] ss:$8 sm:$0xf]   ;;  %v978_v9 = vld [vmem:[#allocation1 + $0x5] ss:$8 sm:$0xf0]  }
  0x5b   :  { %1995 = vrot.lane.b32.xlu1 %v1994_v3, %s2015_s19  ;;  %v1999_v10 = vpack.i.bf16 %v967_v7, %v954_v4  ;;  %v980_v11 = vsel %vm283_vm1, %v978_v9, %v976_v8  ;;  %v989_v12 = vld [vmem:[#allocation1 + $0x26] ss:$8 sm:$0xf]   ;;  %v991_v13 = vld [vmem:[#allocation1 + $0x7] ss:$8 sm:$0xf0]  }
  0x5c   :  { %v993_v14 = vsel %vm283_vm1, %v991_v13, %v989_v12  ;;  %v243_v15 = vld [vmem:[#allocation1 + $0x30] sm:$0xff]  }
  0x5d   :  { %2000 = vrot.lane.b32.xlu0 %v1999_v10, %s2015_s19  ;;  %v2004_v16 = vpack.i.bf16 %v993_v14, %v980_v11  ;;  %246 = vst.msk [vmem:[#allocation0 + $0x110] sm:$0x1] %vm131_vm0, %v243_v15   ;;  %248 = vst.msk [vmem:[#allocation0 + $0x12f] sm:$0x2] %vm131_vm0, %v243_v15  }
  0x5e   :  { %250 = vst.msk [vmem:[#allocation0 + $0x14e] sm:$0x4] %vm131_vm0, %v243_v15   ;;  %252 = vst.msk [vmem:[#allocation0 + $0x16d] sm:$0x8] %vm131_vm0, %v243_v15  }
  0x5f   :  { %254 = vst.msk [vmem:[#allocation0 + $0x18c] sm:$0x10] %vm131_vm0, %v243_v15   ;;  %256 = vst.msk [vmem:[#allocation0 + $0x1ab] sm:$0x20] %vm131_vm0, %v243_v15   ;;  %2005 = vrot.lane.b32.xlu1 %v2004_v16, %s2015_s19 }
  0x60   :  { %258 = vst.msk [vmem:[#allocation0 + $0x1ca] sm:$0x40] %vm131_vm0, %v243_v15   ;;  %260 = vst.msk [vmem:[#allocation0 + $0x1e9] sm:$0x80] %vm131_vm0, %v243_v15  }
  0x9b   :  { %v1871_v17 = vpop.permute.xlu0 %1870 }
  0x9c   :  { %v1873_v18 = vunpack.i.h.bf16 %v1871_v17  ;;  %v1872_v19 = vunpack.i.l.bf16 %v1871_v17 }
  0x9d   :  { %v1881_v20 = vpop.permute.xlu1 %1880 }
  0x9e   :  { %302 = vst.msk [vmem:[#allocation0 + $0x41] ss:$8 sm:$0xf] %vm131_vm0, %v1873_v18   ;;  %304 = vst.msk [vmem:[#allocation0 + $0x41] ss:$8 sm:$0xf0] %vm131_vm0, %v1873_v18   ;;  %v1883_v21 = vunpack.i.h.bf16 %v1881_v20  ;;  %v1882_v22 = vunpack.i.l.bf16 %v1881_v20 }
  0x9f   :  { %289 = vst.msk [vmem:[#allocation0 + $0x1] ss:$8 sm:$0xf] %vm131_vm0, %v1872_v19   ;;  %291 = vst.msk [vmem:[#allocation0 + $0x1] ss:$8 sm:$0xf0] %vm131_vm0, %v1872_v19   ;;  %v1876_v23 = vpop.permute.xlu0 %1875 }
  0xa0   :  { %354 = vst.msk [vmem:[#allocation0 + $0x141] ss:$8 sm:$0xf] %vm131_vm0, %v1883_v21   ;;  %356 = vst.msk [vmem:[#allocation0 + $0x141] ss:$8 sm:$0xf0] %vm131_vm0, %v1883_v21   ;;  %v1878_v24 = vunpack.i.h.bf16 %v1876_v23  ;;  %v1877_v25 = vunpack.i.l.bf16 %v1876_v23 }
  0xa1   :  { %341 = vst.msk [vmem:[#allocation0 + $0x101] ss:$8 sm:$0xf] %vm131_vm0, %v1882_v22   ;;  %343 = vst.msk [vmem:[#allocation0 + $0x101] ss:$8 sm:$0xf0] %vm131_vm0, %v1882_v22   ;;  %v1886_v26 = vpop.permute.xlu1 %1885 }
  0xa2   :  { %328 = vst.msk [vmem:[#allocation0 + $0xc1] ss:$8 sm:$0xf] %vm131_vm0, %v1878_v24   ;;  %330 = vst.msk [vmem:[#allocation0 + $0xc1] ss:$8 sm:$0xf0] %vm131_vm0, %v1878_v24   ;;  %v1888_v27 = vunpack.i.h.bf16 %v1886_v26  ;;  %v1887_v28 = vunpack.i.l.bf16 %v1886_v26 }
  0xa3   :  { %315 = vst.msk [vmem:[#allocation0 + $0x81] ss:$8 sm:$0xf] %vm131_vm0, %v1877_v25   ;;  %317 = vst.msk [vmem:[#allocation0 + $0x81] ss:$8 sm:$0xf0] %vm131_vm0, %v1877_v25   ;;  %v1891_v29 = vpop.permute.xlu0 %1890 }
  0xa4   :  { %380 = vst.msk [vmem:[#allocation0 + $0x1c1] ss:$8 sm:$0xf] %vm131_vm0, %v1888_v27   ;;  %382 = vst.msk [vmem:[#allocation0 + $0x1c1] ss:$8 sm:$0xf0] %vm131_vm0, %v1888_v27   ;;  %v1893_v30 = vunpack.i.h.bf16 %v1891_v29  ;;  %v1892_v31 = vunpack.i.l.bf16 %v1891_v29 }
  0xa5   :  { %367 = vst.msk [vmem:[#allocation0 + $0x181] ss:$8 sm:$0xf] %vm131_vm0, %v1887_v28   ;;  %369 = vst.msk [vmem:[#allocation0 + $0x181] ss:$8 sm:$0xf0] %vm131_vm0, %v1887_v28   ;;  %v1896_v32 = vpop.permute.xlu1 %1895 }
  0xa6   :  { %405 = vst.msk [vmem:[#allocation0 + $0x42] ss:$8 sm:$0xf] %vm131_vm0, %v1893_v30   ;;  %407 = vst.msk [vmem:[#allocation0 + $0x42] ss:$8 sm:$0xf0] %vm131_vm0, %v1893_v30   ;;  %v1898_v33 = vunpack.i.h.bf16 %v1896_v32  ;;  %v1897_v34 = vunpack.i.l.bf16 %v1896_v32 }
  0xa7   :  { %392 = vst.msk [vmem:[#allocation0 + $0x2] ss:$8 sm:$0xf] %vm131_vm0, %v1892_v31   ;;  %394 = vst.msk [vmem:[#allocation0 + $0x2] ss:$8 sm:$0xf0] %vm131_vm0, %v1892_v31   ;;  %v1901_v35 = vpop.permute.xlu0 %1900 }
  0xa8   :  { %431 = vst.msk [vmem:[#allocation0 + $0xc2] ss:$8 sm:$0xf] %vm131_vm0, %v1898_v33   ;;  %433 = vst.msk [vmem:[#allocation0 + $0xc2] ss:$8 sm:$0xf0] %vm131_vm0, %v1898_v33   ;;  %v1903_v36 = vunpack.i.h.bf16 %v1901_v35  ;;  %v1902_v37 = vunpack.i.l.bf16 %v1901_v35 }
  0xa9   :  { %418 = vst.msk [vmem:[#allocation0 + $0x82] ss:$8 sm:$0xf] %vm131_vm0, %v1897_v34   ;;  %420 = vst.msk [vmem:[#allocation0 + $0x82] ss:$8 sm:$0xf0] %vm131_vm0, %v1897_v34   ;;  %v1906_v38 = vpop.permute.xlu1 %1905 }
  0xaa   :  { %457 = vst.msk [vmem:[#allocation0 + $0x142] ss:$8 sm:$0xf] %vm131_vm0, %v1903_v36   ;;  %459 = vst.msk [vmem:[#allocation0 + $0x142] ss:$8 sm:$0xf0] %vm131_vm0, %v1903_v36   ;;  %v1908_v39 = vunpack.i.h.bf16 %v1906_v38  ;;  %v1907_v40 = vunpack.i.l.bf16 %v1906_v38 }
  0xab   :  { %444 = vst.msk [vmem:[#allocation0 + $0x102] ss:$8 sm:$0xf] %vm131_vm0, %v1902_v37   ;;  %446 = vst.msk [vmem:[#allocation0 + $0x102] ss:$8 sm:$0xf0] %vm131_vm0, %v1902_v37   ;;  %v1911_v41 = vpop.permute.xlu0 %1910 }
  0xac   :  { %483 = vst.msk [vmem:[#allocation0 + $0x1c2] ss:$8 sm:$0xf] %vm131_vm0, %v1908_v39   ;;  %485 = vst.msk [vmem:[#allocation0 + $0x1c2] ss:$8 sm:$0xf0] %vm131_vm0, %v1908_v39   ;;  %v1913_v42 = vunpack.i.h.bf16 %v1911_v41  ;;  %v1912_v43 = vunpack.i.l.bf16 %v1911_v41 }
  0xad   :  { %470 = vst.msk [vmem:[#allocation0 + $0x182] ss:$8 sm:$0xf] %vm131_vm0, %v1907_v40   ;;  %472 = vst.msk [vmem:[#allocation0 + $0x182] ss:$8 sm:$0xf0] %vm131_vm0, %v1907_v40   ;;  %v1916_v44 = vpop.permute.xlu1 %1915 }
  0xae   :  { %508 = vst.msk [vmem:[#allocation0 + $0x43] ss:$8 sm:$0xf] %vm131_vm0, %v1913_v42   ;;  %510 = vst.msk [vmem:[#allocation0 + $0x43] ss:$8 sm:$0xf0] %vm131_vm0, %v1913_v42   ;;  %v1918_v45 = vunpack.i.h.bf16 %v1916_v44  ;;  %v1917_v46 = vunpack.i.l.bf16 %v1916_v44 }
  0xaf   :  { %495 = vst.msk [vmem:[#allocation0 + $0x3] ss:$8 sm:$0xf] %vm131_vm0, %v1912_v43   ;;  %497 = vst.msk [vmem:[#allocation0 + $0x3] ss:$8 sm:$0xf0] %vm131_vm0, %v1912_v43   ;;  %v1921_v47 = vpop.permute.xlu0 %1920 }
  0xb0   :  { %534 = vst.msk [vmem:[#allocation0 + $0xc3] ss:$8 sm:$0xf] %vm131_vm0, %v1918_v45   ;;  %536 = vst.msk [vmem:[#allocation0 + $0xc3] ss:$8 sm:$0xf0] %vm131_vm0, %v1918_v45   ;;  %v1923_v48 = vunpack.i.h.bf16 %v1921_v47  ;;  %v1922_v49 = vunpack.i.l.bf16 %v1921_v47 }
  0xb1   :  { %521 = vst.msk [vmem:[#allocation0 + $0x83] ss:$8 sm:$0xf] %vm131_vm0, %v1917_v46   ;;  %523 = vst.msk [vmem:[#allocation0 + $0x83] ss:$8 sm:$0xf0] %vm131_vm0, %v1917_v46   ;;  %v1926_v50 = vpop.permute.xlu1 %1925 }
  0xb2   :  { %560 = vst.msk [vmem:[#allocation0 + $0x143] ss:$8 sm:$0xf] %vm131_vm0, %v1923_v48   ;;  %562 = vst.msk [vmem:[#allocation0 + $0x143] ss:$8 sm:$0xf0] %vm131_vm0, %v1923_v48   ;;  %v1928_v51 = vunpack.i.h.bf16 %v1926_v50  ;;  %v1927_v52 = vunpack.i.l.bf16 %v1926_v50 }
  0xb3   :  { %547 = vst.msk [vmem:[#allocation0 + $0x103] ss:$8 sm:$0xf] %vm131_vm0, %v1922_v49   ;;  %549 = vst.msk [vmem:[#allocation0 + $0x103] ss:$8 sm:$0xf0] %vm131_vm0, %v1922_v49   ;;  %v1931_v53 = vpop.permute.xlu0 %1930 }
  0xb4   :  { %586 = vst.msk [vmem:[#allocation0 + $0x1c3] ss:$8 sm:$0xf] %vm131_vm0, %v1928_v51   ;;  %588 = vst.msk [vmem:[#allocation0 + $0x1c3] ss:$8 sm:$0xf0] %vm131_vm0, %v1928_v51   ;;  %v1933_v54 = vunpack.i.h.bf16 %v1931_v53  ;;  %v1932_v55 = vunpack.i.l.bf16 %v1931_v53 }
  0xb5   :  { %573 = vst.msk [vmem:[#allocation0 + $0x183] ss:$8 sm:$0xf] %vm131_vm0, %v1927_v52   ;;  %575 = vst.msk [vmem:[#allocation0 + $0x183] ss:$8 sm:$0xf0] %vm131_vm0, %v1927_v52   ;;  %v1936_v56 = vpop.permute.xlu1 %1935 }
  0xb6   :  { %611 = vst.msk [vmem:[#allocation0 + $0x44] ss:$8 sm:$0xf] %vm131_vm0, %v1933_v54   ;;  %613 = vst.msk [vmem:[#allocation0 + $0x44] ss:$8 sm:$0xf0] %vm131_vm0, %v1933_v54   ;;  %v1938_v57 = vunpack.i.h.bf16 %v1936_v56  ;;  %v1937_v58 = vunpack.i.l.bf16 %v1936_v56 }
  0xb7   :  { %598 = vst.msk [vmem:[#allocation0 + $0x4] ss:$8 sm:$0xf] %vm131_vm0, %v1932_v55   ;;  %600 = vst.msk [vmem:[#allocation0 + $0x4] ss:$8 sm:$0xf0] %vm131_vm0, %v1932_v55   ;;  %v1941_v59 = vpop.permute.xlu0 %1940 }
  0xb8   :  { %637 = vst.msk [vmem:[#allocation0 + $0xc4] ss:$8 sm:$0xf] %vm131_vm0, %v1938_v57   ;;  %639 = vst.msk [vmem:[#allocation0 + $0xc4] ss:$8 sm:$0xf0] %vm131_vm0, %v1938_v57   ;;  %v1943_v60 = vunpack.i.h.bf16 %v1941_v59  ;;  %v1942_v61 = vunpack.i.l.bf16 %v1941_v59 }
  0xb9   :  { %624 = vst.msk [vmem:[#allocation0 + $0x84] ss:$8 sm:$0xf] %vm131_vm0, %v1937_v58   ;;  %626 = vst.msk [vmem:[#allocation0 + $0x84] ss:$8 sm:$0xf0] %vm131_vm0, %v1937_v58   ;;  %v1946_v62 = vpop.permute.xlu1 %1945 }
  0xba   :  { %663 = vst.msk [vmem:[#allocation0 + $0x144] ss:$8 sm:$0xf] %vm131_vm0, %v1943_v60   ;;  %665 = vst.msk [vmem:[#allocation0 + $0x144] ss:$8 sm:$0xf0] %vm131_vm0, %v1943_v60   ;;  %v1948_v63 = vunpack.i.h.bf16 %v1946_v62  ;;  %v1947_v0 = vunpack.i.l.bf16 %v1946_v62 }
  0xbb   :  { %650 = vst.msk [vmem:[#allocation0 + $0x104] ss:$8 sm:$0xf] %vm131_vm0, %v1942_v61   ;;  %652 = vst.msk [vmem:[#allocation0 + $0x104] ss:$8 sm:$0xf0] %vm131_vm0, %v1942_v61   ;;  %v1951_v1 = vpop.permute.xlu0 %1950 }
  0xbc   :  { %689 = vst.msk [vmem:[#allocation0 + $0x1c4] ss:$8 sm:$0xf] %vm131_vm0, %v1948_v63   ;;  %691 = vst.msk [vmem:[#allocation0 + $0x1c4] ss:$8 sm:$0xf0] %vm131_vm0, %v1948_v63   ;;  %v1953_v2 = vunpack.i.h.bf16 %v1951_v1  ;;  %v1952_v3 = vunpack.i.l.bf16 %v1951_v1 }
  0xbd   :  { %676 = vst.msk [vmem:[#allocation0 + $0x184] ss:$8 sm:$0xf] %vm131_vm0, %v1947_v0   ;;  %678 = vst.msk [vmem:[#allocation0 + $0x184] ss:$8 sm:$0xf0] %vm131_vm0, %v1947_v0   ;;  %v1956_v4 = vpop.permute.xlu1 %1955 }
  0xbe   :  { %714 = vst.msk [vmem:[#allocation0 + $0x45] ss:$8 sm:$0xf] %vm131_vm0, %v1953_v2   ;;  %716 = vst.msk [vmem:[#allocation0 + $0x45] ss:$8 sm:$0xf0] %vm131_vm0, %v1953_v2   ;;  %v1958_v5 = vunpack.i.h.bf16 %v1956_v4  ;;  %v1957_v6 = vunpack.i.l.bf16 %v1956_v4 }
  0xbf   :  { %701 = vst.msk [vmem:[#allocation0 + $0x5] ss:$8 sm:$0xf] %vm131_vm0, %v1952_v3   ;;  %703 = vst.msk [vmem:[#allocation0 + $0x5] ss:$8 sm:$0xf0] %vm131_vm0, %v1952_v3   ;;  %v1961_v7 = vpop.permute.xlu0 %1960 }
  0xc0   :  { %740 = vst.msk [vmem:[#allocation0 + $0xc5] ss:$8 sm:$0xf] %vm131_vm0, %v1958_v5   ;;  %742 = vst.msk [vmem:[#allocation0 + $0xc5] ss:$8 sm:$0xf0] %vm131_vm0, %v1958_v5   ;;  %v1963_v8 = vunpack.i.h.bf16 %v1961_v7  ;;  %v1962_v9 = vunpack.i.l.bf16 %v1961_v7 }
  0xc1   :  { %727 = vst.msk [vmem:[#allocation0 + $0x85] ss:$8 sm:$0xf] %vm131_vm0, %v1957_v6   ;;  %729 = vst.msk [vmem:[#allocation0 + $0x85] ss:$8 sm:$0xf0] %vm131_vm0, %v1957_v6   ;;  %v1966_v10 = vpop.permute.xlu1 %1965 }
  0xc2   :  { %766 = vst.msk [vmem:[#allocation0 + $0x145] ss:$8 sm:$0xf] %vm131_vm0, %v1963_v8   ;;  %768 = vst.msk [vmem:[#allocation0 + $0x145] ss:$8 sm:$0xf0] %vm131_vm0, %v1963_v8   ;;  %v1968_v11 = vunpack.i.h.bf16 %v1966_v10  ;;  %v1967_v12 = vunpack.i.l.bf16 %v1966_v10 }
  0xc3   :  { %753 = vst.msk [vmem:[#allocation0 + $0x105] ss:$8 sm:$0xf] %vm131_vm0, %v1962_v9   ;;  %755 = vst.msk [vmem:[#allocation0 + $0x105] ss:$8 sm:$0xf0] %vm131_vm0, %v1962_v9   ;;  %v1971_v13 = vpop.permute.xlu0 %1970 }
  0xc4   :  { %792 = vst.msk [vmem:[#allocation0 + $0x1c5] ss:$8 sm:$0xf] %vm131_vm0, %v1968_v11   ;;  %794 = vst.msk [vmem:[#allocation0 + $0x1c5] ss:$8 sm:$0xf0] %vm131_vm0, %v1968_v11   ;;  %v1973_v14 = vunpack.i.h.bf16 %v1971_v13  ;;  %v1972_v15 = vunpack.i.l.bf16 %v1971_v13 }
  0xc5   :  { %779 = vst.msk [vmem:[#allocation0 + $0x185] ss:$8 sm:$0xf] %vm131_vm0, %v1967_v12   ;;  %781 = vst.msk [vmem:[#allocation0 + $0x185] ss:$8 sm:$0xf0] %vm131_vm0, %v1967_v12   ;;  %v1976_v16 = vpop.permute.xlu1 %1975 }
  0xc6   :  { %817 = vst.msk [vmem:[#allocation0 + $0x46] ss:$8 sm:$0xf] %vm131_vm0, %v1973_v14   ;;  %819 = vst.msk [vmem:[#allocation0 + $0x46] ss:$8 sm:$0xf0] %vm131_vm0, %v1973_v14   ;;  %v1978_v17 = vunpack.i.h.bf16 %v1976_v16  ;;  %v1977_v18 = vunpack.i.l.bf16 %v1976_v16 }
  0xc7   :  { %804 = vst.msk [vmem:[#allocation0 + $0x6] ss:$8 sm:$0xf] %vm131_vm0, %v1972_v15   ;;  %806 = vst.msk [vmem:[#allocation0 + $0x6] ss:$8 sm:$0xf0] %vm131_vm0, %v1972_v15   ;;  %v1981_v19 = vpop.permute.xlu0 %1980 }
  0xc8   :  { %843 = vst.msk [vmem:[#allocation0 + $0xc6] ss:$8 sm:$0xf] %vm131_vm0, %v1978_v17   ;;  %845 = vst.msk [vmem:[#allocation0 + $0xc6] ss:$8 sm:$0xf0] %vm131_vm0, %v1978_v17   ;;  %v1983_v20 = vunpack.i.h.bf16 %v1981_v19  ;;  %v1982_v21 = vunpack.i.l.bf16 %v1981_v19 }
  0xc9   :  { %830 = vst.msk [vmem:[#allocation0 + $0x86] ss:$8 sm:$0xf] %vm131_vm0, %v1977_v18   ;;  %832 = vst.msk [vmem:[#allocation0 + $0x86] ss:$8 sm:$0xf0] %vm131_vm0, %v1977_v18   ;;  %v1986_v22 = vpop.permute.xlu1 %1985 }
  0xca   :  { %869 = vst.msk [vmem:[#allocation0 + $0x146] ss:$8 sm:$0xf] %vm131_vm0, %v1983_v20   ;;  %871 = vst.msk [vmem:[#allocation0 + $0x146] ss:$8 sm:$0xf0] %vm131_vm0, %v1983_v20   ;;  %v1988_v23 = vunpack.i.h.bf16 %v1986_v22  ;;  %v1987_v24 = vunpack.i.l.bf16 %v1986_v22 }
  0xcb   :  { %856 = vst.msk [vmem:[#allocation0 + $0x106] ss:$8 sm:$0xf] %vm131_vm0, %v1982_v21   ;;  %858 = vst.msk [vmem:[#allocation0 + $0x106] ss:$8 sm:$0xf0] %vm131_vm0, %v1982_v21   ;;  %v1991_v25 = vpop.permute.xlu0 %1990 }
  0xcc   :  { %895 = vst.msk [vmem:[#allocation0 + $0x1c6] ss:$8 sm:$0xf] %vm131_vm0, %v1988_v23   ;;  %897 = vst.msk [vmem:[#allocation0 + $0x1c6] ss:$8 sm:$0xf0] %vm131_vm0, %v1988_v23   ;;  %v1993_v26 = vunpack.i.h.bf16 %v1991_v25  ;;  %v1992_v27 = vunpack.i.l.bf16 %v1991_v25 }
  0xcd   :  { %882 = vst.msk [vmem:[#allocation0 + $0x186] ss:$8 sm:$0xf] %vm131_vm0, %v1987_v24   ;;  %884 = vst.msk [vmem:[#allocation0 + $0x186] ss:$8 sm:$0xf0] %vm131_vm0, %v1987_v24   ;;  %v1996_v28 = vpop.permute.xlu1 %1995 }
  0xce   :  { %920 = vst.msk [vmem:[#allocation0 + $0x47] ss:$8 sm:$0xf] %vm131_vm0, %v1993_v26   ;;  %922 = vst.msk [vmem:[#allocation0 + $0x47] ss:$8 sm:$0xf0] %vm131_vm0, %v1993_v26   ;;  %v1998_v29 = vunpack.i.h.bf16 %v1996_v28  ;;  %v1997_v30 = vunpack.i.l.bf16 %v1996_v28 }
  0xcf   :  { %907 = vst.msk [vmem:[#allocation0 + $0x7] ss:$8 sm:$0xf] %vm131_vm0, %v1992_v27   ;;  %909 = vst.msk [vmem:[#allocation0 + $0x7] ss:$8 sm:$0xf0] %vm131_vm0, %v1992_v27   ;;  %v2001_v31 = vpop.permute.xlu0 %2000 }
  0xd0   :  { %946 = vst.msk [vmem:[#allocation0 + $0xc7] ss:$8 sm:$0xf] %vm131_vm0, %v1998_v29   ;;  %948 = vst.msk [vmem:[#allocation0 + $0xc7] ss:$8 sm:$0xf0] %vm131_vm0, %v1998_v29   ;;  %v2003_v32 = vunpack.i.h.bf16 %v2001_v31  ;;  %v2002_v33 = vunpack.i.l.bf16 %v2001_v31 }
  0xd1   :  { %933 = vst.msk [vmem:[#allocation0 + $0x87] ss:$8 sm:$0xf] %vm131_vm0, %v1997_v30   ;;  %935 = vst.msk [vmem:[#allocation0 + $0x87] ss:$8 sm:$0xf0] %vm131_vm0, %v1997_v30   ;;  %v2006_v34 = vpop.permute.xlu1 %2005 }
  0xd2   :  { %972 = vst.msk [vmem:[#allocation0 + $0x147] ss:$8 sm:$0xf] %vm131_vm0, %v2003_v32   ;;  %974 = vst.msk [vmem:[#allocation0 + $0x147] ss:$8 sm:$0xf0] %vm131_vm0, %v2003_v32   ;;  %v2008_v35 = vunpack.i.h.bf16 %v2006_v34  ;;  %v2007_v36 = vunpack.i.l.bf16 %v2006_v34 }
  0xd3   :  { %959 = vst.msk [vmem:[#allocation0 + $0x107] ss:$8 sm:$0xf] %vm131_vm0, %v2002_v33   ;;  %961 = vst.msk [vmem:[#allocation0 + $0x107] ss:$8 sm:$0xf0] %vm131_vm0, %v2002_v33  }
  0xd4   :  { %998 = vst.msk [vmem:[#allocation0 + $0x1c7] ss:$8 sm:$0xf] %vm131_vm0, %v2008_v35   ;;  %1000 = vst.msk [vmem:[#allocation0 + $0x1c7] ss:$8 sm:$0xf0] %vm131_vm0, %v2008_v35  }
  0xd5   :  { %985 = vst.msk [vmem:[#allocation0 + $0x187] ss:$8 sm:$0xf] %vm131_vm0, %v2007_v36   ;;  %987 = vst.msk [vmem:[#allocation0 + $0x187] ss:$8 sm:$0xf0] %vm131_vm0, %v2007_v36  }
  0xd6   :  { %v1006_v37 = vld [vmem:[#allocation0] sm:$0xff]  ;;  %v1012_v38 = vld [vmem:[#allocation0 + $0x8] sm:$0xff]  ;;  %v1019_v39 = vld [vmem:[#allocation0 + $0x10] sm:$0xff] }
  0xd7   :  { %v1671_v40 = vpack.c.bf16 %v1012_v38, %v1006_v37  ;;  %v1027_v41 = vld [vmem:[#allocation0 + $0x18] sm:$0xff]  ;;  %v1035_v42 = vld [vmem:[#allocation0 + $0x20] sm:$0xff]  ;;  %v1043_v43 = vld [vmem:[#allocation0 + $0x28] sm:$0xff] }
  0xd8   :  { %v1676_v44 = vpack.c.bf16 %v1027_v41, %v1019_v39  ;;  %v1051_v45 = vld [vmem:[#allocation0 + $0x30] sm:$0xff]  ;;  %v1059_v46 = vld [vmem:[#allocation0 + $0x38] sm:$0xff]  ;;  %v1067_v47 = vld [vmem:[#allocation0 + $0x40] sm:$0xff]  ;;  %v1681_v48 = vpack.c.bf16 %v1043_v43, %v1035_v42 }
  0xd9   :  { %1672 = vst [vmem:[%s2378_s1] sm:$0xff] %v1671_v40   ;;  %v1075_v49 = vld [vmem:[#allocation0 + $0x48] sm:$0xff]  ;;  %v1083_v50 = vld [vmem:[#allocation0 + $0x50] sm:$0xff]  ;;  %v1091_v51 = vld [vmem:[#allocation0 + $0x58] sm:$0xff]  ;;  %v1686_v52 = vpack.c.bf16 %v1059_v46, %v1051_v45 }
  0xda   :  { %1831 = vst [vmem:[%s2378_s1 + $0x8] sm:$0xff] %v1676_v44   ;;  %v1099_v53 = vld [vmem:[#allocation0 + $0x60] sm:$0xff]  ;;  %v1107_v54 = vld [vmem:[#allocation0 + $0x68] sm:$0xff]  ;;  %v1115_v55 = vld [vmem:[#allocation0 + $0x70] sm:$0xff]  ;;  %v1691_v56 = vpack.c.bf16 %v1075_v49, %v1067_v47  ;;  %v1696_v57 = vpack.c.bf16 %v1091_v51, %v1083_v50 }
  0xdb   :  { %1832 = vst [vmem:[%s2378_s1 + $0x10] sm:$0xff] %v1681_v48   ;;  %v1123_v58 = vld [vmem:[#allocation0 + $0x78] sm:$0xff]  ;;  %v1131_v59 = vld [vmem:[#allocation0 + $0x80] sm:$0xff]  ;;  %v1139_v60 = vld [vmem:[#allocation0 + $0x88] sm:$0xff]  ;;  %v1701_v61 = vpack.c.bf16 %v1107_v54, %v1099_v53 }
  0xdc   :  { %1833 = vst [vmem:[%s2378_s1 + $0x18] sm:$0xff] %v1686_v52   ;;  %v1711_v62 = vpack.c.bf16 %v1139_v60, %v1131_v59  ;;  %v1147_v63 = vld [vmem:[#allocation0 + $0x90] sm:$0xff]  ;;  %v1155_v0 = vld [vmem:[#allocation0 + $0x98] sm:$0xff]  ;;  %v1163_v1 = vld [vmem:[#allocation0 + $0xa0] sm:$0xff]  ;;  %v1706_v2 = vpack.c.bf16 %v1123_v58, %v1115_v55 }
  0xdd   :  { %1834 = vst [vmem:[%s2378_s1 + $0x20] sm:$0xff] %v1691_v56   ;;  %1835 = vst [vmem:[%s2378_s1 + $0x28] sm:$0xff] %v1696_v57   ;;  %v1716_v3 = vpack.c.bf16 %v1155_v0, %v1147_v63  ;;  %v1171_v4 = vld [vmem:[#allocation0 + $0xa8] sm:$0xff]  ;;  %v1179_v5 = vld [vmem:[#allocation0 + $0xb0] sm:$0xff] }
  0xde   :  { %v1187_v6 = vld [vmem:[#allocation0 + $0xb8] sm:$0xff]  ;;  %1836 = vst [vmem:[%s2378_s1 + $0x30] sm:$0xff] %v1701_v61   ;;  %1838 = vst [vmem:[%s2378_s1 + $0x40] sm:$0xff] %v1711_v62   ;;  %v1721_v7 = vpack.c.bf16 %v1171_v4, %v1163_v1  ;;  %v1195_v9 = vld [vmem:[#allocation0 + $0xc0] sm:$0xff] }
  0xdf   :  { %v1726_v8 = vpack.c.bf16 %v1187_v6, %v1179_v5  ;;  %v1203_v10 = vld [vmem:[#allocation0 + $0xc8] sm:$0xff]  ;;  %v1211_v11 = vld [vmem:[#allocation0 + $0xd0] sm:$0xff]  ;;  %1837 = vst [vmem:[%s2378_s1 + $0x38] sm:$0xff] %v1706_v2   ;;  %1839 = vst [vmem:[%s2378_s1 + $0x48] sm:$0xff] %v1716_v3  }
  0xe0   :  { %v1731_v12 = vpack.c.bf16 %v1203_v10, %v1195_v9  ;;  %v1219_v13 = vld [vmem:[#allocation0 + $0xd8] sm:$0xff]  ;;  %v1227_v14 = vld [vmem:[#allocation0 + $0xe0] sm:$0xff]  ;;  %v1235_v15 = vld [vmem:[#allocation0 + $0xe8] sm:$0xff]  ;;  %1840 = vst [vmem:[%s2378_s1 + $0x50] sm:$0xff] %v1721_v7  }
  0xe1   :  { %1841 = vst [vmem:[%s2378_s1 + $0x58] sm:$0xff] %v1726_v8   ;;  %v1736_v16 = vpack.c.bf16 %v1219_v13, %v1211_v11  ;;  %v1243_v17 = vld [vmem:[#allocation0 + $0xf0] sm:$0xff]  ;;  %v1251_v18 = vld [vmem:[#allocation0 + $0xf8] sm:$0xff]  ;;  %v1259_v19 = vld [vmem:[#allocation0 + $0x100] sm:$0xff]  ;;  %v1741_v20 = vpack.c.bf16 %v1235_v15, %v1227_v14 }
  0xe2   :  { %1842 = vst [vmem:[%s2378_s1 + $0x60] sm:$0xff] %v1731_v12   ;;  %v1267_v21 = vld [vmem:[#allocation0 + $0x108] sm:$0xff]  ;;  %v1275_v22 = vld [vmem:[#allocation0 + $0x110] sm:$0xff]  ;;  %v1283_v23 = vld [vmem:[#allocation0 + $0x118] sm:$0xff]  ;;  %v1746_v24 = vpack.c.bf16 %v1251_v18, %v1243_v17 }
  0xe3   :  { %1843 = vst [vmem:[%s2378_s1 + $0x68] sm:$0xff] %v1736_v16   ;;  %v1751_v25 = vpack.c.bf16 %v1267_v21, %v1259_v19  ;;  %v1756_v26 = vpack.c.bf16 %v1283_v23, %v1275_v22  ;;  %v1291_v27 = vld [vmem:[#allocation0 + $0x120] sm:$0xff]  ;;  %v1299_v28 = vld [vmem:[#allocation0 + $0x128] sm:$0xff]  ;;  %v1307_v29 = vld [vmem:[#allocation0 + $0x130] sm:$0xff] }
  0xe4   :  { %1844 = vst [vmem:[%s2378_s1 + $0x70] sm:$0xff] %v1741_v20   ;;  %v1761_v30 = vpack.c.bf16 %v1299_v28, %v1291_v27  ;;  %v1315_v31 = vld [vmem:[#allocation0 + $0x138] sm:$0xff]  ;;  %v1323_v32 = vld [vmem:[#allocation0 + $0x140] sm:$0xff]  ;;  %v1331_v33 = vld [vmem:[#allocation0 + $0x148] sm:$0xff] }
  0xe5   :  { %1845 = vst [vmem:[%s2378_s1 + $0x78] sm:$0xff] %v1746_v24   ;;  %1846 = vst [vmem:[%s2378_s1 + $0x80] sm:$0xff] %v1751_v25   ;;  %v1766_v34 = vpack.c.bf16 %v1315_v31, %v1307_v29  ;;  %v1771_v35 = vpack.c.bf16 %v1331_v33, %v1323_v32  ;;  %v1339_v36 = vld [vmem:[#allocation0 + $0x150] sm:$0xff]  ;;  %v1347_v37 = vld [vmem:[#allocation0 + $0x158] sm:$0xff] }
  0xe6   :  { %1847 = vst [vmem:[%s2378_s1 + $0x88] sm:$0xff] %v1756_v26   ;;  %v1355_v38 = vld [vmem:[#allocation0 + $0x160] sm:$0xff]  ;;  %1848 = vst [vmem:[%s2378_s1 + $0x90] sm:$0xff] %v1761_v30   ;;  %v1776_v39 = vpack.c.bf16 %v1347_v37, %v1339_v36  ;;  %v1363_v40 = vld [vmem:[#allocation0 + $0x168] sm:$0xff] }
  0xe7   :  { %v1371_v41 = vld [vmem:[#allocation0 + $0x170] sm:$0xff]  ;;  %v1379_v42 = vld [vmem:[#allocation0 + $0x178] sm:$0xff]  ;;  %1849 = vst [vmem:[%s2378_s1 + $0x98] sm:$0xff] %v1766_v34   ;;  %1850 = vst [vmem:[%s2378_s1 + $0xa0] sm:$0xff] %v1771_v35   ;;  %v1781_v43 = vpack.c.bf16 %v1363_v40, %v1355_v38 }
  0xe8   :  { %v1786_v44 = vpack.c.bf16 %v1379_v42, %v1371_v41  ;;  %v1387_v45 = vld [vmem:[#allocation0 + $0x180] sm:$0xff]  ;;  %v1395_v46 = vld [vmem:[#allocation0 + $0x188] sm:$0xff]  ;;  %v1403_v47 = vld [vmem:[#allocation0 + $0x190] sm:$0xff]  ;;  %1851 = vst [vmem:[%s2378_s1 + $0xa8] sm:$0xff] %v1776_v39  }
  0xe9   :  { %v1791_v48 = vpack.c.bf16 %v1395_v46, %v1387_v45  ;;  %v1411_v49 = vld [vmem:[#allocation0 + $0x198] sm:$0xff]  ;;  %v1419_v50 = vld [vmem:[#allocation0 + $0x1a0] sm:$0xff]  ;;  %v1427_v51 = vld [vmem:[#allocation0 + $0x1a8] sm:$0xff]  ;;  %1852 = vst [vmem:[%s2378_s1 + $0xb0] sm:$0xff] %v1781_v43  }
  0xea   :  { %1853 = vst [vmem:[%s2378_s1 + $0xb8] sm:$0xff] %v1786_v44   ;;  %v1796_v52 = vpack.c.bf16 %v1411_v49, %v1403_v47  ;;  %v1801_v53 = vpack.c.bf16 %v1427_v51, %v1419_v50  ;;  %v1435_v54 = vld [vmem:[#allocation0 + $0x1b0] sm:$0xff]  ;;  %v1443_v55 = vld [vmem:[#allocation0 + $0x1b8] sm:$0xff]  ;;  %v1451_v56 = vld [vmem:[#allocation0 + $0x1c0] sm:$0xff] }
  0xeb   :  { %1854 = vst [vmem:[%s2378_s1 + $0xc0] sm:$0xff] %v1791_v48   ;;  %v1806_v57 = vpack.c.bf16 %v1443_v55, %v1435_v54  ;;  %v1459_v58 = vld [vmem:[#allocation0 + $0x1c8] sm:$0xff]  ;;  %v1467_v59 = vld [vmem:[#allocation0 + $0x1d0] sm:$0xff]  ;;  %v1475_v60 = vld [vmem:[#allocation0 + $0x1d8] sm:$0xff] }
  0xec   :  { %1855 = vst [vmem:[%s2378_s1 + $0xc8] sm:$0xff] %v1796_v52   ;;  %1856 = vst [vmem:[%s2378_s1 + $0xd0] sm:$0xff] %v1801_v53   ;;  %v1811_v61 = vpack.c.bf16 %v1459_v58, %v1451_v56  ;;  %v1816_v62 = vpack.c.bf16 %v1475_v60, %v1467_v59  ;;  %v1483_v63 = vld [vmem:[#allocation0 + $0x1e0] sm:$0xff]  ;;  %v1491_v0 = vld [vmem:[#allocation0 + $0x1e8] sm:$0xff] }
  0xed   :  { %v1499_v1 = vld [vmem:[#allocation0 + $0x1f0] sm:$0xff]  ;;  %1857 = vst [vmem:[%s2378_s1 + $0xd8] sm:$0xff] %v1806_v57   ;;  %v1821_v2 = vpack.c.bf16 %v1491_v0, %v1483_v63  ;;  %v1507_v3 = vld [vmem:[#allocation0 + $0x1f8] sm:$0xff] }
  0xee   :  { %1858 = vst [vmem:[%s2378_s1 + $0xe0] sm:$0xff] %v1811_v61   ;;  %1859 = vst [vmem:[%s2378_s1 + $0xe8] sm:$0xff] %v1816_v62   ;;  %v1826_v4 = vpack.c.bf16 %v1507_v3, %v1499_v1 }
  0xef   :  { %1860 = vst [vmem:[%s2378_s1 + $0xf0] sm:$0xff] %v1821_v2  }
  0xf0   :  { %1861 = vst [vmem:[%s2378_s1 + $0xf8] sm:$0xff] %v1826_v4  }

// kernel: segmentation_model_forward.10
= control target key start
LH: loop header
LB: loop body
LE: loop exit
PB: predicated region body
PF: predicated region fallthrough
CT: control target
= control target key end

     0   :  { %s664_s12 = smov 0   ;;  %s666_s13 = smov 0   ;;  %s764_s0 = inlined_call_operand.vmem [shape: bf16[2,36,512], index: 0, kind: input, shape index: {}]   ;;  %s765_s1 = inlined_call_operand.vmem [shape: bf16[2,8,36], index: 1, kind: input, shape index: {}]   ;;  %s766_s2 = inlined_call_operand.vmem [shape: f32[2,8,1], index: 2, kind: input, shape index: {}]   ;;  %s767_s3 = inlined_call_operand.vmem [shape: f32[2,8,512], index: 3, kind: output, shape index: {}]  }
   0x1   :  { %s668_s14 = smov 0   ;;  %s670_s15 = smov 0  }
   0x2   :  { %s672_s16 = smov 0   ;;  %s674_s17 = smov 0  }
   0x3   :  { %s676_s18 = smov 0  }
   0x4 LB: > { %s22_s19 = sadd.s32 1, %s633_s16  ;;  %s25_s20 = sadd.s32 1, %s637_s17  ;;  %s641_s18 = sphi %s676_s18, %s13_s18   ;;  %s637_s17 = sphi %s674_s17, %s773_s17   ;;  %s633_s16 = sphi %s672_s16, %s772_s16   ;;  %s629_s15 = sphi %s670_s15, %s771_s15   ;;  %s625_s14 = sphi %s668_s14, %s770_s14   ;;  %s621_s13 = sphi %s666_s13, %s769_s13   ;;  %s617_s12 = sphi %s664_s12, %s768_s12  }
   0x5   : > { %p23_p0 = scmp.ge.s32.totalorder %s22_s19, 2  ;;  %p41_p1 = scmp.ne.s32.totalorder %s621_s13, %s617_s12 }
   0x6   : > { %p42_p2 = scmp.eq.s32.totalorder %s641_s18, 0  ;;  %s34_s24 = sadd.s32 1, %s621_s13 }
   0x7   : > { %s775_s19 = smov (%p23_p0, %s22_s19), 0  ;;  %s777_s20 = smov (!%p23_p0, %s25_s20), %s637_s17 }
   0x8   : > { %p43_p3 = por %p42_p2, %p41_p1  ;;  %p27_p4 = scmp.ge.s32.totalorder %s777_s20, 2 }
   0x9   : > { %s30_s21 = ssub.s32 %s633_s16, %s775_s19  ;;  %p499_p6 = scmp.ge.s32.totalorder %s641_s18, 4 }
   0xa   : > { %s779_s20 = smov (%p27_p4, %s777_s20), 0 }
   0xb   : > { %s29_s22 = ssub.s32 %s637_s17, %s779_s20  ;;  %147 = sbr.rel (%p499_p6) target bundleno = 27 (0x1b), region = 16 }
   0xc   : > { %s31_s23 = sor.u32 %s30_s21, %s29_s22 }
   0xd   : > { %p32_p5 = scmp.eq.s32.totalorder %s31_s23, 0 }
   0xf   : > { %s715_s25 = scalar_select %p32_p5, %s621_s13, %s34_s24  }
  0x10   : > { %150 = sbr.rel (!%p43_p3) target bundleno = 27 (0x1b), region = 20  ;;  %s152_s26 = sand.u32 (%p43_p3), 1, %s621_s13  }
  0x11   : > { %s518_s27 = smul.u32 (%p43_p3), 40, %s152_s26  ;;  %s500_s28 = sshll.u32 (%p43_p3), %s633_s16, 1 }
  0x12   : > { %s519_s29 = smul.u32 (%p43_p3), 20, %s637_s17 }
  0x13   : > { %s154_s8 = scalar_lea.vmem (%p43_p3), [#allocation2], %s518_s27 }
  0x14   : > { %s157_s30 = sadd.s32 (%p43_p3), %s519_s29, %s500_s28 }
  0x15   : > { %s501_s4 = sshll.u32 %s157_s30, 2 }
  0x16   : > { %s159_s7 = scalar_lea.vmem %s764_s0, %s501_s4 }
  0x17   : > { %v196_v0 = vld [vmem:[%s159_s7] sm:$0xff]  ;;  %v198_v1 = vld [vmem:[%s159_s7 + $0x10] sm:$0xff] }
  0x18   : > { %v200_v2 = vld [vmem:[%s159_s7 + $0x20] sm:$0xff]  ;;  %197 = vst [vmem:[%s154_s8] sm:$0xff] %v196_v0  ;;  %199 = vst [vmem:[%s154_s8 + $0x8] sm:$0xff] %v198_v1  ;;  %v202_v3 = vld [vmem:[%s159_s7 + $0x30] sm:$0xff] }
  0x19   : > { %201 = vst [vmem:[%s154_s8 + $0x10] sm:$0xff] %v200_v2  ;;  %v204_v4 = vld [vmem:[%s159_s7 + $0x40] sm:$0xff]  ;;  %203 = vst [vmem:[%s154_s8 + $0x18] sm:$0xff] %v202_v3 }
  0x1a   : > { %205 = vst [vmem:[%s154_s8 + $0x20] sm:$0xff] %v204_v4 }
  0x1b PF: > { %p502_p7 = scmp.ge.s32.totalorder %s641_s18, 1  ;;  %p224_p8 = scmp.lt.s32.totalorder %s641_s18, 5 }
  0x1d   : > { %p225_p9 = pnand %p502_p7, %p224_p8 }
  0x1e   : > { %s231_s9 = sand.u32 (!%p225_p9), 1, %s617_s12   ;;  %p267_p10 = scmp.lt.s32.totalorder (!%p225_p9), %s629_s15, 1 }
  0x1f   : > { %228 = sbr.rel (%p225_p9) target bundleno = 251 (0xfb), region = 66  ;;  %s505_s29 = sshll.u32 (!%p225_p9), %s625_s14, 1 }
  0x20   : > { %s520_s10 = smul.u32 (!%p225_p9), 40, %s231_s9  ;;  %p278_p11 = scmp.lt.s32.totalorder (!%p225_p9), %s505_s29, 3 }
  0x22   : > { %s233_s11 = scalar_lea.vmem (!%p225_p9), [#allocation2], %s520_s10 }
  0x24   : > { %v643_v5 = vmov 0   ;;  %s781_s15 = smov (!%p267_p10, %s629_s15), 1  ;;  %v291_v6 = vld [vmem:[%s233_s11 + $0x20] sm:$0x33]  ;;  %vm327_vm0 = vcmask 1041408   ;;  %vm323_vm1 = vcmask 293888  }
  0x25   : > { %366 = vmatprep.mubr.bf16.mxu0 %v643_v5  ;;  %578 = vset.pattern.permute.xlu0 %v643_v5  ;;  %s504_s21 = sshll.u32 %s781_s15, 3  ;;  %v513_v7 = vcombine.high %v291_v6, %v291_v6  ;;  %v512_v8 = vcombine.low %v291_v6, %v291_v6  ;;  %v581_v9 = vld [vmem:[%s233_s11 + $0x14] ss:$8 sps:$4 sm:$0xff]   ;;  %v583_v12 = vld [vmem:[%s233_s11 + $0x10] ss:$8 sps:$4 sm:$0xff]   ;;  %s503_s24 = sshll.u32 %s781_s15, 2 }
  0x26   : > { %s274_s12 = scalar_lea.vmem %s766_s2, %s504_s21  ;;  %v584_v13 = vld [vmem:[%s233_s11 + $0x4] ss:$8 sps:$4 sm:$0xff]   ;;  %v586_v14 = vld [vmem:[%s233_s11] ss:$8 sps:$4 sm:$0xff]   ;;  %s270_s28 = scalar_lea.vmem %s765_s1, %s503_s24 }
  0x27   : > { %514 = vmatprep.subr.msk.bf16.mxu0 %vm327_vm0, %v513_v7  ;;  %v329_v10 = vsel %vm327_vm0, %v512_v8, 0  ;;  %v292_v11 = vld [vmem:[%s274_s12] sm:$0xff]  ;;  %s783_s29 = smov (!%p278_p11, %s505_s29), 3 }
  0x28   : > { %345 = vmatpush1.bf16.msra.mxu0 %v329_v10  ;;  %295 = vperm.xlu0 %578, %v292_v11   ;;  %v286_v15 = vld [vmem:[%s270_s28] sm:$0xf]  ;;  %s281_s30 = sadd.s32 %s503_s24, %s783_s29 }
  0x29   : > { %346 = vmatprep.subr.bf16.mxu0 %v581_v9  ;;  %s507_s4 = sshll.u32 %s281_s30, 3 }
  0x2a   : > { %s283_s6 = scalar_lea.vmem %s767_s3, %s507_s4 }
  0x2c   : > { %347 = vmatpush1.bf16.msra.mxu0 %v583_v12 }
  0x2d   : > { %348 = vmatprep.subr.bf16.mxu0 %v584_v13 }
  0x30   : > { %349 = vmatpush1.bf16.msra.mxu0 %v586_v14 }
  0x33   : > { %515 = vmatmul.mubr.msk.bf16.vlgmr.msra.gmra.mxu0 %vm323_vm1, %v286_v15 }
  0xa3   : > { %v296_v16 = vpop.permute.xlu0 %295 }
  0xf3   : > { %v368_v17 = vpop.f32.mrf.mxu0 }
  0xf4   : > { %v369_v18 = vadd.f32 %v368_v17, %v296_v16 }
  0xf5   : > { %v370_v19 = vpop.f32.mrf.mxu0 }
  0xf6   : > { %v375_v20 = vmax.f32 %v369_v18, 0.0  ;;  %v371_v21 = vadd.f32 %v370_v19, %v296_v16 }
  0xf7   : > { %v372_v22 = vpop.f32.mrf.mxu0 }
  0xf8   : > { %377 = vst [vmem:[%s283_s6] sm:$0xff] %v375_v20  ;;  %v376_v23 = vmax.f32 %v371_v21, 0.0 }
  0xf9   : > { %v373_v24 = vpop.f32.mrf.mxu0 }
  0xfa   : > { %378 = vst [vmem:[%s283_s6 + $0x8] sm:$0xff] %v376_v23 }
  0xfb PF: > { %s13_s18 = sadd.s32 1, %s641_s18   ;;  %s768_s12 = smov %s621_s13 }
  0xfc   : > { %p10_p12 = scmp.ge.s32.totalorder %s13_s18, 6   ;;  %s769_s13 = smov %s715_s25 }
  0xfd   : > { %s770_s14 = smov %s633_s16  ;;  %s771_s15 = smov %s637_s17 }
  0xfe   : > { %s772_s16 = smov %s775_s19  ;;  %s773_s17 = smov %s779_s20 }
  0xff   :  { %12 = sbr.rel (!%p10_p12) target bundleno = 4 (0x4), region = 111 }

// kernel: segmentation_model_forward.11
= control target key start
LH: loop header
LB: loop body
LE: loop exit
PB: predicated region body
PF: predicated region fallthrough
CT: control target
= control target key end

     0   :  { %s748_s12 = smov 0   ;;  %s750_s13 = smov 0   ;;  %s856_s0 = inlined_call_operand.vmem [shape: bf16[2,72,512], index: 0, kind: input, shape index: {}]   ;;  %s857_s1 = inlined_call_operand.vmem [shape: bf16[2,16,72], index: 1, kind: input, shape index: {}]   ;;  %s858_s2 = inlined_call_operand.vmem [shape: f32[2,16,1], index: 2, kind: input, shape index: {}]   ;;  %s859_s3 = inlined_call_operand.vmem [shape: f32[2,16,512], index: 3, kind: output, shape index: {}]  }
   0x1   :  { %s752_s14 = smov 0   ;;  %s754_s15 = smov 0  }
   0x2   :  { %s756_s16 = smov 0   ;;  %s758_s17 = smov 0  }
   0x3   :  { %s760_s18 = smov 0  }
   0x4 LB: > { %s22_s19 = sadd.s32 1, %s717_s16  ;;  %s25_s20 = sadd.s32 1, %s721_s17  ;;  %s725_s18 = sphi %s760_s18, %s13_s18   ;;  %s721_s17 = sphi %s758_s17, %s866_s17   ;;  %s717_s16 = sphi %s756_s16, %s865_s16   ;;  %s713_s15 = sphi %s754_s15, %s864_s15   ;;  %s709_s14 = sphi %s752_s14, %s863_s14   ;;  %s705_s13 = sphi %s750_s13, %s862_s13   ;;  %s701_s12 = sphi %s748_s12, %s861_s12  }
   0x5   : > { %p23_p0 = scmp.ge.s32.totalorder %s22_s19, 2  ;;  %s562_s21 = sadd.s32 4294967295, %s725_s18  }
   0x6   : > { %p41_p1 = scmp.ne.s32.totalorder %s705_s13, %s701_s12  ;;  %p42_p2 = scmp.eq.s32.totalorder %s725_s18, 0 }
   0x7   : > { %s868_s19 = smov (%p23_p0, %s22_s19), 0  ;;  %s870_s20 = smov (!%p23_p0, %s25_s20), %s721_s17 }
   0x8   : > { %p27_p3 = scmp.ge.s32.totalorder %s870_s20, 2  ;;  %p125_p4 = scmp.eq.s32.totalorder %s562_s21, 3 }
   0x9   : > { %s30_s22 = ssub.s32 %s717_s16, %s868_s19  ;;  %p43_p5 = por %p42_p2, %p41_p1 }
   0xa   : > { %s872_s20 = smov (%p27_p3, %s870_s20), 0  ;;  %p796_p6 = por %p125_p4, %p41_p1 }
   0xb   : > { %s29_s24 = ssub.s32 %s721_s17, %s872_s20  ;;  %s34_s26 = sadd.s32 1, %s705_s13 }
   0xc   : > { %s31_s25 = sor.u32 %s30_s22, %s29_s24  ;;  %p565_p8 = scmp.ge.s32.totalorder %s725_s18, 4 }
   0xd   : > { %p32_p7 = scmp.eq.s32.totalorder %s31_s25, 0 }
   0xe   : > { %147 = sbr.rel (%p565_p8) target bundleno = 32 (0x20), region = 16 }
   0xf   : > { %s804_s27 = scalar_select %p32_p7, %s705_s13, %s34_s26  }
  0x13   : > { %150 = sbr.rel (!%p43_p5) target bundleno = 32 (0x20), region = 20  ;;  %s152_s28 = sand.u32 (%p43_p5), 1, %s705_s13  }
  0x14   : > { %s595_s29 = smul.u32 (%p43_p5), 72, %s152_s28  ;;  %s566_s30 = sshll.u32 (%p43_p5), %s717_s16, 1 }
  0x15   : > { %s596_s4 = smul.u32 (%p43_p5), 36, %s721_s17 }
  0x16   : > { %s154_s10 = scalar_lea.vmem (%p43_p5), [#allocation2], %s595_s29 }
  0x17   : > { %s157_s5 = sadd.s32 (%p43_p5), %s596_s4, %s566_s30 }
  0x18   : > { %s567_s6 = sshll.u32 %s157_s5, 2 }
  0x19   : > { %s159_s9 = scalar_lea.vmem %s856_s0, %s567_s6 }
  0x1a   : > { %v204_v0 = vld [vmem:[%s159_s9] sm:$0xff]  ;;  %v206_v1 = vld [vmem:[%s159_s9 + $0x10] sm:$0xff] }
  0x1b   : > { %v208_v2 = vld [vmem:[%s159_s9 + $0x20] sm:$0xff]  ;;  %205 = vst [vmem:[%s154_s10] sm:$0xff] %v204_v0  ;;  %207 = vst [vmem:[%s154_s10 + $0x8] sm:$0xff] %v206_v1  ;;  %v210_v3 = vld [vmem:[%s159_s9 + $0x30] sm:$0xff] }
  0x1c   : > { %209 = vst [vmem:[%s154_s10 + $0x10] sm:$0xff] %v208_v2  ;;  %v212_v4 = vld [vmem:[%s159_s9 + $0x40] sm:$0xff]  ;;  %v214_v5 = vld [vmem:[%s159_s9 + $0x50] sm:$0xff]  ;;  %211 = vst [vmem:[%s154_s10 + $0x18] sm:$0xff] %v210_v3 }
  0x1d   : > { %213 = vst [vmem:[%s154_s10 + $0x20] sm:$0xff] %v212_v4  ;;  %215 = vst [vmem:[%s154_s10 + $0x28] sm:$0xff] %v214_v5  ;;  %v216_v6 = vld [vmem:[%s159_s9 + $0x60] sm:$0xff]  ;;  %v218_v7 = vld [vmem:[%s159_s9 + $0x70] sm:$0xff] }
  0x1e   : > { %v220_v8 = vld [vmem:[%s159_s9 + $0x80] sm:$0xff]  ;;  %217 = vst [vmem:[%s154_s10 + $0x30] sm:$0xff] %v216_v6  ;;  %219 = vst [vmem:[%s154_s10 + $0x38] sm:$0xff] %v218_v7 }
  0x1f   : > { %221 = vst [vmem:[%s154_s10 + $0x40] sm:$0xff] %v220_v8 }
  0x20 PF: > { %p568_p9 = scmp.ge.s32.totalorder %s725_s18, 1  ;;  %p242_p10 = scmp.lt.s32.totalorder %s725_s18, 5 }
  0x22   : > { %p243_p11 = pnand %p568_p9, %p242_p10 }
  0x23   : > { %s249_s11 = sand.u32 (!%p243_p11), 1, %s701_s12   ;;  %p282_p12 = scmp.lt.s32.totalorder (!%p243_p11), %s713_s15, 1 }
  0x24   : > { %246 = sbr.rel (%p243_p11) target bundleno = 276 (0x114), region = 66  ;;  %s569_s7 = sshll.u32 (!%p243_p11), %s249_s11, 5 }
  0x25   : > { %s597_s21 = smul.u32 (!%p243_p11), 72, %s249_s11  ;;  %s280_s8 = scalar_lea.vmem (!%p243_p11), [#allocation3], %s569_s7 }
  0x27   : > { %s251_s24 = scalar_lea.vmem (!%p243_p11), [#allocation2], %s597_s21 }
  0x29   : > { %v727_v9 = vmov 0   ;;  %s283_s22 = scalar_select %p282_p12, %s713_s15, 1  ;;  %v304_v10 = vld [vmem:[%s251_s24 + $0x40] sm:$0xff]  ;;  %vm371_vm0 = vcmask 1043456   ;;  %v658_v13 = vld [vmem:[%s251_s24 + $0x34] ss:$8 sps:$4 sm:$0xff]  }
  0x2a   : > { %410 = vmatprep.mubr.bf16.mxu0 %v727_v9  ;;  %655 = vset.pattern.permute.xlu0 %v727_v9  ;;  %v584_v11 = vcombine.high %v304_v10, %v304_v10  ;;  %v583_v12 = vcombine.low %v304_v10, %v304_v10  ;;  %v660_v15 = vld [vmem:[%s251_s24 + $0x30] ss:$8 sps:$4 sm:$0xff]   ;;  %v661_v16 = vld [vmem:[%s251_s24 + $0x24] ss:$8 sps:$4 sm:$0xff]   ;;  %v663_v18 = vld [vmem:[%s251_s24 + $0x20] ss:$8 sps:$4 sm:$0xff]  }
  0x2b   : > { %s594_s25 = sshll.u32 %s283_s22, 4  ;;  %s593_s26 = sshll.u32 %s283_s22, 3  ;;  %v664_v20 = vld [vmem:[%s251_s24 + $0x14] ss:$8 sps:$4 sm:$0xff]   ;;  %v666_v21 = vld [vmem:[%s251_s24 + $0x10] ss:$8 sps:$4 sm:$0xff]  }
  0x2c   : > { %585 = vmatprep.subr.msk.bf16.mxu0 %vm371_vm0, %v584_v11  ;;  %v373_v14 = vsel %vm371_vm0, %v583_v12, 0  ;;  %s291_s30 = scalar_lea.vmem %s858_s2, %s594_s25  ;;  %s286_s6 = scalar_lea.vmem %s857_s1, %s593_s26  ;;  %v667_v22 = vld [vmem:[%s251_s24 + $0x4] ss:$8 sps:$4 sm:$0xff]   ;;  %v669_v23 = vld [vmem:[%s251_s24] ss:$8 sps:$4 sm:$0xff]   ;;  %vm367_vm1 = vcmask 588800  }
  0x2d   : > { %385 = vmatpush1.bf16.msra.mxu0 %v373_v14  ;;  %v305_v17 = vld [vmem:[%s291_s30] sm:$0xff]  ;;  %v306_v19 = vld [vmem:[%s291_s30 + $0x8] sm:$0xff]  ;;  %s588_s12 = sshll.u32 (%p796_p6), %s709_s14, 1  ;;  %s589_s9 = sshll.u32 (%p796_p6), %s713_s15, 3 }
  0x2e   : > { %386 = vmatprep.subr.bf16.mxu0 %v658_v13  ;;  %309 = vperm.xlu0 %655, %v305_v17   ;;  %v670_v24 = vld [vmem:[%s286_s6] sm:$0xff]   ;;  %s438_s10 = sadd.s32 (%p796_p6), %s589_s9, %s588_s12 }
  0x2f   : > { %s590_s11 = sshll.u32 (%p796_p6), %s438_s10, 3 }
  0x30   : > { %s440_s24 = scalar_lea.vmem (%p796_p6), %s859_s3, %s590_s11 }
  0x31   : > { %387 = vmatpush1.bf16.msra.mxu0 %v660_v15 }
  0x32   : > { %388 = vmatprep.subr.bf16.mxu0 %v661_v16  ;;  %314 = vperm.xlu0 %655, %v306_v19  }
  0x35   : > { %389 = vmatpush1.bf16.msra.mxu0 %v663_v18 }
  0x36   : > { %390 = vmatprep.subr.bf16.mxu0 %v664_v20 }
  0x39   : > { %391 = vmatpush1.bf16.msra.mxu0 %v666_v21 }
  0x3a   : > { %392 = vmatprep.subr.bf16.mxu0 %v667_v22 }
  0x3d   : > { %393 = vmatpush1.bf16.msra.mxu0 %v669_v23 }
  0x40   : > { %586 = vmatmul.mubr.msk.bf16.vlgmr.msra.gmra.mxu0 %vm367_vm1, %v670_v24 }
  0xa9   : > { %v310_v25 = vpop.permute.xlu0 %309 }
  0xad   : > { %v315_v31 = vpop.permute.xlu0 %314 }
 0x100   : > { %v412_v26 = vpop.f32.mrf.mxu0 }
 0x101   : > { %v413_v27 = vadd.f32 %v412_v26, %v310_v25 }
 0x102   : > { %v414_v28 = vpop.f32.mrf.mxu0 }
 0x103   : > { %v421_v29 = vmax.f32 %v413_v27, 0.0  ;;  %v415_v30 = vadd.f32 %v414_v28, %v310_v25 }
 0x104   : > { %v416_v32 = vpop.f32.mrf.mxu0 }
 0x105   : > { %425 = vst [vmem:[%s280_s8] sm:$0xff] %v421_v29  ;;  %v422_v33 = vmax.f32 %v415_v30, 0.0  ;;  %v417_v34 = vadd.f32 %v416_v32, %v315_v31 }
 0x106   : > { %v418_v35 = vpop.f32.mrf.mxu0 }
 0x107   : > { %426 = vst [vmem:[%s280_s8 + $0x8] sm:$0xff] %v422_v33  ;;  %v423_v36 = vmax.f32 %v417_v34, 0.0  ;;  %v419_v37 = vadd.f32 %v418_v35, %v315_v31  ;;  %435 = sbr.rel (!%p796_p6) target bundleno = 276 (0x114), region = 74 }
 0x109   : > { %427 = vst [vmem:[%s280_s8 + $0x10] sm:$0xff] %v423_v36  ;;  %v424_v38 = vmax.f32 %v419_v37, 0.0 }
 0x10b   : > { %428 = vst [vmem:[%s280_s8 + $0x18] sm:$0xff] %v424_v38 }
 0x10c   : > { %v453_v39 = vld [vmem:[%s280_s8] sm:$0xff] }
 0x10d   : > { %454 = vst [vmem:[%s440_s24] sm:$0xff] %v453_v39 }
 0x10e   : > { %v455_v40 = vld [vmem:[%s280_s8 + $0x8] sm:$0xff] }
 0x10f   : > { %456 = vst [vmem:[%s440_s24 + $0x8] sm:$0xff] %v455_v40 }
 0x110   : > { %v457_v41 = vld [vmem:[%s280_s8 + $0x10] sm:$0xff] }
 0x111   : > { %458 = vst [vmem:[%s440_s24 + $0x20] sm:$0xff] %v457_v41 }
 0x112   : > { %v459_v42 = vld [vmem:[%s280_s8 + $0x18] sm:$0xff] }
 0x113   : > { %460 = vst [vmem:[%s440_s24 + $0x28] sm:$0xff] %v459_v42 }
 0x114 PF: > { %s13_s18 = sadd.s32 1, %s725_s18   ;;  %s861_s12 = smov %s705_s13 }
 0x115   : > { %p10_p13 = scmp.ge.s32.totalorder %s13_s18, 6   ;;  %s862_s13 = smov %s804_s27 }
 0x116   : > { %s863_s14 = smov %s717_s16  ;;  %s864_s15 = smov %s721_s17 }
 0x117   : > { %s865_s16 = smov %s868_s19  ;;  %s866_s17 = smov %s872_s20 }
 0x118   :  { %12 = sbr.rel (!%p10_p13) target bundleno = 4 (0x4), region = 134 }

// kernel: squeeze.27
= control target key start
LH: loop header
LB: loop body
LE: loop exit
PB: predicated region body
PF: predicated region fallthrough
CT: control target
= control target key end

     0   :  { %vm66_vm0 = vcmask 1047556   ;;  %s294_s14 = smov 112   ;;  %s295_s15 = smov 80   ;;  %vm22_vm1 = vcmask 130048   ;;  %s512_s0 = inlined_call_operand.vmem [shape: f32[1,4,512], index: 0, kind: input, shape index: {}]   ;;  %s513_s1 = inlined_call_operand.vmem [shape: f32[4,2,16,16], index: 1, kind: output, shape index: {}]  }
   0x1   :  { %v240_v0 = vld [vmem:[%s512_s0 + $0xc] sm:$0xf]  ;;  %v241_v1 = vld [vmem:[%s512_s0 + $0x8] sm:$0xf]  ;;  %v242_v2 = vld [vmem:[%s512_s0 + $0x4] sm:$0xf] }
   0x2   :  { %9 = vst [vmem:[#allocation0 + $0x18] sm:$0xf] %v240_v0  ;;  %14 = vst [vmem:[#allocation0 + $0x10] sm:$0xf] %v241_v1  ;;  %v19_v3 = vld [vmem:[%s512_s0] sm:$0xf] }
   0x3   :  { %18 = vst [vmem:[#allocation0 + $0x8] sm:$0xf] %v242_v2  ;;  %20 = vst [vmem:[#allocation0] sm:$0xf] %v19_v3  ;;  %s293_s0 = smov 96   ;;  %s296_s16 = smov 64  }
   0x4   :  { %s297_s19 = smov 48   ;;  %s298_s20 = smov 32  }
   0x5   :  { %s299_s21 = smov 16  }
   0x9   :  { %v42_v34 = vld [vmem:[#allocation0 + $0x10] sm:$0xf]   ;;  %v53_v36 = vld [vmem:[#allocation0 + $0x18] sm:$0xf]  }
   0xa   :  { %v88_v4 = vld [vmem:[#allocation0] ss:$8 sm:$0xf]   ;;  %v90_v5 = vld [vmem:[#allocation0 - $0x1f] ss:$8 sm:$0xf0]  }
   0xb   :  { %v92_v6 = vsel %vm66_vm0, %v90_v5, %v88_v4  ;;  %v63_v7 = vld [vmem:[#allocation0] ss:$8 sm:$0xf]   ;;  %v65_v8 = vld [vmem:[#allocation0 - $0x1f] ss:$8 sm:$0xf0]  }
   0xc   :  { %93 = vrot.lane.b32.xlu1 %v92_v6, %s293_s0  ;;  %v67_v9 = vsel %vm66_vm0, %v65_v8, %v63_v7  ;;  %v101_v10 = vld [vmem:[#allocation0 + $0x2] ss:$8 sm:$0xf]   ;;  %v103_v11 = vld [vmem:[#allocation0 - $0x1d] ss:$8 sm:$0xf0]  }
   0xd   :  { %68 = vrot.lane.b32.xlu0 %v67_v9, %s294_s14  ;;  %v105_v12 = vsel %vm66_vm0, %v103_v11, %v101_v10  ;;  %v76_v13 = vld [vmem:[#allocation0 + $0x2] ss:$8 sm:$0xf]   ;;  %v78_v14 = vld [vmem:[#allocation0 - $0x1d] ss:$8 sm:$0xf0]  }
   0xe   :  { %v80_v15 = vsel %vm66_vm0, %v78_v14, %v76_v13  ;;  %v126_v16 = vld [vmem:[#allocation0 + $0x2] ss:$8 sm:$0xf]   ;;  %v128_v17 = vld [vmem:[#allocation0 - $0x1d] ss:$8 sm:$0xf0]  }
   0xf   :  { %v113_v18 = vld [vmem:[#allocation0] ss:$8 sm:$0xf]   ;;  %v115_v19 = vld [vmem:[#allocation0 - $0x1f] ss:$8 sm:$0xf0]   ;;  %v130_v20 = vsel %vm66_vm0, %v128_v17, %v126_v16 }
  0x10   :  { %106 = vrot.lane.b32.xlu1 %v105_v12, %s293_s0  ;;  %v117_v21 = vsel %vm66_vm0, %v115_v19, %v113_v18  ;;  %v151_v22 = vld [vmem:[#allocation0 + $0x2] ss:$8 sm:$0xf]   ;;  %v153_v23 = vld [vmem:[#allocation0 - $0x1d] ss:$8 sm:$0xf0]  }
  0x11   :  { %81 = vrot.lane.b32.xlu0 %v80_v15, %s294_s14  ;;  %v138_v24 = vld [vmem:[#allocation0] ss:$8 sm:$0xf]   ;;  %v140_v25 = vld [vmem:[#allocation0 - $0x1f] ss:$8 sm:$0xf0]   ;;  %v155_v26 = vsel %vm66_vm0, %v153_v23, %v151_v22 }
  0x12   :  { %v142_v27 = vsel %vm66_vm0, %v140_v25, %v138_v24  ;;  %v176_v28 = vld [vmem:[#allocation0 + $0x2] ss:$8 sm:$0xf]   ;;  %v178_v29 = vld [vmem:[#allocation0 - $0x1d] ss:$8 sm:$0xf0]  }
  0x13   :  { %v163_v30 = vld [vmem:[#allocation0] ss:$8 sm:$0xf]   ;;  %v165_v31 = vld [vmem:[#allocation0 - $0x1f] ss:$8 sm:$0xf0]   ;;  %v180_v35 = vsel %vm66_vm0, %v178_v29, %v176_v28 }
  0x14   :  { %131 = vrot.lane.b32.xlu1 %v130_v20, %s295_s15  ;;  %v21_v32 = vld [vmem:[#allocation0] sm:$0xf]   ;;  %v31_v33 = vld [vmem:[#allocation0 + $0x8] sm:$0xf]   ;;  %250 = vst.msk [vmem:[%s513_s1 + $0x10] sm:$0x1] %vm22_vm1, %v42_v34   ;;  %v167_v37 = vsel %vm66_vm0, %v165_v31, %v163_v30 }
  0x15   :  { %118 = vrot.lane.b32.xlu0 %v117_v21, %s295_s15  ;;  %23 = vst.msk [vmem:[%s513_s1] sm:$0x1] %vm22_vm1, %v21_v32   ;;  %243 = vst.msk [vmem:[%s513_s1 + $0x1f] sm:$0x2] %vm22_vm1, %v21_v32  }
  0x16   :  { %244 = vst.msk [vmem:[%s513_s1 + $0x3e] sm:$0x4] %vm22_vm1, %v21_v32   ;;  %245 = vst.msk [vmem:[%s513_s1 + $0x5d] sm:$0x8] %vm22_vm1, %v21_v32  }
  0x17   :  { %246 = vst.msk [vmem:[%s513_s1 + $0x8] sm:$0x1] %vm22_vm1, %v31_v33   ;;  %247 = vst.msk [vmem:[%s513_s1 + $0x27] sm:$0x2] %vm22_vm1, %v31_v33  }
  0x18   :  { %156 = vrot.lane.b32.xlu1 %v155_v26, %s296_s16  ;;  %248 = vst.msk [vmem:[%s513_s1 + $0x46] sm:$0x4] %vm22_vm1, %v31_v33   ;;  %249 = vst.msk [vmem:[%s513_s1 + $0x65] sm:$0x8] %vm22_vm1, %v31_v33  }
  0x19   :  { %143 = vrot.lane.b32.xlu0 %v142_v27, %s296_s16  ;;  %251 = vst.msk [vmem:[%s513_s1 + $0x2f] sm:$0x2] %vm22_vm1, %v42_v34   ;;  %252 = vst.msk [vmem:[%s513_s1 + $0x4e] sm:$0x4] %vm22_vm1, %v42_v34  }
  0x1a   :  { %253 = vst.msk [vmem:[%s513_s1 + $0x6d] sm:$0x8] %vm22_vm1, %v42_v34   ;;  %v201_v38 = vld [vmem:[#allocation0 + $0x2] ss:$8 sm:$0xf]  }
  0x1b   :  { %v203_v39 = vld [vmem:[#allocation0 - $0x1d] ss:$8 sm:$0xf0]   ;;  %254 = vst.msk [vmem:[%s513_s1 + $0x18] sm:$0x1] %vm22_vm1, %v53_v36  }
  0x1c   :  { %255 = vst.msk [vmem:[%s513_s1 + $0x37] sm:$0x2] %vm22_vm1, %v53_v36   ;;  %256 = vst.msk [vmem:[%s513_s1 + $0x56] sm:$0x4] %vm22_vm1, %v53_v36   ;;  %181 = vrot.lane.b32.xlu1 %v180_v35, %s297_s19  ;;  %v205_v42 = vsel %vm66_vm0, %v203_v39, %v201_v38 }
  0x1d   :  { %257 = vst.msk [vmem:[%s513_s1 + $0x75] sm:$0x8] %vm22_vm1, %v53_v36   ;;  %v188_v40 = vld [vmem:[#allocation0] ss:$8 sm:$0xf]   ;;  %168 = vrot.lane.b32.xlu0 %v167_v37, %s297_s19 }
  0x1e   :  { %v190_v41 = vld [vmem:[#allocation0 - $0x1f] ss:$8 sm:$0xf0]   ;;  %v226_v44 = vld [vmem:[#allocation0 + $0x2] ss:$8 sm:$0xf]  }
  0x1f   :  { %v192_v43 = vsel %vm66_vm0, %v190_v41, %v188_v40  ;;  %v228_v45 = vld [vmem:[#allocation0 - $0x1d] ss:$8 sm:$0xf0]   ;;  %v213_v46 = vld [vmem:[#allocation0] ss:$8 sm:$0xf]  }
  0x20   :  { %v215_v47 = vld [vmem:[#allocation0 - $0x1f] ss:$8 sm:$0xf0]   ;;  %206 = vrot.lane.b32.xlu1 %v205_v42, %s298_s20  ;;  %v230_v48 = vsel %vm66_vm0, %v228_v45, %v226_v44 }
  0x21   :  { %193 = vrot.lane.b32.xlu0 %v192_v43, %s298_s20  ;;  %v217_v49 = vsel %vm66_vm0, %v215_v47, %v213_v46 }
  0x24   :  { %231 = vrot.lane.b32.xlu1 %v230_v48, %s299_s21 }
  0x25   :  { %218 = vrot.lane.b32.xlu0 %v217_v49, %s299_s21 }
  0x7e   :  { %v94_v50 = vpop.permute.xlu1 %93  }
  0x7f   :  { %262 = vst.msk [vmem:[%s513_s1 + $0x2] ss:$8 sm:$0xf] %vm22_vm1, %v94_v50   ;;  %263 = vst.msk [vmem:[%s513_s1 + $0x2] ss:$8 sm:$0xf0] %vm22_vm1, %v94_v50   ;;  %v69_v51 = vpop.permute.xlu0 %68  }
  0x80   :  { %258 = vst.msk [vmem:[%s513_s1 + $0x1] ss:$8 sm:$0xf] %vm22_vm1, %v69_v51   ;;  %259 = vst.msk [vmem:[%s513_s1 + $0x1] ss:$8 sm:$0xf0] %vm22_vm1, %v69_v51  }
  0x82   :  { %v107_v52 = vpop.permute.xlu1 %106  }
  0x83   :  { %264 = vst.msk [vmem:[%s513_s1 + $0x42] ss:$8 sm:$0xf] %vm22_vm1, %v107_v52   ;;  %265 = vst.msk [vmem:[%s513_s1 + $0x42] ss:$8 sm:$0xf0] %vm22_vm1, %v107_v52   ;;  %v82_v53 = vpop.permute.xlu0 %81  }
  0x84   :  { %260 = vst.msk [vmem:[%s513_s1 + $0x41] ss:$8 sm:$0xf] %vm22_vm1, %v82_v53   ;;  %261 = vst.msk [vmem:[%s513_s1 + $0x41] ss:$8 sm:$0xf0] %vm22_vm1, %v82_v53  }
  0x86   :  { %v132_v54 = vpop.permute.xlu1 %131  }
  0x87   :  { %268 = vst.msk [vmem:[%s513_s1 + $0x43] ss:$8 sm:$0xf] %vm22_vm1, %v132_v54   ;;  %269 = vst.msk [vmem:[%s513_s1 + $0x43] ss:$8 sm:$0xf0] %vm22_vm1, %v132_v54   ;;  %v119_v55 = vpop.permute.xlu0 %118  }
  0x88   :  { %266 = vst.msk [vmem:[%s513_s1 + $0x3] ss:$8 sm:$0xf] %vm22_vm1, %v119_v55   ;;  %267 = vst.msk [vmem:[%s513_s1 + $0x3] ss:$8 sm:$0xf0] %vm22_vm1, %v119_v55  }
  0x8a   :  { %v157_v56 = vpop.permute.xlu1 %156  }
  0x8b   :  { %272 = vst.msk [vmem:[%s513_s1 + $0x44] ss:$8 sm:$0xf] %vm22_vm1, %v157_v56   ;;  %273 = vst.msk [vmem:[%s513_s1 + $0x44] ss:$8 sm:$0xf0] %vm22_vm1, %v157_v56   ;;  %v144_v57 = vpop.permute.xlu0 %143  }
  0x8c   :  { %270 = vst.msk [vmem:[%s513_s1 + $0x4] ss:$8 sm:$0xf] %vm22_vm1, %v144_v57   ;;  %271 = vst.msk [vmem:[%s513_s1 + $0x4] ss:$8 sm:$0xf0] %vm22_vm1, %v144_v57  }
  0x8e   :  { %v182_v58 = vpop.permute.xlu1 %181  }
  0x8f   :  { %276 = vst.msk [vmem:[%s513_s1 + $0x45] ss:$8 sm:$0xf] %vm22_vm1, %v182_v58   ;;  %277 = vst.msk [vmem:[%s513_s1 + $0x45] ss:$8 sm:$0xf0] %vm22_vm1, %v182_v58   ;;  %v169_v59 = vpop.permute.xlu0 %168  }
  0x90   :  { %274 = vst.msk [vmem:[%s513_s1 + $0x5] ss:$8 sm:$0xf] %vm22_vm1, %v169_v59   ;;  %275 = vst.msk [vmem:[%s513_s1 + $0x5] ss:$8 sm:$0xf0] %vm22_vm1, %v169_v59  }
  0x92   :  { %v207_v60 = vpop.permute.xlu1 %206  }
  0x93   :  { %280 = vst.msk [vmem:[%s513_s1 + $0x46] ss:$8 sm:$0xf] %vm22_vm1, %v207_v60   ;;  %281 = vst.msk [vmem:[%s513_s1 + $0x46] ss:$8 sm:$0xf0] %vm22_vm1, %v207_v60   ;;  %v194_v61 = vpop.permute.xlu0 %193  }
  0x94   :  { %278 = vst.msk [vmem:[%s513_s1 + $0x6] ss:$8 sm:$0xf] %vm22_vm1, %v194_v61   ;;  %279 = vst.msk [vmem:[%s513_s1 + $0x6] ss:$8 sm:$0xf0] %vm22_vm1, %v194_v61  }
  0x96   :  { %v232_v62 = vpop.permute.xlu1 %231  }
  0x97   :  { %284 = vst.msk [vmem:[%s513_s1 + $0x47] ss:$8 sm:$0xf] %vm22_vm1, %v232_v62   ;;  %285 = vst.msk [vmem:[%s513_s1 + $0x47] ss:$8 sm:$0xf0] %vm22_vm1, %v232_v62   ;;  %v219_v63 = vpop.permute.xlu0 %218  }
  0x98   :  { %282 = vst.msk [vmem:[%s513_s1 + $0x7] ss:$8 sm:$0xf] %vm22_vm1, %v219_v63   ;;  %283 = vst.msk [vmem:[%s513_s1 + $0x7] ss:$8 sm:$0xf0] %vm22_vm1, %v219_v63  }

// kernel: segmentation_model_forward.12
= control target key start
LH: loop header
LB: loop body
LE: loop exit
PB: predicated region body
PF: predicated region fallthrough
CT: control target
= control target key end

     0   :  { %s985_s12 = smov 0   ;;  %s987_s13 = smov 0   ;;  %s1172_s0 = inlined_call_operand.vmem [shape: bf16[2,216,512], index: 0, kind: input, shape index: {}]   ;;  %s1173_s1 = inlined_call_operand.vmem [shape: bf16[2,8,216], index: 1, kind: input, shape index: {}]   ;;  %s1174_s2 = inlined_call_operand.vmem [shape: f32[2,8,1], index: 2, kind: input, shape index: {}]   ;;  %s1175_s3 = inlined_call_operand.vmem [shape: f32[2,8,512], index: 3, kind: output, shape index: {}]  }
   0x1   :  { %s989_s14 = smov 0   ;;  %s991_s15 = smov 0  }
   0x2   :  { %s993_s16 = smov 0   ;;  %s995_s17 = smov 0  }
   0x3   :  { %s997_s18 = smov 0  }
   0x4 LB: > { %s22_s19 = sadd.s32 1, %s954_s16  ;;  %s25_s20 = sadd.s32 1, %s958_s17  ;;  %s962_s18 = sphi %s997_s18, %s13_s18   ;;  %s958_s17 = sphi %s995_s17, %s1181_s17   ;;  %s954_s16 = sphi %s993_s16, %s1180_s16   ;;  %s950_s15 = sphi %s991_s15, %s1179_s15   ;;  %s946_s14 = sphi %s989_s14, %s1178_s14   ;;  %s942_s13 = sphi %s987_s13, %s1177_s13   ;;  %s938_s12 = sphi %s985_s12, %s1176_s12  }
   0x5   : > { %p23_p0 = scmp.ge.s32.totalorder %s22_s19, 2  ;;  %p41_p1 = scmp.ne.s32.totalorder %s942_s13, %s938_s12 }
   0x6   : > { %p42_p2 = scmp.eq.s32.totalorder %s962_s18, 0  ;;  %s34_s24 = sadd.s32 1, %s942_s13 }
   0x7   : > { %s1183_s19 = smov (%p23_p0, %s22_s19), 0  ;;  %s1185_s20 = smov (!%p23_p0, %s25_s20), %s958_s17 }
   0x8   : > { %p43_p3 = por %p42_p2, %p41_p1  ;;  %p27_p4 = scmp.ge.s32.totalorder %s1185_s20, 2 }
   0x9   : > { %s30_s21 = ssub.s32 %s954_s16, %s1183_s19  ;;  %p745_p6 = scmp.ge.s32.totalorder %s962_s18, 4 }
   0xa   : > { %s1187_s20 = smov (%p27_p4, %s1185_s20), 0 }
   0xb   : > { %s29_s22 = ssub.s32 %s958_s17, %s1187_s20  ;;  %147 = sbr.rel (%p745_p6) target bundleno = 38 (0x26), region = 16 }
   0xc   : > { %s31_s23 = sor.u32 %s30_s21, %s29_s22 }
   0xd   : > { %p32_p5 = scmp.eq.s32.totalorder %s31_s23, 0 }
   0xf   : > { %s1036_s25 = scalar_select %p32_p5, %s942_s13, %s34_s24  }
  0x10   : > { %150 = sbr.rel (!%p43_p3) target bundleno = 38 (0x26), region = 20  ;;  %s152_s26 = sand.u32 (%p43_p3), 1, %s942_s13  }
  0x11   : > { %s792_s27 = smul.u32 (%p43_p3), 216, %s152_s26  ;;  %s746_s28 = sshll.u32 (%p43_p3), %s954_s16, 1 }
  0x12   : > { %s793_s29 = smul.u32 (%p43_p3), 108, %s958_s17 }
  0x13   : > { %s1050_s8 = scalar_lea.vmem (%p43_p3), [#allocation2], %s792_s27 }
  0x14   : > { %s157_s30 = sadd.s32 (%p43_p3), %s793_s29, %s746_s28 }
  0x15   : > { %s747_s4 = sshll.u32 %s157_s30, 2 }
  0x16   : > { %s1045_s7 = scalar_lea.vmem %s1172_s0, %s747_s4 }
  0x17   : > { %v240_v0 = vld [vmem:[%s1045_s7] sm:$0xff]  ;;  %v242_v1 = vld [vmem:[%s1045_s7 + $0x10] sm:$0xff] }
  0x18   : > { %v244_v2 = vld [vmem:[%s1045_s7 + $0x20] sm:$0xff]  ;;  %241 = vst [vmem:[%s1050_s8] sm:$0xff] %v240_v0  ;;  %243 = vst [vmem:[%s1050_s8 + $0x8] sm:$0xff] %v242_v1  ;;  %v246_v3 = vld [vmem:[%s1045_s7 + $0x30] sm:$0xff] }
  0x19   : > { %245 = vst [vmem:[%s1050_s8 + $0x10] sm:$0xff] %v244_v2  ;;  %v248_v4 = vld [vmem:[%s1045_s7 + $0x40] sm:$0xff]  ;;  %v250_v5 = vld [vmem:[%s1045_s7 + $0x50] sm:$0xff]  ;;  %247 = vst [vmem:[%s1050_s8 + $0x18] sm:$0xff] %v246_v3 }
  0x1a   : > { %249 = vst [vmem:[%s1050_s8 + $0x20] sm:$0xff] %v248_v4  ;;  %251 = vst [vmem:[%s1050_s8 + $0x28] sm:$0xff] %v250_v5  ;;  %v252_v6 = vld [vmem:[%s1045_s7 + $0x60] sm:$0xff]  ;;  %v254_v7 = vld [vmem:[%s1045_s7 + $0x70] sm:$0xff] }
  0x1b   : > { %v256_v8 = vld [vmem:[%s1045_s7 + $0x80] sm:$0xff]  ;;  %253 = vst [vmem:[%s1050_s8 + $0x30] sm:$0xff] %v252_v6  ;;  %255 = vst [vmem:[%s1050_s8 + $0x38] sm:$0xff] %v254_v7  ;;  %v258_v9 = vld [vmem:[%s1045_s7 + $0x90] sm:$0xff] }
  0x1c   : > { %257 = vst [vmem:[%s1050_s8 + $0x40] sm:$0xff] %v256_v8  ;;  %v260_v10 = vld [vmem:[%s1045_s7 + $0xa0] sm:$0xff]  ;;  %v262_v11 = vld [vmem:[%s1045_s7 + $0xb0] sm:$0xff]  ;;  %259 = vst [vmem:[%s1050_s8 + $0x48] sm:$0xff] %v258_v9 }
  0x1d   : > { %261 = vst [vmem:[%s1050_s8 + $0x50] sm:$0xff] %v260_v10  ;;  %263 = vst [vmem:[%s1050_s8 + $0x58] sm:$0xff] %v262_v11  ;;  %v264_v12 = vld [vmem:[%s1045_s7 + $0xc0] sm:$0xff]  ;;  %v266_v13 = vld [vmem:[%s1045_s7 + $0xd0] sm:$0xff] }
  0x1e   : > { %v268_v14 = vld [vmem:[%s1045_s7 + $0xe0] sm:$0xff]  ;;  %265 = vst [vmem:[%s1050_s8 + $0x60] sm:$0xff] %v264_v12  ;;  %267 = vst [vmem:[%s1050_s8 + $0x68] sm:$0xff] %v266_v13  ;;  %v270_v15 = vld [vmem:[%s1045_s7 + $0xf0] sm:$0xff] }
  0x1f   : > { %269 = vst [vmem:[%s1050_s8 + $0x70] sm:$0xff] %v268_v14  ;;  %v272_v16 = vld [vmem:[%s1045_s7 + $0x100] sm:$0xff]  ;;  %v274_v17 = vld [vmem:[%s1045_s7 + $0x110] sm:$0xff]  ;;  %271 = vst [vmem:[%s1050_s8 + $0x78] sm:$0xff] %v270_v15 }
  0x20   : > { %273 = vst [vmem:[%s1050_s8 + $0x80] sm:$0xff] %v272_v16  ;;  %275 = vst [vmem:[%s1050_s8 + $0x88] sm:$0xff] %v274_v17  ;;  %v276_v18 = vld [vmem:[%s1045_s7 + $0x120] sm:$0xff]  ;;  %v278_v19 = vld [vmem:[%s1045_s7 + $0x130] sm:$0xff] }
  0x21   : > { %v280_v20 = vld [vmem:[%s1045_s7 + $0x140] sm:$0xff]  ;;  %277 = vst [vmem:[%s1050_s8 + $0x90] sm:$0xff] %v276_v18  ;;  %279 = vst [vmem:[%s1050_s8 + $0x98] sm:$0xff] %v278_v19  ;;  %v282_v21 = vld [vmem:[%s1045_s7 + $0x150] sm:$0xff] }
  0x22   : > { %281 = vst [vmem:[%s1050_s8 + $0xa0] sm:$0xff] %v280_v20  ;;  %v284_v22 = vld [vmem:[%s1045_s7 + $0x160] sm:$0xff]  ;;  %v286_v23 = vld [vmem:[%s1045_s7 + $0x170] sm:$0xff]  ;;  %283 = vst [vmem:[%s1050_s8 + $0xa8] sm:$0xff] %v282_v21 }
  0x23   : > { %285 = vst [vmem:[%s1050_s8 + $0xb0] sm:$0xff] %v284_v22  ;;  %287 = vst [vmem:[%s1050_s8 + $0xb8] sm:$0xff] %v286_v23  ;;  %v288_v24 = vld [vmem:[%s1045_s7 + $0x180] sm:$0xff]  ;;  %v290_v25 = vld [vmem:[%s1045_s7 + $0x190] sm:$0xff] }
  0x24   : > { %v292_v26 = vld [vmem:[%s1045_s7 + $0x1a0] sm:$0xff]  ;;  %289 = vst [vmem:[%s1050_s8 + $0xc0] sm:$0xff] %v288_v24  ;;  %291 = vst [vmem:[%s1050_s8 + $0xc8] sm:$0xff] %v290_v25 }
  0x25   : > { %293 = vst [vmem:[%s1050_s8 + $0xd0] sm:$0xff] %v292_v26 }
  0x26 PF: > { %p748_p7 = scmp.ge.s32.totalorder %s962_s18, 1  ;;  %p313_p8 = scmp.lt.s32.totalorder %s962_s18, 5 }
  0x28   : > { %p314_p9 = pnand %p748_p7, %p313_p8 }
  0x29   : > { %s320_s9 = sand.u32 (!%p314_p9), 1, %s938_s12   ;;  %p357_p10 = scmp.lt.s32.totalorder (!%p314_p9), %s950_s15, 1 }
  0x2a   : > { %317 = sbr.rel (%p314_p9) target bundleno = 335 (0x14f), region = 66  ;;  %s752_s28 = sshll.u32 (!%p314_p9), %s946_s14, 1 }
  0x2b   : > { %s794_s10 = smul.u32 (!%p314_p9), 216, %s320_s9  ;;  %p369_p11 = scmp.lt.s32.totalorder (!%p314_p9), %s752_s28, 3 }
  0x2d   : > { %s1106_s11 = scalar_lea.vmem (!%p314_p9), [#allocation2], %s794_s10 }
  0x2f   : > { %v964_v27 = vmov 0   ;;  %v853_v28 = vld [vmem:[%s1106_s11 + $0x74] ss:$8 sps:$4 sm:$0xff]   ;;  %v855_v29 = vld [vmem:[%s1106_s11 + $0x70] ss:$8 sps:$4 sm:$0xff]   ;;  %s1189_s15 = smov (!%p357_p10, %s950_s15), 1  ;;  %v604_v11 = vlaneseq }
  0x30   : > { %852 = vset.pattern.permute.xlu0 %v964_v27  ;;  %563 = vmatprep.subr.bf16.mxu0 %v853_v28  ;;  %v856_v30 = vld [vmem:[%s1106_s11 + $0x64] ss:$8 sps:$4 sm:$0xff]   ;;  %v858_v31 = vld [vmem:[%s1106_s11 + $0x60] ss:$8 sps:$4 sm:$0xff]   ;;  %v859_v32 = vld [vmem:[%s1106_s11 + $0x54] ss:$8 sps:$4 sm:$0xff]  }
  0x31   : > { %564 = vmatpush1.bf16.msra.mxu0 %v855_v29  ;;  %v861_v33 = vld [vmem:[%s1106_s11 + $0x50] ss:$8 sps:$4 sm:$0xff]   ;;  %v862_v34 = vld [vmem:[%s1106_s11 + $0x44] ss:$8 sps:$4 sm:$0xff]   ;;  %v864_v35 = vld [vmem:[%s1106_s11 + $0x40] ss:$8 sps:$4 sm:$0xff]  }
  0x32   : > { %565 = vmatprep.subr.bf16.mxu0 %v856_v30  ;;  %s791_s12 = sshll.u32 %s1189_s15, 3  ;;  %v865_v36 = vld [vmem:[%s1106_s11 + $0x34] ss:$8 sps:$4 sm:$0xff]   ;;  %v867_v37 = vld [vmem:[%s1106_s11 + $0x30] ss:$8 sps:$4 sm:$0xff]   ;;  %vm552_vm0 = vcmask 719872  }
  0x33   : > { %s361_s23 = scalar_lea.vmem %s1173_s1, %s791_s12  ;;  %s365_s27 = scalar_lea.vmem %s1174_s2, %s791_s12  ;;  %v868_v38 = vld [vmem:[%s1106_s11 + $0x24] ss:$8 sps:$4 sm:$0xff]   ;;  %v870_v42 = vld [vmem:[%s1106_s11 + $0x20] ss:$8 sps:$4 sm:$0xff]   ;;  %v871_v43 = vld [vmem:[%s1106_s11 + $0x14] ss:$8 sps:$4 sm:$0xff]  }
  0x34   : > { %v377_v39 = vld [vmem:[%s361_s23] sm:$0xff]  ;;  %v873_v44 = vld [vmem:[%s1106_s11 + $0x10] ss:$8 sps:$4 sm:$0xff]   ;;  %vm556_vm1 = vcmask 1043456   ;;  %v882_v53 = vld [vmem:[%s1106_s11 + $0xb4] ss:$8 sps:$4 sm:$0xff]  }
  0x35   : > { %566 = vmatpush1.bf16.msra.mxu0 %v858_v31  ;;  %v756_v40 = vcombine.high %v377_v39, %v377_v39  ;;  %v405_v41 = vld [vmem:[%s365_s27] sm:$0xff]  ;;  %v404_v46 = vld [vmem:[%s1106_s11 + $0xd0] sm:$0xff]  ;;  %v755_v61 = vcombine.low %v377_v39, %v377_v39  ;;  %s1191_s28 = smov (!%p369_p11, %s752_s28), 3  ;;  %s753_s29 = sshll.u32 %s1189_s15, 2  ;;  %v605_v12 = vshrl.u32 %v604_v11, 7 }
  0x36   : > { %567 = vmatprep.subr.bf16.mxu0 %v859_v32  ;;  %408 = vperm.xlu0 %852, %v405_v41   ;;  %v874_v45 = vld [vmem:[%s1106_s11 + $0x4] ss:$8 sps:$4 sm:$0xff]   ;;  %v876_v47 = vld [vmem:[%s1106_s11] ss:$8 sps:$4 sm:$0xff]   ;;  %v784_v48 = vcombine.high %v404_v46, %v404_v46  ;;  %v783_v49 = vcombine.low %v404_v46, %v404_v46  ;;  %v884_v54 = vld [vmem:[%s1106_s11 + $0xb0] ss:$8 sps:$4 sm:$0xff]   ;;  %s372_s30 = sadd.s32 %s753_s29, %s1191_s28 }
  0x37   : > { %786 = vmatprep.mubr.msk.bf16.mxu0 %vm552_vm0, %v756_v40  ;;  %v879_v51 = vld [vmem:[%s1106_s11 + $0xc4] ss:$8 sps:$4 sm:$0xff]   ;;  %v881_v52 = vld [vmem:[%s1106_s11 + $0xc0] ss:$8 sps:$4 sm:$0xff]   ;;  %v888_v57 = vld [vmem:[%s1106_s11 + $0x94] ss:$8 sps:$4 sm:$0xff]  }
  0x38   : > { %v558_v50 = vsel %vm556_vm1, %v783_v49, 0  ;;  %v885_v55 = vld [vmem:[%s1106_s11 + $0xa4] ss:$8 sps:$4 sm:$0xff]   ;;  %v887_v56 = vld [vmem:[%s1106_s11 + $0xa0] ss:$8 sps:$4 sm:$0xff]   ;;  %s754_s4 = sshll.u32 %s372_s30, 3 }
  0x39   : > { %568 = vmatpush1.bf16.msra.mxu0 %v861_v33  ;;  %v890_v58 = vld [vmem:[%s1106_s11 + $0x90] ss:$8 sps:$4 sm:$0xff]   ;;  %v891_v59 = vld [vmem:[%s1106_s11 + $0x84] ss:$8 sps:$4 sm:$0xff]   ;;  %v893_v60 = vld [vmem:[%s1106_s11 + $0x80] ss:$8 sps:$4 sm:$0xff]   ;;  %s374_s14 = scalar_lea.vmem %s1175_s3, %s754_s4 }
  0x3a   : > { %569 = vmatprep.subr.bf16.mxu0 %v862_v34  ;;  %vm606_vm2 = vcmp.lt.s32.totalorder %v605_v12, 4 }
  0x3d   : > { %570 = vmatpush1.bf16.msra.mxu0 %v864_v35 }
  0x3e   : > { %571 = vmatprep.subr.bf16.mxu0 %v865_v36 }
  0x41   : > { %572 = vmatpush1.bf16.msra.mxu0 %v867_v37 }
  0x42   : > { %573 = vmatprep.subr.bf16.mxu0 %v868_v38 }
  0x45   : > { %574 = vmatpush1.bf16.msra.mxu0 %v870_v42 }
  0x46   : > { %575 = vmatprep.subr.bf16.mxu0 %v871_v43 }
  0x49   : > { %576 = vmatpush1.bf16.msra.mxu0 %v873_v44 }
  0x4a   : > { %577 = vmatprep.subr.bf16.mxu0 %v874_v45 }
  0x4d   : > { %578 = vmatpush1.bf16.msra.mxu0 %v876_v47 }
  0x4e   : > { %785 = vmatprep.subr.msk.bf16.mxu0 %vm556_vm1, %v784_v48 }
  0x51   : > { %584 = vmatpush2.bf16.msra.mxu0 %v558_v50 }
  0x52   : > { %585 = vmatprep.subr.bf16.mxu0 %v879_v51 }
  0x55   : > { %586 = vmatpush2.bf16.msra.mxu0 %v881_v52 }
  0x56   : > { %587 = vmatprep.subr.bf16.mxu0 %v882_v53 }
  0x59   : > { %588 = vmatpush2.bf16.msra.mxu0 %v884_v54 }
  0x5a   : > { %589 = vmatprep.subr.bf16.mxu0 %v885_v55 }
  0x5d   : > { %590 = vmatpush2.bf16.msra.mxu0 %v887_v56 }
  0x5e   : > { %591 = vmatprep.subr.bf16.mxu0 %v888_v57 }
  0x61   : > { %592 = vmatpush2.bf16.msra.mxu0 %v890_v58 }
  0x62   : > { %593 = vmatprep.subr.bf16.mxu0 %v891_v59 }
  0x65   : > { %594 = vmatpush2.bf16.msra.mxu0 %v893_v60 }
  0x68   : > { %596 = vmatmul.mubr.bf16.vlgmr.msra.gmra.mxu0 %v755_v61 }
  0xb1   : > { %v409_v62 = vpop.permute.xlu0 %408 }
 0x128   : > { %v597_v63 = vpop.f32.mrf.mxu0 }
 0x129   : > { %v598_v0 = vadd.f32 %v597_v63, %v409_v62 }
 0x12a   : > { %v599_v1 = vpop.f32.mrf.mxu0 }
 0x12b   : > { %v787_v2 = vmul.f32 -1.442695, %v598_v0  ;;  %v600_v3 = vadd.f32 %v599_v1, %v409_v62 }
 0x12c   : > { %v601_v4 = vpop.f32.mrf.mxu0 }
 0x12d   : > { %896 = vpow2.f32 %v787_v2  ;;  %v788_v5 = vmul.f32 -1.442695, %v600_v3 }
 0x12e   : > { %v602_v6 = vpop.f32.mrf.mxu0 }
 0x12f   : > { %898 = vpow2.f32 %v788_v5 }
 0x130   : > { %900 = vtanh.f32 %v598_v0 }
 0x13a   : > { %v897_v7 = vpop.eup %896 }
 0x13b   : > { %v615_v8 = vadd.f32 1.0, %v897_v7 }
 0x13c   : > { %v899_v9 = vpop.eup %898 }
 0x13d   : > { %902 = vrcp.f32 %v615_v8  ;;  %v616_v10 = vadd.f32 1.0, %v899_v9  ;;  %v901_v13 = vpop.eup %900 }
 0x13e   : > { %904 = vtanh.f32 %v600_v3 }
 0x13f   : > { %906 = vrcp.f32 %v616_v10 }
 0x14a   : > { %v903_v14 = vpop.eup %902 }
 0x14b   : > { %v905_v15 = vpop.eup %904  ;;  %v621_v16 = vsel %vm606_vm2, %v901_v13, %v903_v14 }
 0x14c   : > { %v907_v17 = vpop.eup %906  ;;  %623 = vst [vmem:[%s374_s14] sm:$0xff] %v621_v16 }
 0x14d   : > { %v622_v18 = vsel %vm606_vm2, %v905_v15, %v907_v17 }
 0x14e   : > { %624 = vst [vmem:[%s374_s14 + $0x8] sm:$0xff] %v622_v18 }
 0x14f PF: > { %s13_s18 = sadd.s32 1, %s962_s18   ;;  %s1176_s12 = smov %s942_s13 }
 0x150   : > { %p10_p12 = scmp.ge.s32.totalorder %s13_s18, 6   ;;  %s1177_s13 = smov %s1036_s25 }
 0x151   : > { %s1178_s14 = smov %s954_s16  ;;  %s1179_s15 = smov %s958_s17 }
 0x152   : > { %s1180_s16 = smov %s1183_s19  ;;  %s1181_s17 = smov %s1187_s20 }
 0x153   :  { %12 = sbr.rel (!%p10_p12) target bundleno = 4 (0x4), region = 111 }

// kernel: squeeze.35
= control target key start
LH: loop header
LB: loop body
LE: loop exit
PB: predicated region body
PF: predicated region fallthrough
CT: control target
= control target key end

     0   :  { %s45_s0 = inlined_call_operand.vmem [shape: f32[512], index: 0, kind: input, shape index: {}]   ;;  %s46_s1 = inlined_call_operand.vmem [shape: f32[2,256], index: 1, kind: output, shape index: {}]  }
   0x1   :  { %v5_v0 = vld [vmem:[%s45_s0] sm:$0xf] }
   0x2   :  { %6 = vst [vmem:[#allocation1] sm:$0xf] %v5_v0 }
   0x9   :  { %v7_v1 = vld [vmem:[#allocation1] sm:$0xf]  }
   0xa   :  { %8 = vst [vmem:[#allocation0] ss:$8 sm:$0x3] %v7_v1   ;;  %10 = vst [vmem:[#allocation0 - $0xf] ss:$8 sm:$0xc] %v7_v1  }
  0x11   :  { %v15_v2 = vld [vmem:[#allocation0] sm:$0x3]  ;;  %v20_v3 = vld [vmem:[#allocation0 + $0x8] sm:$0x3] }
  0x12   :  { %18 = vst [vmem:[%s46_s1] sm:$0x3] %v15_v2  ;;  %25 = vst [vmem:[%s46_s1 + $0x2] sm:$0x3] %v20_v3 }

// kernel: segmentation_model_forward.16
= control target key start
LH: loop header
LB: loop body
LE: loop exit
PB: predicated region body
PF: predicated region fallthrough
CT: control target
= control target key end

     0   :  { %s662_s12 = smov 0   ;;  %s664_s13 = smov 0   ;;  %s762_s0 = inlined_call_operand.vmem [shape: bf16[4,36,512], index: 0, kind: input, shape index: {}]   ;;  %s763_s1 = inlined_call_operand.vmem [shape: bf16[4,8,36], index: 1, kind: input, shape index: {}]   ;;  %s764_s2 = inlined_call_operand.vmem [shape: f32[4,8,1], index: 2, kind: input, shape index: {}]   ;;  %s765_s3 = inlined_call_operand.vmem [shape: f32[4,8,512], index: 3, kind: output, shape index: {}]  }
   0x1   :  { %s666_s14 = smov 0   ;;  %s668_s15 = smov 0  }
   0x2   :  { %s670_s16 = smov 0   ;;  %s672_s17 = smov 0  }
   0x3   :  { %s674_s18 = smov 0  }
   0x4 LB: > { %s22_s19 = sadd.s32 1, %s631_s16  ;;  %s25_s20 = sadd.s32 1, %s635_s17  ;;  %s639_s18 = sphi %s674_s18, %s13_s18   ;;  %s635_s17 = sphi %s672_s17, %s771_s17   ;;  %s631_s16 = sphi %s670_s16, %s770_s16   ;;  %s627_s15 = sphi %s668_s15, %s769_s15   ;;  %s623_s14 = sphi %s666_s14, %s768_s14   ;;  %s619_s13 = sphi %s664_s13, %s767_s13   ;;  %s615_s12 = sphi %s662_s12, %s766_s12  }
   0x5   : > { %p23_p0 = scmp.ge.s32.totalorder %s22_s19, 2  ;;  %p41_p1 = scmp.ne.s32.totalorder %s619_s13, %s615_s12 }
   0x6   : > { %p42_p2 = scmp.eq.s32.totalorder %s639_s18, 0  ;;  %s34_s24 = sadd.s32 1, %s619_s13 }
   0x7   : > { %s773_s19 = smov (%p23_p0, %s22_s19), 0  ;;  %s775_s20 = smov (!%p23_p0, %s25_s20), %s635_s17 }
   0x8   : > { %p43_p3 = por %p42_p2, %p41_p1  ;;  %p27_p4 = scmp.ge.s32.totalorder %s775_s20, 4 }
   0x9   : > { %s30_s21 = ssub.s32 %s631_s16, %s773_s19  ;;  %p497_p6 = scmp.ge.s32.totalorder %s639_s18, 8 }
   0xa   : > { %s777_s20 = smov (%p27_p4, %s775_s20), 0 }
   0xb   : > { %s29_s22 = ssub.s32 %s635_s17, %s777_s20  ;;  %147 = sbr.rel (%p497_p6) target bundleno = 27 (0x1b), region = 16 }
   0xc   : > { %s31_s23 = sor.u32 %s30_s21, %s29_s22 }
   0xd   : > { %p32_p5 = scmp.eq.s32.totalorder %s31_s23, 0 }
   0xf   : > { %s713_s25 = scalar_select %p32_p5, %s619_s13, %s34_s24  }
  0x10   : > { %150 = sbr.rel (!%p43_p3) target bundleno = 27 (0x1b), region = 20  ;;  %s152_s26 = sand.u32 (%p43_p3), 1, %s619_s13  }
  0x11   : > { %s516_s27 = smul.u32 (%p43_p3), 40, %s152_s26  ;;  %s498_s28 = sshll.u32 (%p43_p3), %s631_s16, 1 }
  0x12   : > { %s517_s29 = smul.u32 (%p43_p3), 20, %s635_s17 }
  0x13   : > { %s154_s8 = scalar_lea.vmem (%p43_p3), [#allocation2], %s516_s27 }
  0x14   : > { %s157_s30 = sadd.s32 (%p43_p3), %s517_s29, %s498_s28 }
  0x15   : > { %s499_s4 = sshll.u32 %s157_s30, 2 }
  0x16   : > { %s159_s7 = scalar_lea.vmem %s762_s0, %s499_s4 }
  0x17   : > { %v196_v0 = vld [vmem:[%s159_s7] sm:$0xff]  ;;  %v198_v1 = vld [vmem:[%s159_s7 + $0x10] sm:$0xff] }
  0x18   : > { %v200_v2 = vld [vmem:[%s159_s7 + $0x20] sm:$0xff]  ;;  %197 = vst [vmem:[%s154_s8] sm:$0xff] %v196_v0  ;;  %199 = vst [vmem:[%s154_s8 + $0x8] sm:$0xff] %v198_v1  ;;  %v202_v3 = vld [vmem:[%s159_s7 + $0x30] sm:$0xff] }
  0x19   : > { %201 = vst [vmem:[%s154_s8 + $0x10] sm:$0xff] %v200_v2  ;;  %v204_v4 = vld [vmem:[%s159_s7 + $0x40] sm:$0xff]  ;;  %203 = vst [vmem:[%s154_s8 + $0x18] sm:$0xff] %v202_v3 }
  0x1a   : > { %205 = vst [vmem:[%s154_s8 + $0x20] sm:$0xff] %v204_v4 }
  0x1b PF: > { %p500_p7 = scmp.ge.s32.totalorder %s639_s18, 1  ;;  %p224_p8 = scmp.lt.s32.totalorder %s639_s18, 9 }
  0x1d   : > { %p225_p9 = pnand %p500_p7, %p224_p8 }
  0x1e   : > { %s231_s9 = sand.u32 (!%p225_p9), 1, %s615_s12   ;;  %p267_p10 = scmp.lt.s32.totalorder (!%p225_p9), %s627_s15, 3 }
  0x1f   : > { %228 = sbr.rel (%p225_p9) target bundleno = 250 (0xfa), region = 66  ;;  %s503_s29 = sshll.u32 (!%p225_p9), %s623_s14, 1 }
  0x20   : > { %s518_s10 = smul.u32 (!%p225_p9), 40, %s231_s9  ;;  %p278_p11 = scmp.lt.s32.totalorder (!%p225_p9), %s503_s29, 3 }
  0x22   : > { %s233_s11 = scalar_lea.vmem (!%p225_p9), [#allocation2], %s518_s10 }
  0x24   : > { %v641_v5 = vmov 0   ;;  %s779_s15 = smov (!%p267_p10, %s627_s15), 3  ;;  %v291_v6 = vld [vmem:[%s233_s11 + $0x20] sm:$0x33]  ;;  %vm327_vm0 = vcmask 1041408   ;;  %vm323_vm1 = vcmask 293888  }
  0x25   : > { %366 = vmatprep.mubr.bf16.mxu0 %v641_v5  ;;  %576 = vset.pattern.permute.xlu0 %v641_v5  ;;  %s502_s21 = sshll.u32 %s779_s15, 3  ;;  %v511_v7 = vcombine.high %v291_v6, %v291_v6  ;;  %v510_v8 = vcombine.low %v291_v6, %v291_v6  ;;  %v579_v9 = vld [vmem:[%s233_s11 + $0x14] ss:$8 sps:$4 sm:$0xff]   ;;  %v581_v12 = vld [vmem:[%s233_s11 + $0x10] ss:$8 sps:$4 sm:$0xff]   ;;  %s501_s24 = sshll.u32 %s779_s15, 2 }
  0x26   : > { %s274_s12 = scalar_lea.vmem %s764_s2, %s502_s21  ;;  %v582_v13 = vld [vmem:[%s233_s11 + $0x4] ss:$8 sps:$4 sm:$0xff]   ;;  %v584_v14 = vld [vmem:[%s233_s11] ss:$8 sps:$4 sm:$0xff]   ;;  %s270_s28 = scalar_lea.vmem %s763_s1, %s501_s24 }
  0x27   : > { %512 = vmatprep.subr.msk.bf16.mxu0 %vm327_vm0, %v511_v7  ;;  %v329_v10 = vsel %vm327_vm0, %v510_v8, 0  ;;  %v292_v11 = vld [vmem:[%s274_s12] sm:$0xff]  ;;  %s781_s29 = smov (!%p278_p11, %s503_s29), 3 }
  0x28   : > { %345 = vmatpush1.bf16.msra.mxu0 %v329_v10  ;;  %295 = vperm.xlu0 %576, %v292_v11   ;;  %v286_v15 = vld [vmem:[%s270_s28] sm:$0xf]  ;;  %s281_s30 = sadd.s32 %s501_s24, %s781_s29 }
  0x29   : > { %346 = vmatprep.subr.bf16.mxu0 %v579_v9  ;;  %s505_s4 = sshll.u32 %s281_s30, 3 }
  0x2a   : > { %s283_s15 = scalar_lea.vmem %s765_s3, %s505_s4 }
  0x2c   : > { %347 = vmatpush1.bf16.msra.mxu0 %v581_v12 }
  0x2d   : > { %348 = vmatprep.subr.bf16.mxu0 %v582_v13 }
  0x30   : > { %349 = vmatpush1.bf16.msra.mxu0 %v584_v14 }
  0x33   : > { %513 = vmatmul.mubr.msk.bf16.vlgmr.msra.gmra.mxu0 %vm323_vm1, %v286_v15 }
  0xa3   : > { %v296_v16 = vpop.permute.xlu0 %295 }
  0xf3   : > { %v368_v17 = vpop.f32.mrf.mxu0 }
  0xf4   : > { %v369_v18 = vadd.f32 %v368_v17, %v296_v16 }
  0xf5   : > { %v370_v19 = vpop.f32.mrf.mxu0 }
  0xf6   : > { %375 = vst [vmem:[%s283_s15] sm:$0xff] %v369_v18  ;;  %v371_v20 = vadd.f32 %v370_v19, %v296_v16 }
  0xf7   : > { %v372_v21 = vpop.f32.mrf.mxu0 }
  0xf8   : > { %376 = vst [vmem:[%s283_s15 + $0x8] sm:$0xff] %v371_v20 }
  0xf9   : > { %v373_v22 = vpop.f32.mrf.mxu0 }
  0xfa PF: > { %s13_s18 = sadd.s32 1, %s639_s18   ;;  %s766_s12 = smov %s619_s13 }
  0xfb   : > { %p10_p12 = scmp.ge.s32.totalorder %s13_s18, 10   ;;  %s767_s13 = smov %s713_s25 }
  0xfc   : > { %s768_s14 = smov %s631_s16  ;;  %s769_s15 = smov %s635_s17 }
  0xfd   : > { %s770_s16 = smov %s773_s19  ;;  %s771_s17 = smov %s777_s20 }
  0xfe   :  { %12 = sbr.rel (!%p10_p12) target bundleno = 4 (0x4), region = 111 }

// kernel: segmentation_model_forward.17
= control target key start
LH: loop header
LB: loop body
LE: loop exit
PB: predicated region body
PF: predicated region fallthrough
CT: control target
= control target key end

     0   :  { %vm17_vm0 = vcmask 1043456   ;;  %vm38_vm1 = vcmask 3072   ;;  %s68_s0 = inlined_call_operand.vmem [shape: f32[4,256], index: 0, kind: input, shape index: {}]   ;;  %s69_s1 = inlined_call_operand.vmem [shape: f32[4,256], index: 1, kind: input, shape index: {}]   ;;  %s70_s2 = inlined_call_operand.vmem [shape: f32[4,1], index: 2, kind: output, shape index: {}]  }
   0x1   :  { %v11_v0 = vld [vmem:[%s68_s0] sm:$0xff] }
   0x2   :  { %v25_v1 = vld [vmem:[%s69_s1] sm:$0xff]  ;;  %v12_v2 = vsub.f32 1.0, %v11_v0 }
   0x3   :  { %v26_v3 = vadd.f32 1.0, %v25_v1 }
   0x4   :  { %v13_v4 = vmax.f32 %v12_v2, 0.0 }
   0x5   :  { %v27_v5 = vmax.f32 %v26_v3, 0.0 }
   0x6   :  { %v15_v6 = vcombine.high %v13_v4, %v13_v4  ;;  %v18_v7 = vsel %vm17_vm0, %v13_v4, 0.0 }
   0x7   :  { %v29_v8 = vcombine.high %v27_v5, %v27_v5  ;;  %v31_v10 = vsel %vm17_vm0, %v27_v5, 0.0 }
   0x8   :  { %v19_v9 = vsel %vm17_vm0, %v15_v6, 0.0 }
   0x9   :  { %v32_v11 = vsel %vm17_vm0, %v29_v8, 0.0  ;;  %v20_v12 = vadd.f32 %v19_v9, %v18_v7 }
   0xa   :  { %v33_v13 = vadd.f32 %v32_v11, %v31_v10 }
   0xb   :  { %21 = vadd.xlane.f32.xlu0 %v20_v12 }
   0xf   :  { %34 = vadd.xlane.f32.xlu0 %v33_v13 }
  0x94   :  { %v22_v14 = vpop.xlane.xlu0 %21 }
  0x95   :  { %v24_v16 = vmul.f32 0.00390625, %v22_v14 }
  0x98   :  { %v35_v15 = vpop.xlane.xlu0 %34 }
  0x99   :  { %v36_v17 = vmul.f32 0.00390625, %v35_v15 }
  0x9b   :  { %v37_v18 = vadd.f32 %v36_v17, %v24_v16 }
  0x9d   :  { %39 = vst.msk [vmem:[%s70_s2] sm:$0xf] %vm38_vm1, %v37_v18 }

// kernel: segmentation_model_forward.18
= control target key start
LH: loop header
LB: loop body
LE: loop exit
PB: predicated region body
PF: predicated region fallthrough
CT: control target
= control target key end

     0   :  { %vm12_vm0 = vcmask 1043456   ;;  %vm21_vm1 = vcmask 3072   ;;  %s44_s0 = inlined_call_operand.vmem [shape: f32[4,256], index: 0, kind: input, shape index: {}]   ;;  %s45_s1 = inlined_call_operand.vmem [shape: f32[4,1], index: 1, kind: output, shape index: {}]  }
   0x1   :  { %v8_v0 = vld [vmem:[%s44_s0] sm:$0xff] }
   0x2   :  { %v10_v1 = vcombine.high %v8_v0, %v8_v0  ;;  %v13_v2 = vsel %vm12_vm0, %v8_v0, 0.0 }
   0x4   :  { %v14_v3 = vsel %vm12_vm0, %v10_v1, 0.0 }
   0x5   :  { %v15_v4 = vadd.f32 %v14_v3, %v13_v2 }
   0x7   :  { %16 = vadd.xlane.f32.xlu0 %v15_v4 }
  0x90   :  { %v17_v5 = vpop.xlane.xlu0 %16 }
  0x91   :  { %v19_v6 = vmul.f32 0.00390625, %v17_v5 }
  0x93   :  { %v20_v7 = vsub.f32 0.0, %v19_v6 }
  0x95   :  { %22 = vst.msk [vmem:[%s45_s1] sm:$0xf] %vm21_vm1, %v20_v7 }

// kernel: segmentation_model_forward.19
= control target key start
LH: loop header
LB: loop body
LE: loop exit
PB: predicated region body
PF: predicated region fallthrough
CT: control target
= control target key end

     0   :  { %vm39_vm0 = vcmask 1043456   ;;  %vm59_vm1 = vcmask 3072   ;;  %s115_s0 = inlined_call_operand.vmem [shape: f32[4,1024], index: 0, kind: input, shape index: {}]   ;;  %s116_s1 = inlined_call_operand.vmem [shape: f32[4,1024], index: 1, kind: input, shape index: {}]   ;;  %s117_s2 = inlined_call_operand.vmem [shape: f32[4,1], index: 2, kind: output, shape index: {}]  }
   0x1   :  { %v11_v0 = vld [vmem:[%s115_s0] sm:$0xff]  ;;  %v12_v1 = vld [vmem:[%s115_s0 + $0x8] sm:$0xff]  ;;  %v13_v2 = vld [vmem:[%s115_s0 + $0x10] sm:$0xff] }
   0x2   :  { %v15_v3 = vld [vmem:[%s116_s1] sm:$0xff]  ;;  %v16_v4 = vld [vmem:[%s116_s1 + $0x8] sm:$0xff]  ;;  %v14_v5 = vld [vmem:[%s115_s0 + $0x18] sm:$0xff] }
   0x3   :  { %v17_v6 = vld [vmem:[%s116_s1 + $0x10] sm:$0xff]  ;;  %v18_v7 = vld [vmem:[%s116_s1 + $0x18] sm:$0xff]  ;;  %v19_v8 = vsub.f32 %v11_v0, %v15_v3  ;;  %v20_v9 = vsub.f32 %v12_v1, %v16_v4 }
   0x4   :  { %v21_v10 = vsub.f32 %v13_v2, %v17_v6  ;;  %v22_v13 = vsub.f32 %v14_v5, %v18_v7 }
   0x5   :  { %v23_v11 = vand.u32 2147483647, %v19_v8  ;;  %v24_v12 = vand.u32 2147483647, %v20_v9 }
   0x6   :  { %v25_v14 = vand.u32 2147483647, %v21_v10  ;;  %v26_v21 = vand.u32 2147483647, %v22_v13 }
   0x7   :  { %v31_v15 = vcombine.high %v23_v11, %v23_v11  ;;  %v32_v16 = vcombine.high %v24_v12, %v24_v12  ;;  %v40_v17 = vsel %vm39_vm0, %v23_v11, 0.0  ;;  %v43_v19 = vsel %vm39_vm0, %v24_v12, 0.0 }
   0x8   :  { %v33_v22 = vcombine.high %v25_v14, %v25_v14  ;;  %v47_v25 = vsel %vm39_vm0, %v25_v14, 0.0  ;;  %v34_v27 = vcombine.high %v26_v21, %v26_v21  ;;  %v51_v30 = vsel %vm39_vm0, %v26_v21, 0.0 }
   0x9   :  { %v41_v18 = vsel %vm39_vm0, %v31_v15, 0.0  ;;  %v45_v23 = vsel %vm39_vm0, %v32_v16, 0.0 }
   0xa   :  { %v42_v20 = vadd.f32 %v41_v18, %v40_v17  ;;  %v49_v28 = vsel %vm39_vm0, %v33_v22, 0.0  ;;  %v53_v32 = vsel %vm39_vm0, %v34_v27, 0.0 }
   0xc   :  { %v44_v24 = vadd.f32 %v43_v19, %v42_v20 }
   0xe   :  { %v46_v26 = vadd.f32 %v45_v23, %v44_v24 }
  0x10   :  { %v48_v29 = vadd.f32 %v47_v25, %v46_v26 }
  0x12   :  { %v50_v31 = vadd.f32 %v49_v28, %v48_v29 }
  0x14   :  { %v52_v33 = vadd.f32 %v51_v30, %v50_v31 }
  0x16   :  { %v54_v34 = vadd.f32 %v53_v32, %v52_v33 }
  0x18   :  { %55 = vadd.xlane.f32.xlu0 %v54_v34 }
  0xa1   :  { %v56_v35 = vpop.xlane.xlu0 %55 }
  0xa2   :  { %v58_v36 = vmul.f32 0.0009765625, %v56_v35 }
  0xa4   :  { %60 = vst.msk [vmem:[%s117_s2] sm:$0xf] %vm59_vm1, %v58_v36 }

</bundles_post_ra>
